<compile_context>
chip_gen: v6e
topology: v6e:2x2x1
jax: 0.10.0
libtpu: 0.0.40
codegen_flags: <defaults>
</compile_context>

<pallas_src>
import math

import jax
import jax.numpy as jnp
from jax.experimental import pallas as pl


# ----------------------------------------------------------------------------
# Glue: K-fused, pool-offset-major im2col slab (built directly per offset,
# no full-resolution intermediate).  Columns ordered (kh, kw, cin) to match
# w.reshape(25*Cin, Cout) of an HWIO weight.
# ----------------------------------------------------------------------------
def _im2col_pool_slab(x, row_order="nhw"):
    """x: [N,H,W,C] (H,W even) -> bf16 slab [4*Q, 25*C], offset-major rows.

    Row order inside each of the 4 offset blocks:
      "nhw": (n, h2, w2)   -- used by conv1/conv2 (output reshapes to NHWC)
      "hwn": (h2, w2, n)   -- used by conv3 so the fused MLP can consume the
                              flatten as per-position row blocks.
    """
    N, H, W, C = x.shape
    H2, W2 = H // 2, W // 2
    Q = N * H2 * W2
    x = x.astype(jnp.bfloat16)
    xp = jnp.pad(x, ((0, 0), (2, 2), (2, 2), (0, 0)))
    blocks = []
    for dh in (0, 1):
        for dw in (0, 1):
            taps = [xp[:, kh + dh:kh + dh + H:2, kw + dw:kw + dw + W:2, :]
                    for kh in range(5) for kw in range(5)]   # each [N,H2,W2,C]
            blk = jnp.concatenate(taps, axis=-1)             # [N,H2,W2,25*C]
            if row_order == "hwn":
                blk = blk.transpose(1, 2, 0, 3)              # [H2,W2,N,25*C]
            blocks.append(blk.reshape(Q, 25 * C))
    return jnp.concatenate(blocks, axis=0)                   # [4*Q, 25*C] bf16


# ----------------------------------------------------------------------------
# Fused Conv2d(5x5, padding=2) + bias + MaxPool2d(2): one matmul on the
# offset-major slab, static row-block max, bias added once after the max
# (max(a+b, c+b) == max(a,c)+b).
# ----------------------------------------------------------------------------
def _conv_pool_kernel(x_ref, w_ref, b_ref, o_ref):
    y = jnp.dot(x_ref[...], w_ref[...], preferred_element_type=jnp.float32)
    q = o_ref.shape[0]
    m = jnp.maximum(jnp.maximum(y[:q], y[q:2 * q]),
                    jnp.maximum(y[2 * q:3 * q], y[3 * q:]))
    o_ref[...] = (m + b_ref[...]).astype(o_ref.dtype)


def conv5x5_pool(x, wcol, b):
    """x: [N,H,W,Cin]; wcol: [25*Cin, Cp] bf16; b: [1, Cp] f32 -> [N,H/2,W/2,Cp] bf16."""
    N, H, W, _ = x.shape
    H2, W2 = H // 2, W // 2
    Q = N * H2 * W2
    Cp = wcol.shape[1]
    xg = _im2col_pool_slab(x, row_order="nhw")               # [4Q, 25*Cin] bf16
    out = pl.pallas_call(
        _conv_pool_kernel,
        out_shape=jax.ShapeDtypeStruct((Q, Cp), jnp.bfloat16),
    )(xg, wcol, b)
    return out.reshape(N, H2, W2, Cp)


# ----------------------------------------------------------------------------
# Fused Conv3(5x5)+bias+MaxPool(2) + Flatten + Linear(1024,64) + Linear(64,10).
# Conv3's pooled rows are (p, n)-ordered (p = spatial position of the 4x4
# map), so the NHWC flatten + first Linear is a sum over p of small
# [N,64]x[64,64] dots against wl1's p-th row block -- no in-kernel reshape.
# ----------------------------------------------------------------------------
def _conv3_pool_mlp_kernel(x_ref, w3_ref, b3_ref, w1_ref, b1_ref, w2_ref,
                           b2_ref, o_ref):
    # Conv3 + pool: one matmul over the 4-offset slab, row-block max.
    y = jnp.dot(x_ref[...], w3_ref[...], preferred_element_type=jnp.float32)
    n = o_ref.shape[0]                 # batch
    p_blocks = w1_ref.shape[0]         # 16 spatial positions of the 4x4 map
    q = p_blocks * n                   # rows per offset block, (p, n)-ordered
    pooled = jnp.maximum(jnp.maximum(y[:q], y[q:2 * q]),
                         jnp.maximum(y[2 * q:3 * q], y[3 * q:])) + b3_ref[...]
    pooled = pooled.astype(jnp.bfloat16)                     # [16*N, 64]

    # Flatten + Linear(1024, 64): accumulate per-position contributions.
    h = jnp.dot(pooled[0:n], w1_ref[0], preferred_element_type=jnp.float32)
    for p in range(1, p_blocks):
        h = h + jnp.dot(pooled[p * n:(p + 1) * n], w1_ref[p],
                        preferred_element_type=jnp.float32)
    h = (h + b1_ref[...]).astype(jnp.bfloat16)               # [N, 64]

    # Linear(64, 10)
    o_ref[...] = jnp.dot(h, w2_ref[...],
                         preferred_element_type=jnp.float32) + b2_ref[...]


def conv3_pool_mlp(x, w3col, b3, w1blk, b1, w2, b2):
    """x: [N,8,8,32] bf16 -> logits [N,10] f32 (conv3+pool+flatten+MLP fused)."""
    N = x.shape[0]
    xg = _im2col_pool_slab(x, row_order="hwn")               # [4*16*N, 800] bf16
    return pl.pallas_call(
        _conv3_pool_mlp_kernel,
        out_shape=jax.ShapeDtypeStruct((N, 10), jnp.float32),
    )(xg, w3col, b3, w1blk, b1, w2, b2)


# ----------------------------------------------------------------------------
# One-time parameter prep: HWIO conv weights -> [25*Cin, Cout] matmul form
# (Cin padded 3->4 for conv1, Cout zero-padded to 128 for conv1/conv2 so the
# kernel stores are lane-dense), wl1 rows permuted (C,H,W)->(H,W,C) and split
# into 16 per-position [64,64] blocks.  Matmul operands cast to bf16.
# ----------------------------------------------------------------------------
def prepare_kernel_params(p):
    bf = jnp.bfloat16

    def conv_w(w, pad_cin=0, pad_cout=0):
        if pad_cin:
            w = jnp.pad(w, ((0, 0), (0, 0), (0, pad_cin), (0, 0)))
        wcol = w.reshape(-1, w.shape[-1])
        if pad_cout:
            wcol = jnp.pad(wcol, ((0, 0), (0, pad_cout)))
        return wcol.astype(bf)

    def conv_b(b, pad_cout=0):
        if pad_cout:
            b = jnp.pad(b, (0, pad_cout))
        return b.reshape(1, -1).astype(jnp.float32)

    wl1_blocks = (p["wl1"].reshape(64, 4, 4, 64)   # rows (C,H,W) -> [C,H,W,out]
                  .transpose(1, 2, 0, 3)           # [H,W,C,out]
                  .reshape(16, 64, 64))            # block p = (h*4+w), rows = C
    return {
        "w1": conv_w(p["w1"], pad_cin=1, pad_cout=96), "b1": conv_b(p["b1"], 96),
        "w2": conv_w(p["w2"], pad_cout=96),            "b2": conv_b(p["b2"], 96),
        "w3": conv_w(p["w3"]),                         "b3": conv_b(p["b3"]),
        "wl1": wl1_blocks.astype(bf), "bl1": p["bl1"].reshape(1, -1),
        "wl2": p["wl2"].astype(bf),   "bl2": p["bl2"].reshape(1, -1),
    }


# ----------------------------------------------------------------------------
# Full forward: (Conv+Pool), (Conv+Pool), fused (Conv+Pool+Flatten+MLP).
# ----------------------------------------------------------------------------
def tudui_forward(x_nchw, kp):
    x = jnp.transpose(x_nchw, (0, 2, 3, 1))              # NCHW -> NHWC (once)
    x = jnp.pad(x, ((0, 0), (0, 0), (0, 0), (0, 1)))     # Cin 3 -> 4 (aligned taps)
    x = conv5x5_pool(x, kp["w1"], kp["b1"])[..., :32]    # [N,16,16,32] bf16
    x = conv5x5_pool(x, kp["w2"], kp["b2"])[..., :32]    # [N, 8, 8,32] bf16
    return conv3_pool_mlp(x, kp["w3"], kp["b3"],
                          kp["wl1"], kp["bl1"], kp["wl2"], kp["bl2"])


# ----------------------------------------------------------------------------
# Pure-JAX f32 reference (lax.conv / reduce_window, PyTorch-layout params).
# ----------------------------------------------------------------------------
def ref_forward(x_nchw, p):
    x = jnp.transpose(x_nchw, (0, 2, 3, 1))

    def conv(x, w, b):
        y = jax.lax.conv_general_dilated(
            x, w, (1, 1), [(2, 2), (2, 2)],
            dimension_numbers=("NHWC", "HWIO", "NHWC"))
        return y + b

    def pool(x):
        return jax.lax.reduce_window(x, -jnp.inf, jax.lax.max,
                                     (1, 2, 2, 1), (1, 2, 2, 1), "VALID")

    x = pool(conv(x, p["w1"], p["b1"]))
    x = pool(conv(x, p["w2"], p["b2"]))
    x = pool(conv(x, p["w3"], p["b3"]))
    N = x.shape[0]
    x = jnp.transpose(x, (0, 3, 1, 2)).reshape(N, -1)    # PyTorch Flatten (NCHW)
    x = x @ p["wl1"] + p["bl1"]
    x = x @ p["wl2"] + p["bl2"]
    return x


def make_params(key):
    ks = jax.random.split(key, 10)

    def uinit(k, shape, fan_in):
        bound = 1.0 / math.sqrt(fan_in)
        return jax.random.uniform(k, shape, jnp.float32, -bound, bound)

    return {
        # Conv weights stored HWIO ([5, 5, Cin, Cout]); biases per Cout.
        "w1": uinit(ks[0], (5, 5, 3, 32), 5 * 5 * 3),
        "b1": uinit(ks[1], (32,), 5 * 5 * 3),
        "w2": uinit(ks[2], (5, 5, 32, 32), 5 * 5 * 32),
        "b2": uinit(ks[3], (32,), 5 * 5 * 32),
        "w3": uinit(ks[4], (5, 5, 32, 64), 5 * 5 * 32),
        "b3": uinit(ks[5], (64,), 5 * 5 * 32),
        # Linear weights stored [in, out] (transposed vs. PyTorch's [out, in]).
        "wl1": uinit(ks[6], (1024, 64), 1024),
        "bl1": uinit(ks[7], (64,), 1024),
        "wl2": uinit(ks[8], (64, 10), 64),
        "bl2": uinit(ks[9], (10,), 64),
    }


if __name__ == "__main__":
    key = jax.random.PRNGKey(0)
    pkey, xkey = jax.random.split(key)
    params = make_params(pkey)
    kparams = prepare_kernel_params(params)
    # Input must be [N, 3, 32, 32] for Linear(1024, 64) to be consistent.
    x = jax.random.normal(xkey, (2, 3, 32, 32), jnp.float32)

    fwd = jax.jit(tudui_forward)
    out = jax.block_until_ready(fwd(x, kparams))
    ref = jax.block_until_ready(ref_forward(x, params))

    assert out.shape == (2, 10), out.shape
    assert out.dtype == jnp.float32
    max_err = float(jnp.max(jnp.abs(out - ref)))
    # bf16 MXU operands (f32 accumulation): tolerance loosened per review.
    assert jnp.allclose(out, ref, rtol=2e-2, atol=2e-2), max_err
    print("KERNEL_OK")
</pallas_src>

<mosaic_0001>
module attributes {stable_mosaic.version = 11 : i64} {
  func.func @_conv_pool_kernel(%arg0: memref<2048x100xbf16, #tpu.memory_space<vmem>>, %arg1: memref<100x128xbf16, #tpu.memory_space<vmem>>, %arg2: memref<1x128xf32, #tpu.memory_space<vmem>>, %arg3: memref<512x128xbf16, #tpu.memory_space<vmem>>) attributes {dimension_semantics = [], scalar_prefetch = 0 : i64, scratch_operands = 0 : i64, tpu.core_type = #tpu.core_type<tc>} {
    %c0 = arith.constant 0 : index
    %c0_0 = arith.constant 0 : index
    %0 = vector.load %arg0[%c0, %c0_0] : memref<2048x100xbf16, #tpu.memory_space<vmem>>, vector<2048x100xbf16>
    %c0_1 = arith.constant 0 : index
    %c0_2 = arith.constant 0 : index
    %1 = vector.load %arg1[%c0_1, %c0_2] : memref<100x128xbf16, #tpu.memory_space<vmem>>, vector<100x128xbf16>
    %cst = arith.constant dense<0.000000e+00> : vector<2048x128xf32>
    %2 = tpu.matmul %0, %1, %cst {dimension_numbers = #tpu.dot_dimension_numbers<[1], [0], [0], [1], [0, 0, 1, 1], [], []>} : vector<2048x100xbf16>, vector<100x128xbf16>, vector<2048x128xf32> -> vector<2048x128xf32>
    %3 = vector.extract_strided_slice %2 {offsets = [0, 0], sizes = [512, 128], strides = [1, 1]} : vector<2048x128xf32> to vector<512x128xf32>
    %4 = vector.extract_strided_slice %2 {offsets = [512, 0], sizes = [512, 128], strides = [1, 1]} : vector<2048x128xf32> to vector<512x128xf32>
    %5 = arith.maximumf %3, %4 : vector<512x128xf32>
    %6 = vector.extract_strided_slice %2 {offsets = [1024, 0], sizes = [512, 128], strides = [1, 1]} : vector<2048x128xf32> to vector<512x128xf32>
    %7 = vector.extract_strided_slice %2 {offsets = [1536, 0], sizes = [512, 128], strides = [1, 1]} : vector<2048x128xf32> to vector<512x128xf32>
    %8 = arith.maximumf %6, %7 : vector<512x128xf32>
    %9 = arith.maximumf %5, %8 : vector<512x128xf32>
    %c0_3 = arith.constant 0 : index
    %c0_4 = arith.constant 0 : index
    %10 = vector.load %arg2[%c0_3, %c0_4] : memref<1x128xf32, #tpu.memory_space<vmem>>, vector<1x128xf32>
    %11 = vector.broadcast %10 : vector<1x128xf32> to vector<512x128xf32>
    %12 = arith.addf %9, %11 : vector<512x128xf32>
    %13 = arith.truncf %12 : vector<512x128xf32> to vector<512x128xbf16>
    %c0_5 = arith.constant 0 : index
    %c0_6 = arith.constant 0 : index
    %14 = vector.load %arg3[%c0_5, %c0_6] : memref<512x128xbf16, #tpu.memory_space<vmem>>, vector<512x128xbf16>
    tpu.vector_store %arg3[%c0_5, %c0_6], %13 {strides = array<i32>} : memref<512x128xbf16, #tpu.memory_space<vmem>>, vector<512x128xbf16>,
    return
  }
}

module attributes {stable_mosaic.version = 11 : i64} {
  func.func @_conv_pool_kernel(%arg0: memref<512x800xbf16, #tpu.memory_space<vmem>>, %arg1: memref<800x128xbf16, #tpu.memory_space<vmem>>, %arg2: memref<1x128xf32, #tpu.memory_space<vmem>>, %arg3: memref<128x128xbf16, #tpu.memory_space<vmem>>) attributes {dimension_semantics = [], scalar_prefetch = 0 : i64, scratch_operands = 0 : i64, tpu.core_type = #tpu.core_type<tc>} {
    %c0 = arith.constant 0 : index
    %c0_0 = arith.constant 0 : index
    %0 = vector.load %arg0[%c0, %c0_0] : memref<512x800xbf16, #tpu.memory_space<vmem>>, vector<512x800xbf16>
    %c0_1 = arith.constant 0 : index
    %c0_2 = arith.constant 0 : index
    %1 = vector.load %arg1[%c0_1, %c0_2] : memref<800x128xbf16, #tpu.memory_space<vmem>>, vector<800x128xbf16>
    %cst = arith.constant dense<0.000000e+00> : vector<512x128xf32>
    %2 = tpu.matmul %0, %1, %cst {dimension_numbers = #tpu.dot_dimension_numbers<[1], [0], [0], [1], [0, 0, 1, 1], [], []>} : vector<512x800xbf16>, vector<800x128xbf16>, vector<512x128xf32> -> vector<512x128xf32>
    %3 = vector.extract_strided_slice %2 {offsets = [0, 0], sizes = [128, 128], strides = [1, 1]} : vector<512x128xf32> to vector<128x128xf32>
    %4 = vector.extract_strided_slice %2 {offsets = [128, 0], sizes = [128, 128], strides = [1, 1]} : vector<512x128xf32> to vector<128x128xf32>
    %5 = arith.maximumf %3, %4 : vector<128x128xf32>
    %6 = vector.extract_strided_slice %2 {offsets = [256, 0], sizes = [128, 128], strides = [1, 1]} : vector<512x128xf32> to vector<128x128xf32>
    %7 = vector.extract_strided_slice %2 {offsets = [384, 0], sizes = [128, 128], strides = [1, 1]} : vector<512x128xf32> to vector<128x128xf32>
    %8 = arith.maximumf %6, %7 : vector<128x128xf32>
    %9 = arith.maximumf %5, %8 : vector<128x128xf32>
    %c0_3 = arith.constant 0 : index
    %c0_4 = arith.constant 0 : index
    %10 = vector.load %arg2[%c0_3, %c0_4] : memref<1x128xf32, #tpu.memory_space<vmem>>, vector<1x128xf32>
    %11 = vector.broadcast %10 : vector<1x128xf32> to vector<128x128xf32>
    %12 = arith.addf %9, %11 : vector<128x128xf32>
    %13 = arith.truncf %12 : vector<128x128xf32> to vector<128x128xbf16>
    %c0_5 = arith.constant 0 : index
    %c0_6 = arith.constant 0 : index
    %14 = vector.load %arg3[%c0_5, %c0_6] : memref<128x128xbf16, #tpu.memory_space<vmem>>, vector<128x128xbf16>
    tpu.vector_store %arg3[%c0_5, %c0_6], %13 {strides = array<i32>} : memref<128x128xbf16, #tpu.memory_space<vmem>>, vector<128x128xbf16>,
    return
  }
}

module attributes {stable_mosaic.version = 11 : i64} {
  func.func @_conv3_pool_mlp_kernel(%arg0: memref<128x800xbf16, #tpu.memory_space<vmem>>, %arg1: memref<800x64xbf16, #tpu.memory_space<vmem>>, %arg2: memref<1x64xf32, #tpu.memory_space<vmem>>, %arg3: memref<16x64x64xbf16, #tpu.memory_space<vmem>>, %arg4: memref<1x64xf32, #tpu.memory_space<vmem>>, %arg5: memref<64x10xbf16, #tpu.memory_space<vmem>>, %arg6: memref<1x10xf32, #tpu.memory_space<vmem>>, %arg7: memref<2x10xf32, #tpu.memory_space<vmem>>) attributes {dimension_semantics = [], scalar_prefetch = 0 : i64, scratch_operands = 0 : i64, tpu.core_type = #tpu.core_type<tc>} {
    %c0 = arith.constant 0 : index
    %c0_0 = arith.constant 0 : index
    %0 = vector.load %arg0[%c0, %c0_0] : memref<128x800xbf16, #tpu.memory_space<vmem>>, vector<128x800xbf16>
    %c0_1 = arith.constant 0 : index
    %c0_2 = arith.constant 0 : index
    %1 = vector.load %arg1[%c0_1, %c0_2] : memref<800x64xbf16, #tpu.memory_space<vmem>>, vector<800x64xbf16>
    %cst = arith.constant dense<0.000000e+00> : vector<128x64xf32>
    %2 = tpu.matmul %0, %1, %cst {dimension_numbers = #tpu.dot_dimension_numbers<[1], [0], [0], [1], [0, 0, 1, 1], [], []>} : vector<128x800xbf16>, vector<800x64xbf16>, vector<128x64xf32> -> vector<128x64xf32>
    %3 = vector.extract_strided_slice %2 {offsets = [0, 0], sizes = [32, 64], strides = [1, 1]} : vector<128x64xf32> to vector<32x64xf32>
    %4 = vector.extract_strided_slice %2 {offsets = [32, 0], sizes = [32, 64], strides = [1, 1]} : vector<128x64xf32> to vector<32x64xf32>
    %5 = arith.maximumf %3, %4 : vector<32x64xf32>
    %6 = vector.extract_strided_slice %2 {offsets = [64, 0], sizes = [32, 64], strides = [1, 1]} : vector<128x64xf32> to vector<32x64xf32>
    %7 = vector.extract_strided_slice %2 {offsets = [96, 0], sizes = [32, 64], strides = [1, 1]} : vector<128x64xf32> to vector<32x64xf32>
    %8 = arith.maximumf %6, %7 : vector<32x64xf32>
    %9 = arith.maximumf %5, %8 : vector<32x64xf32>
    %c0_3 = arith.constant 0 : index
    %c0_4 = arith.constant 0 : index
    %10 = vector.load %arg2[%c0_3, %c0_4] : memref<1x64xf32, #tpu.memory_space<vmem>>, vector<1x64xf32>
    %11 = vector.broadcast %10 : vector<1x64xf32> to vector<32x64xf32>
    %12 = arith.addf %9, %11 : vector<32x64xf32>
    %13 = arith.truncf %12 : vector<32x64xf32> to vector<32x64xbf16>
    %14 = vector.extract_strided_slice %13 {offsets = [0, 0], sizes = [2, 64], strides = [1, 1]} : vector<32x64xbf16> to vector<2x64xbf16>
    %c0_5 = arith.constant 0 : index
    %c0_6 = arith.constant 0 : index
    %c0_7 = arith.constant 0 : index
    %15 = vector.load %arg3[%c0_5, %c0_6, %c0_7] : memref<16x64x64xbf16, #tpu.memory_space<vmem>>, vector<1x64x64xbf16>
    %16 = vector.shape_cast %15 : vector<1x64x64xbf16> to vector<64x64xbf16>
    %cst_8 = arith.constant dense<0.000000e+00> : vector<2x64xf32>
    %17 = tpu.matmul %14, %16, %cst_8 {dimension_numbers = #tpu.dot_dimension_numbers<[1], [0], [0], [1], [0, 0, 1, 1], [], []>} : vector<2x64xbf16>, vector<64x64xbf16>, vector<2x64xf32> -> vector<2x64xf32>
    %18 = vector.extract_strided_slice %13 {offsets = [2, 0], sizes = [2, 64], strides = [1, 1]} : vector<32x64xbf16> to vector<2x64xbf16>
    %c1 = arith.constant 1 : index
    %c0_9 = arith.constant 0 : index
    %c0_10 = arith.constant 0 : index
    %19 = vector.load %arg3[%c1, %c0_9, %c0_10] : memref<16x64x64xbf16, #tpu.memory_space<vmem>>, vector<1x64x64xbf16>
    %20 = vector.shape_cast %19 : vector<1x64x64xbf16> to vector<64x64xbf16>
    %cst_11 = arith.constant dense<0.000000e+00> : vector<2x64xf32>
    %21 = tpu.matmul %18, %20, %cst_11 {dimension_numbers = #tpu.dot_dimension_numbers<[1], [0], [0], [1], [0, 0, 1, 1], [], []>} : vector<2x64xbf16>, vector<64x64xbf16>, vector<2x64xf32> -> vector<2x64xf32>
    %22 = arith.addf %17, %21 : vector<2x64xf32>
    %23 = vector.extract_strided_slice %13 {offsets = [4, 0], sizes = [2, 64], strides = [1, 1]} : vector<32x64xbf16> to vector<2x64xbf16>
    %c2 = arith.constant 2 : index
    %c0_12 = arith.constant 0 : index
    %c0_13 = arith.constant 0 : index
    %24 = vector.load %arg3[%c2, %c0_12, %c0_13] : memref<16x64x64xbf16, #tpu.memory_space<vmem>>, vector<1x64x64xbf16>
    %25 = vector.shape_cast %24 : vector<1x64x64xbf16> to vector<64x64xbf16>
    %cst_14 = arith.constant dense<0.000000e+00> : vector<2x64xf32>
    %26 = tpu.matmul %23, %25, %cst_14 {dimension_numbers = #tpu.dot_dimension_numbers<[1], [0], [0], [1], [0, 0, 1, 1], [], []>} : vector<2x64xbf16>, vector<64x64xbf16>, vector<2x64xf32> -> vector<2x64xf32>
    %27 = arith.addf %22, %26 : vector<2x64xf32>
    %28 = vector.extract_strided_slice %13 {offsets = [6, 0], sizes = [2, 64], strides = [1, 1]} : vector<32x64xbf16> to vector<2x64xbf16>
    %c3 = arith.constant 3 : index
    %c0_15 = arith.constant 0 : index
    %c0_16 = arith.constant 0 : index
    %29 = vector.load %arg3[%c3, %c0_15, %c0_16] : memref<16x64x64xbf16, #tpu.memory_space<vmem>>, vector<1x64x64xbf16>
    %30 = vector.shape_cast %29 : vector<1x64x64xbf16> to vector<64x64xbf16>
    %cst_17 = arith.constant dense<0.000000e+00> : vector<2x64xf32>
    %31 = tpu.matmul %28, %30, %cst_17 {dimension_numbers = #tpu.dot_dimension_numbers<[1], [0], [0], [1], [0, 0, 1, 1], [], []>} : vector<2x64xbf16>, vector<64x64xbf16>, vector<2x64xf32> -> vector<2x64xf32>
    %32 = arith.addf %27, %31 : vector<2x64xf32>
    %33 = vector.extract_strided_slice %13 {offsets = [8, 0], sizes = [2, 64], strides = [1, 1]} : vector<32x64xbf16> to vector<2x64xbf16>
    %c4 = arith.constant 4 : index
    %c0_18 = arith.constant 0 : index
    %c0_19 = arith.constant 0 : index
    %34 = vector.load %arg3[%c4, %c0_18, %c0_19] : memref<16x64x64xbf16, #tpu.memory_space<vmem>>, vector<1x64x64xbf16>
    %35 = vector.shape_cast %34 : vector<1x64x64xbf16> to vector<64x64xbf16>
    %cst_20 = arith.constant dense<0.000000e+00> : vector<2x64xf32>
    %36 = tpu.matmul %33, %35, %cst_20 {dimension_numbers = #tpu.dot_dimension_numbers<[1], [0], [0], [1], [0, 0, 1, 1], [], []>} : vector<2x64xbf16>, vector<64x64xbf16>, vector<2x64xf32> -> vector<2x64xf32>
    %37 = arith.addf %32, %36 : vector<2x64xf32>
    %38 = vector.extract_strided_slice %13 {offsets = [10, 0], sizes = [2, 64], strides = [1, 1]} : vector<32x64xbf16> to vector<2x64xbf16>
    %c5 = arith.constant 5 : index
    %c0_21 = arith.constant 0 : index
    %c0_22 = arith.constant 0 : index
    %39 = vector.load %arg3[%c5, %c0_21, %c0_22] : memref<16x64x64xbf16, #tpu.memory_space<vmem>>, vector<1x64x64xbf16>
    %40 = vector.shape_cast %39 : vector<1x64x64xbf16> to vector<64x64xbf16>
    %cst_23 = arith.constant dense<0.000000e+00> : vector<2x64xf32>
    %41 = tpu.matmul %38, %40, %cst_23 {dimension_numbers = #tpu.dot_dimension_numbers<[1], [0], [0], [1], [0, 0, 1, 1], [], []>} : vector<2x64xbf16>, vector<64x64xbf16>, vector<2x64xf32> -> vector<2x64xf32>
    %42 = arith.addf %37, %41 : vector<2x64xf32>
    %43 = vector.extract_strided_slice %13 {offsets = [12, 0], sizes = [2, 64], strides = [1, 1]} : vector<32x64xbf16> to vector<2x64xbf16>
    %c6 = arith.constant 6 : index
    %c0_24 = arith.constant 0 : index
    %c0_25 = arith.constant 0 : index
    %44 = vector.load %arg3[%c6, %c0_24, %c0_25] : memref<16x64x64xbf16, #tpu.memory_space<vmem>>, vector<1x64x64xbf16>
    %45 = vector.shape_cast %44 : vector<1x64x64xbf16> to vector<64x64xbf16>
    %cst_26 = arith.constant dense<0.000000e+00> : vector<2x64xf32>
    %46 = tpu.matmul %43, %45, %cst_26 {dimension_numbers = #tpu.dot_dimension_numbers<[1], [0], [0], [1], [0, 0, 1, 1], [], []>} : vector<2x64xbf16>, vector<64x64xbf16>, vector<2x64xf32> -> vector<2x64xf32>
    %47 = arith.addf %42, %46 : vector<2x64xf32>
    %48 = vector.extract_strided_slice %13 {offsets = [14, 0], sizes = [2, 64], strides = [1, 1]} : vector<32x64xbf16> to vector<2x64xbf16>
    %c7 = arith.constant 7 : index
    %c0_27 = arith.constant 0 : index
    %c0_28 = arith.constant 0 : index
    %49 = vector.load %arg3[%c7, %c0_27, %c0_28] : memref<16x64x64xbf16, #tpu.memory_space<vmem>>, vector<1x64x64xbf16>
    %50 = vector.shape_cast %49 : vector<1x64x64xbf16> to vector<64x64xbf16>
    %cst_29 = arith.constant dense<0.000000e+00> : vector<2x64xf32>
    %51 = tpu.matmul %48, %50, %cst_29 {dimension_numbers = #tpu.dot_dimension_numbers<[1], [0], [0], [1], [0, 0, 1, 1], [], []>} : vector<2x64xbf16>, vector<64x64xbf16>, vector<2x64xf32> -> vector<2x64xf32>
    %52 = arith.addf %47, %51 : vector<2x64xf32>
    %53 = vector.extract_strided_slice %13 {offsets = [16, 0], sizes = [2, 64], strides = [1, 1]} : vector<32x64xbf16> to vector<2x64xbf16>
    %c8 = arith.constant 8 : index
    %c0_30 = arith.constant 0 : index
    %c0_31 = arith.constant 0 : index
    %54 = vector.load %arg3[%c8, %c0_30, %c0_31] : memref<16x64x64xbf16, #tpu.memory_space<vmem>>, vector<1x64x64xbf16>
    %55 = vector.shape_cast %54 : vector<1x64x64xbf16> to vector<64x64xbf16>
    %cst_32 = arith.constant dense<0.000000e+00> : vector<2x64xf32>
    %56 = tpu.matmul %53, %55, %cst_32 {dimension_numbers = #tpu.dot_dimension_numbers<[1], [0], [0], [1], [0, 0, 1, 1], [], []>} : vector<2x64xbf16>, vector<64x64xbf16>, vector<2x64xf32> -> vector<2x64xf32>
    %57 = arith.addf %52, %56 : vector<2x64xf32>
    %58 = vector.extract_strided_slice %13 {offsets = [18, 0], sizes = [2, 64], strides = [1, 1]} : vector<32x64xbf16> to vector<2x64xbf16>
    %c9 = arith.constant 9 : index
    %c0_33 = arith.constant 0 : index
    %c0_34 = arith.constant 0 : index
    %59 = vector.load %arg3[%c9, %c0_33, %c0_34] : memref<16x64x64xbf16, #tpu.memory_space<vmem>>, vector<1x64x64xbf16>
    %60 = vector.shape_cast %59 : vector<1x64x64xbf16> to vector<64x64xbf16>
    %cst_35 = arith.constant dense<0.000000e+00> : vector<2x64xf32>
    %61 = tpu.matmul %58, %60, %cst_35 {dimension_numbers = #tpu.dot_dimension_numbers<[1], [0], [0], [1], [0, 0, 1, 1], [], []>} : vector<2x64xbf16>, vector<64x64xbf16>, vector<2x64xf32> -> vector<2x64xf32>
    %62 = arith.addf %57, %61 : vector<2x64xf32>
    %63 = vector.extract_strided_slice %13 {offsets = [20, 0], sizes = [2, 64], strides = [1, 1]} : vector<32x64xbf16> to vector<2x64xbf16>
    %c10 = arith.constant 10 : index
    %c0_36 = arith.constant 0 : index
    %c0_37 = arith.constant 0 : index
    %64 = vector.load %arg3[%c10, %c0_36, %c0_37] : memref<16x64x64xbf16, #tpu.memory_space<vmem>>, vector<1x64x64xbf16>
    %65 = vector.shape_cast %64 : vector<1x64x64xbf16> to vector<64x64xbf16>
    %cst_38 = arith.constant dense<0.000000e+00> : vector<2x64xf32>
    %66 = tpu.matmul %63, %65, %cst_38 {dimension_numbers = #tpu.dot_dimension_numbers<[1], [0], [0], [1], [0, 0, 1, 1], [], []>} : vector<2x64xbf16>, vector<64x64xbf16>, vector<2x64xf32> -> vector<2x64xf32>
    %67 = arith.addf %62, %66 : vector<2x64xf32>
    %68 = vector.extract_strided_slice %13 {offsets = [22, 0], sizes = [2, 64], strides = [1, 1]} : vector<32x64xbf16> to vector<2x64xbf16>
    %c11 = arith.constant 11 : index
    %c0_39 = arith.constant 0 : index
    %c0_40 = arith.constant 0 : index
    %69 = vector.load %arg3[%c11, %c0_39, %c0_40] : memref<16x64x64xbf16, #tpu.memory_space<vmem>>, vector<1x64x64xbf16>
    %70 = vector.shape_cast %69 : vector<1x64x64xbf16> to vector<64x64xbf16>
    %cst_41 = arith.constant dense<0.000000e+00> : vector<2x64xf32>
    %71 = tpu.matmul %68, %70, %cst_41 {dimension_numbers = #tpu.dot_dimension_numbers<[1], [0], [0], [1], [0, 0, 1, 1], [], []>} : vector<2x64xbf16>, vector<64x64xbf16>, vector<2x64xf32> -> vector<2x64xf32>
    %72 = arith.addf %67, %71 : vector<2x64xf32>
    %73 = vector.extract_strided_slice %13 {offsets = [24, 0], sizes = [2, 64], strides = [1, 1]} : vector<32x64xbf16> to vector<2x64xbf16>
    %c12 = arith.constant 12 : index
    %c0_42 = arith.constant 0 : index
    %c0_43 = arith.constant 0 : index
    %74 = vector.load %arg3[%c12, %c0_42, %c0_43] : memref<16x64x64xbf16, #tpu.memory_space<vmem>>, vector<1x64x64xbf16>
    %75 = vector.shape_cast %74 : vector<1x64x64xbf16> to vector<64x64xbf16>
    %cst_44 = arith.constant dense<0.000000e+00> : vector<2x64xf32>
    %76 = tpu.matmul %73, %75, %cst_44 {dimension_numbers = #tpu.dot_dimension_numbers<[1], [0], [0], [1], [0, 0, 1, 1], [], []>} : vector<2x64xbf16>, vector<64x64xbf16>, vector<2x64xf32> -> vector<2x64xf32>
    %77 = arith.addf %72, %76 : vector<2x64xf32>
    %78 = vector.extract_strided_slice %13 {offsets = [26, 0], sizes = [2, 64], strides = [1, 1]} : vector<32x64xbf16> to vector<2x64xbf16>
    %c13 = arith.constant 13 : index
    %c0_45 = arith.constant 0 : index
    %c0_46 = arith.constant 0 : index
    %79 = vector.load %arg3[%c13, %c0_45, %c0_46] : memref<16x64x64xbf16, #tpu.memory_space<vmem>>, vector<1x64x64xbf16>
    %80 = vector.shape_cast %79 : vector<1x64x64xbf16> to vector<64x64xbf16>
    %cst_47 = arith.constant dense<0.000000e+00> : vector<2x64xf32>
    %81 = tpu.matmul %78, %80, %cst_47 {dimension_numbers = #tpu.dot_dimension_numbers<[1], [0], [0], [1], [0, 0, 1, 1], [], []>} : vector<2x64xbf16>, vector<64x64xbf16>, vector<2x64xf32> -> vector<2x64xf32>
    %82 = arith.addf %77, %81 : vector<2x64xf32>
    %83 = vector.extract_strided_slice %13 {offsets = [28, 0], sizes = [2, 64], strides = [1, 1]} : vector<32x64xbf16> to vector<2x64xbf16>
    %c14 = arith.constant 14 : index
    %c0_48 = arith.constant 0 : index
    %c0_49 = arith.constant 0 : index
    %84 = vector.load %arg3[%c14, %c0_48, %c0_49] : memref<16x64x64xbf16, #tpu.memory_space<vmem>>, vector<1x64x64xbf16>
    %85 = vector.shape_cast %84 : vector<1x64x64xbf16> to vector<64x64xbf16>
    %cst_50 = arith.constant dense<0.000000e+00> : vector<2x64xf32>
    %86 = tpu.matmul %83, %85, %cst_50 {dimension_numbers = #tpu.dot_dimension_numbers<[1], [0], [0], [1], [0, 0, 1, 1], [], []>} : vector<2x64xbf16>, vector<64x64xbf16>, vector<2x64xf32> -> vector<2x64xf32>
    %87 = arith.addf %82, %86 : vector<2x64xf32>
    %88 = vector.extract_strided_slice %13 {offsets = [30, 0], sizes = [2, 64], strides = [1, 1]} : vector<32x64xbf16> to vector<2x64xbf16>
    %c15 = arith.constant 15 : index
    %c0_51 = arith.constant 0 : index
    %c0_52 = arith.constant 0 : index
    %89 = vector.load %arg3[%c15, %c0_51, %c0_52] : memref<16x64x64xbf16, #tpu.memory_space<vmem>>, vector<1x64x64xbf16>
    %90 = vector.shape_cast %89 : vector<1x64x64xbf16> to vector<64x64xbf16>
    %cst_53 = arith.constant dense<0.000000e+00> : vector<2x64xf32>
    %91 = tpu.matmul %88, %90, %cst_53 {dimension_numbers = #tpu.dot_dimension_numbers<[1], [0], [0], [1], [0, 0, 1, 1], [], []>} : vector<2x64xbf16>, vector<64x64xbf16>, vector<2x64xf32> -> vector<2x64xf32>
    %92 = arith.addf %87, %91 : vector<2x64xf32>
    %c0_54 = arith.constant 0 : index
    %c0_55 = arith.constant 0 : index
    %93 = vector.load %arg4[%c0_54, %c0_55] : memref<1x64xf32, #tpu.memory_space<vmem>>, vector<1x64xf32>
    %94 = vector.broadcast %93 : vector<1x64xf32> to vector<2x64xf32>
    %95 = arith.addf %92, %94 : vector<2x64xf32>
    %96 = arith.truncf %95 : vector<2x64xf32> to vector<2x64xbf16>
    %c0_56 = arith.constant 0 : index
    %c0_57 = arith.constant 0 : index
    %97 = vector.load %arg5[%c0_56, %c0_57] : memref<64x10xbf16, #tpu.memory_space<vmem>>, vector<64x10xbf16>
    %cst_58 = arith.constant dense<0.000000e+00> : vector<2x10xf32>
    %98 = tpu.matmul %96, %97, %cst_58 {dimension_numbers = #tpu.dot_dimension_numbers<[1], [0], [0], [1], [0, 0, 1, 1], [], []>} : vector<2x64xbf16>, vector<64x10xbf16>, vector<2x10xf32> -> vector<2x10xf32>
    %c0_59 = arith.constant 0 : index
    %c0_60 = arith.constant 0 : index
    %99 = vector.load %arg6[%c0_59, %c0_60] : memref<1x10xf32, #tpu.memory_space<vmem>>, vector<1x10xf32>
    %100 = vector.broadcast %99 : vector<1x10xf32> to vector<2x10xf32>
    %101 = arith.addf %98, %100 : vector<2x10xf32>
    %c0_61 = arith.constant 0 : index
    %c0_62 = arith.constant 0 : index
    %102 = vector.load %arg7[%c0_61, %c0_62] : memref<2x10xf32, #tpu.memory_space<vmem>>, vector<2x10xf32>
    tpu.vector_store %arg7[%c0_61, %c0_62], %101 {strides = array<i32>} : memref<2x10xf32, #tpu.memory_space<vmem>>, vector<2x10xf32>,
    return
  }
}

</mosaic_0001>

<bundles_post_ra>
// kernel: tudui_forward.3
= control target key start
LH: loop header
LB: loop body
LE: loop exit
PB: predicated region body
PF: predicated region fallthrough
CT: control target
= control target key end

     0   :  { %vm1348_vm0 = vcmask 1041408   ;;  %vm963_vm1 = vcmask 818176   ;;  %s5237_s1 = inlined_call_operand.vmem [shape: bf16[100,128], index: 1, kind: input, shape index: {}]   ;;  %s5238_s0 = inlined_call_operand.vmem [shape: bf16[2048,100], index: 0, kind: input, shape index: {}]   ;;  %s5239_s2 = inlined_call_operand.vmem [shape: f32[1,128], index: 2, kind: input, shape index: {}]   ;;  %s5240_s3 = inlined_call_operand.vmem [shape: bf16[512,128], index: 3, kind: output, shape index: {}]  }
   0x1   :  { %v4000_v0 = vld [vmem:[%s5237_s1 + $0x30] ss:$0 sps:$4 sm:$0x33]   ;;  %v4001_v1 = vld [vmem:[%s5237_s1 + $0x28] sm:$0xff]   ;;  %v4002_v3 = vld [vmem:[%s5237_s1 + $0x20] sm:$0xff]  }
   0x2   :  { %3998 = vmatprep.subr.msk.bf16.mxu0 %vm1348_vm0, %v4000_v0  ;;  %3999 = vmatprep.subr.msk.bf16.mxu1 %vm1348_vm0, %v4000_v0  ;;  %v1350_v2 = vsel %vm1348_vm0, %v4000_v0, 0  ;;  %v4003_v4 = vld [vmem:[%s5237_s1 + $0x18] sm:$0xff]   ;;  %v4007_v5 = vld [vmem:[%s5238_s0] sm:$0xff]   ;;  %v4004_v7 = vld [vmem:[%s5237_s1 + $0x10] sm:$0xff]  }
   0x3   :  { %3715 = vmatpush3.bf16.msra.mxu0 %v1350_v2  ;;  %3991 = vmatpush3.bf16.msra.mxu1 %v1350_v2  ;;  %v4008_v6 = vld [vmem:[%s5238_s0 + $0x200] sm:$0xff]   ;;  %v4005_v8 = vld [vmem:[%s5237_s1 + $0x8] sm:$0xff]   ;;  %v4011_v12 = vld [vmem:[%s5238_s0 + $0x10] sm:$0xff]  }
   0x4   :  { %3716 = vmatprep.subr.bf16.mxu0 %v4001_v1  ;;  %3985 = vmatprep.subr.bf16.mxu1 %v4001_v1  ;;  %v4006_v9 = vld [vmem:[%s5237_s1] sm:$0xff]   ;;  %v4009_v10 = vld [vmem:[%s5238_s0 + $0x8] sm:$0xff]   ;;  %v4012_v13 = vld [vmem:[%s5238_s0 + $0x210] sm:$0xff]  }
   0x5   :  { %3728 = vmatprep.mubr.msk.bf16.mxu0 %vm963_vm1, %v4007_v5  ;;  %3856 = vmatprep.mubr.msk.bf16.mxu1 %vm963_vm1, %v4008_v6  ;;  %v4010_v11 = vld [vmem:[%s5238_s0 + $0x208] sm:$0xff]   ;;  %v4013_v14 = vld [vmem:[%s5238_s0 + $0x18] sm:$0xff]   ;;  %v4015_v16 = vld [vmem:[%s5238_s0 + $0x20] sm:$0xff]  }
   0x6   :  { %v4014_v15 = vld [vmem:[%s5238_s0 + $0x218] sm:$0xff]   ;;  %v4016_v17 = vld [vmem:[%s5238_s0 + $0x220] sm:$0xff]   ;;  %v4017_v18 = vld [vmem:[%s5238_s0 + $0x28] sm:$0xff]  }
   0x7   :  { %3717 = vmatpush3.bf16.msra.mxu0 %v4001_v1  ;;  %3992 = vmatpush3.bf16.msra.mxu1 %v4001_v1  ;;  %v4018_v19 = vld [vmem:[%s5238_s0 + $0x228] sm:$0xff]   ;;  %v4019_v20 = vld [vmem:[%s5238_s0 + $0x30] sm:$0xff]   ;;  %v4021_v22 = vld [vmem:[%s5238_s0 + $0x38] sm:$0xff]  }
   0x8   :  { %3718 = vmatprep.subr.bf16.mxu0 %v4002_v3  ;;  %3986 = vmatprep.subr.bf16.mxu1 %v4002_v3  ;;  %v4020_v21 = vld [vmem:[%s5238_s0 + $0x230] sm:$0xff]   ;;  %v4022_v23 = vld [vmem:[%s5238_s0 + $0x238] sm:$0xff]   ;;  %v4023_v24 = vld [vmem:[%s5238_s0 + $0x40] sm:$0xff]  }
   0x9   :  { %v4024_v25 = vld [vmem:[%s5238_s0 + $0x240] sm:$0xff]   ;;  %v4025_v26 = vld [vmem:[%s5238_s0 + $0x48] sm:$0xff]   ;;  %v4027_v28 = vld [vmem:[%s5238_s0 + $0x50] sm:$0xff]  }
   0xa   :  { %v4026_v27 = vld [vmem:[%s5238_s0 + $0x248] sm:$0xff]   ;;  %v4028_v29 = vld [vmem:[%s5238_s0 + $0x250] sm:$0xff]   ;;  %v4029_v30 = vld [vmem:[%s5238_s0 + $0x58] sm:$0xff]  }
   0xb   :  { %3719 = vmatpush3.bf16.msra.mxu0 %v4002_v3  ;;  %3993 = vmatpush3.bf16.msra.mxu1 %v4002_v3  ;;  %v4030_v31 = vld [vmem:[%s5238_s0 + $0x258] sm:$0xff]   ;;  %v4031_v32 = vld [vmem:[%s5238_s0 + $0x60] sm:$0xff]   ;;  %v4033_v34 = vld [vmem:[%s5238_s0 + $0x68] sm:$0xff]  }
   0xc   :  { %3720 = vmatprep.subr.bf16.mxu0 %v4003_v4  ;;  %3987 = vmatprep.subr.bf16.mxu1 %v4003_v4  ;;  %v4032_v33 = vld [vmem:[%s5238_s0 + $0x260] sm:$0xff]   ;;  %v4034_v35 = vld [vmem:[%s5238_s0 + $0x268] sm:$0xff]   ;;  %v4035_v36 = vld [vmem:[%s5238_s0 + $0x70] sm:$0xff]  }
   0xd   :  { %v4036_v37 = vld [vmem:[%s5238_s0 + $0x270] sm:$0xff]   ;;  %v4037_v38 = vld [vmem:[%s5238_s0 + $0x78] sm:$0xff]   ;;  %v4039_v40 = vld [vmem:[%s5238_s0 + $0x80] sm:$0xff]  }
   0xe   :  { %v4038_v39 = vld [vmem:[%s5238_s0 + $0x278] sm:$0xff]   ;;  %v4040_v41 = vld [vmem:[%s5238_s0 + $0x280] sm:$0xff]   ;;  %v4041_v42 = vld [vmem:[%s5238_s0 + $0x88] sm:$0xff]  }
   0xf   :  { %3721 = vmatpush3.bf16.msra.mxu0 %v4003_v4  ;;  %3994 = vmatpush3.bf16.msra.mxu1 %v4003_v4  ;;  %v4042_v43 = vld [vmem:[%s5238_s0 + $0x288] sm:$0xff]   ;;  %v4043_v44 = vld [vmem:[%s5238_s0 + $0x90] sm:$0xff]   ;;  %v4045_v46 = vld [vmem:[%s5238_s0 + $0x98] sm:$0xff]  }
  0x10   :  { %3722 = vmatprep.subr.bf16.mxu0 %v4004_v7  ;;  %3988 = vmatprep.subr.bf16.mxu1 %v4004_v7  ;;  %v4044_v45 = vld [vmem:[%s5238_s0 + $0x290] sm:$0xff]   ;;  %v4046_v47 = vld [vmem:[%s5238_s0 + $0x298] sm:$0xff]   ;;  %v4047_v48 = vld [vmem:[%s5238_s0 + $0xa0] sm:$0xff]  }
  0x11   :  { %v4048_v49 = vld [vmem:[%s5238_s0 + $0x2a0] sm:$0xff]   ;;  %v4049_v50 = vld [vmem:[%s5238_s0 + $0xa8] sm:$0xff]   ;;  %v4051_v52 = vld [vmem:[%s5238_s0 + $0xb0] sm:$0xff]  }
  0x12   :  { %v4050_v51 = vld [vmem:[%s5238_s0 + $0x2a8] sm:$0xff]   ;;  %v4052_v53 = vld [vmem:[%s5238_s0 + $0x2b0] sm:$0xff]   ;;  %v4053_v54 = vld [vmem:[%s5238_s0 + $0xb8] sm:$0xff]  }
  0x13   :  { %3723 = vmatpush3.bf16.msra.mxu0 %v4004_v7  ;;  %3995 = vmatpush3.bf16.msra.mxu1 %v4004_v7  ;;  %v4054_v55 = vld [vmem:[%s5238_s0 + $0x2b8] sm:$0xff]   ;;  %v4055_v56 = vld [vmem:[%s5238_s0 + $0xc0] sm:$0xff]   ;;  %v4057_v58 = vld [vmem:[%s5238_s0 + $0xc8] sm:$0xff]  }
  0x14   :  { %3724 = vmatprep.subr.bf16.mxu0 %v4005_v8  ;;  %3989 = vmatprep.subr.bf16.mxu1 %v4005_v8  ;;  %v4056_v57 = vld [vmem:[%s5238_s0 + $0x2c0] sm:$0xff]   ;;  %v4058_v59 = vld [vmem:[%s5238_s0 + $0x2c8] sm:$0xff]   ;;  %v4059_v60 = vld [vmem:[%s5238_s0 + $0xd0] sm:$0xff]  }
  0x15   :  { %v4060_v61 = vld [vmem:[%s5238_s0 + $0x2d0] sm:$0xff]   ;;  %v4061_v62 = vld [vmem:[%s5238_s0 + $0xd8] sm:$0xff]   ;;  %v4063_v0 = vld [vmem:[%s5238_s0 + $0xe0] sm:$0xff]  }
  0x16   :  { %v4062_v63 = vld [vmem:[%s5238_s0 + $0x2d8] sm:$0xff]   ;;  %v4064_v1 = vld [vmem:[%s5238_s0 + $0x2e0] sm:$0xff]   ;;  %v4065_v2 = vld [vmem:[%s5238_s0 + $0xe8] sm:$0xff]  }
  0x17   :  { %3725 = vmatpush3.bf16.msra.mxu0 %v4005_v8  ;;  %3996 = vmatpush3.bf16.msra.mxu1 %v4005_v8  ;;  %v4066_v3 = vld [vmem:[%s5238_s0 + $0x2e8] sm:$0xff]   ;;  %v4067_v4 = vld [vmem:[%s5238_s0 + $0xf0] sm:$0xff]   ;;  %v4069_v6 = vld [vmem:[%s5238_s0 + $0xf8] sm:$0xff]  }
  0x18   :  { %3726 = vmatprep.subr.bf16.mxu0 %v4006_v9  ;;  %3990 = vmatprep.subr.bf16.mxu1 %v4006_v9  ;;  %v4068_v5 = vld [vmem:[%s5238_s0 + $0x2f0] sm:$0xff]   ;;  %v4070_v7 = vld [vmem:[%s5238_s0 + $0x2f8] sm:$0xff]   ;;  %v4071_v8 = vld [vmem:[%s5238_s0 + $0x100] sm:$0xff]  }
  0x1b   :  { %3727 = vmatpush3.bf16.msra.mxu0 %v4006_v9  ;;  %3997 = vmatpush3.bf16.msra.mxu1 %v4006_v9  ;;  %v4072_v9 = vld [vmem:[%s5238_s0 + $0x300] sm:$0xff]  }
  0x1e   :  { %3729 = vmatmul.mubr.msk.bf16.vlgmr.msra.gmra.mxu0 %vm963_vm1, %v4009_v10  ;;  %3857 = vmatmul.mubr.msk.bf16.vlgmr.msra.gmra.mxu1 %vm963_vm1, %v4010_v11  ;;  %v4073_v10 = vld [vmem:[%s5238_s0 + $0x108] sm:$0xff]  }
  0x1f   :  { %3732 = vmatprep.mubr.msk.bf16.mxu0 %vm963_vm1, %v4011_v12  ;;  %3860 = vmatprep.mubr.msk.bf16.mxu1 %vm963_vm1, %v4012_v13  ;;  %v4074_v11 = vld [vmem:[%s5238_s0 + $0x308] sm:$0xff]   ;;  %v4075_v12 = vld [vmem:[%s5238_s0 + $0x110] sm:$0xff]  }
  0x20   :  { %v4076_v13 = vld [vmem:[%s5238_s0 + $0x310] sm:$0xff]  }
  0x26   :  { %3733 = vmatmul.mubr.msk.bf16.gmra.mxu0 %vm963_vm1, %v4013_v14  ;;  %3861 = vmatmul.mubr.msk.bf16.gmra.mxu1 %vm963_vm1, %v4014_v15  ;;  %v4077_v14 = vld [vmem:[%s5238_s0 + $0x118] sm:$0xff]  }
  0x27   :  { %3736 = vmatprep.mubr.msk.bf16.mxu0 %vm963_vm1, %v4015_v16  ;;  %3864 = vmatprep.mubr.msk.bf16.mxu1 %vm963_vm1, %v4016_v17  ;;  %v4078_v15 = vld [vmem:[%s5238_s0 + $0x318] sm:$0xff]   ;;  %v4079_v16 = vld [vmem:[%s5238_s0 + $0x120] sm:$0xff]  }
  0x28   :  { %v4080_v17 = vld [vmem:[%s5238_s0 + $0x320] sm:$0xff]  }
  0x2e   :  { %3737 = vmatmul.mubr.msk.bf16.gmra.mxu0 %vm963_vm1, %v4017_v18  ;;  %3865 = vmatmul.mubr.msk.bf16.gmra.mxu1 %vm963_vm1, %v4018_v19  ;;  %v4081_v18 = vld [vmem:[%s5238_s0 + $0x128] sm:$0xff]  }
  0x2f   :  { %3740 = vmatprep.mubr.msk.bf16.mxu0 %vm963_vm1, %v4019_v20  ;;  %3868 = vmatprep.mubr.msk.bf16.mxu1 %vm963_vm1, %v4020_v21  ;;  %v4082_v19 = vld [vmem:[%s5238_s0 + $0x328] sm:$0xff]   ;;  %v4083_v20 = vld [vmem:[%s5238_s0 + $0x130] sm:$0xff]  }
  0x30   :  { %v4084_v21 = vld [vmem:[%s5238_s0 + $0x330] sm:$0xff]  }
  0x36   :  { %3741 = vmatmul.mubr.msk.bf16.gmra.mxu0 %vm963_vm1, %v4021_v22  ;;  %3869 = vmatmul.mubr.msk.bf16.gmra.mxu1 %vm963_vm1, %v4022_v23  ;;  %v4085_v22 = vld [vmem:[%s5238_s0 + $0x138] sm:$0xff]  }
  0x37   :  { %3744 = vmatprep.mubr.msk.bf16.mxu0 %vm963_vm1, %v4023_v24  ;;  %3872 = vmatprep.mubr.msk.bf16.mxu1 %vm963_vm1, %v4024_v25  ;;  %v4086_v23 = vld [vmem:[%s5238_s0 + $0x338] sm:$0xff]   ;;  %v4087_v24 = vld [vmem:[%s5238_s0 + $0x140] sm:$0xff]  }
  0x38   :  { %v4088_v25 = vld [vmem:[%s5238_s0 + $0x340] sm:$0xff]  }
  0x3e   :  { %3745 = vmatmul.mubr.msk.bf16.gmra.mxu0 %vm963_vm1, %v4025_v26  ;;  %3873 = vmatmul.mubr.msk.bf16.gmra.mxu1 %vm963_vm1, %v4026_v27  ;;  %v4089_v26 = vld [vmem:[%s5238_s0 + $0x148] sm:$0xff]  }
  0x3f   :  { %3748 = vmatprep.mubr.msk.bf16.mxu0 %vm963_vm1, %v4027_v28  ;;  %3876 = vmatprep.mubr.msk.bf16.mxu1 %vm963_vm1, %v4028_v29  ;;  %v4090_v27 = vld [vmem:[%s5238_s0 + $0x348] sm:$0xff]   ;;  %v4091_v28 = vld [vmem:[%s5238_s0 + $0x150] sm:$0xff]  }
  0x40   :  { %v4092_v29 = vld [vmem:[%s5238_s0 + $0x350] sm:$0xff]  }
  0x46   :  { %3749 = vmatmul.mubr.msk.bf16.gmra.mxu0 %vm963_vm1, %v4029_v30  ;;  %3877 = vmatmul.mubr.msk.bf16.gmra.mxu1 %vm963_vm1, %v4030_v31  ;;  %v4093_v30 = vld [vmem:[%s5238_s0 + $0x158] sm:$0xff]  }
  0x47   :  { %3752 = vmatprep.mubr.msk.bf16.mxu0 %vm963_vm1, %v4031_v32  ;;  %3880 = vmatprep.mubr.msk.bf16.mxu1 %vm963_vm1, %v4032_v33  ;;  %v4094_v31 = vld [vmem:[%s5238_s0 + $0x358] sm:$0xff]   ;;  %v4095_v32 = vld [vmem:[%s5238_s0 + $0x160] sm:$0xff]  }
  0x48   :  { %v4096_v33 = vld [vmem:[%s5238_s0 + $0x360] sm:$0xff]  }
  0x4e   :  { %3753 = vmatmul.mubr.msk.bf16.gmra.mxu0 %vm963_vm1, %v4033_v34  ;;  %3881 = vmatmul.mubr.msk.bf16.gmra.mxu1 %vm963_vm1, %v4034_v35  ;;  %v4097_v34 = vld [vmem:[%s5238_s0 + $0x168] sm:$0xff]  }
  0x4f   :  { %3756 = vmatprep.mubr.msk.bf16.mxu0 %vm963_vm1, %v4035_v36  ;;  %3884 = vmatprep.mubr.msk.bf16.mxu1 %vm963_vm1, %v4036_v37  ;;  %v4098_v35 = vld [vmem:[%s5238_s0 + $0x368] sm:$0xff]   ;;  %v4099_v36 = vld [vmem:[%s5238_s0 + $0x170] sm:$0xff]  }
  0x50   :  { %v4100_v37 = vld [vmem:[%s5238_s0 + $0x370] sm:$0xff]  }
  0x56   :  { %3757 = vmatmul.mubr.msk.bf16.gmra.mxu0 %vm963_vm1, %v4037_v38  ;;  %3885 = vmatmul.mubr.msk.bf16.gmra.mxu1 %vm963_vm1, %v4038_v39  ;;  %v4101_v38 = vld [vmem:[%s5238_s0 + $0x178] sm:$0xff]  }
  0x57   :  { %3760 = vmatprep.mubr.msk.bf16.mxu0 %vm963_vm1, %v4039_v40  ;;  %3888 = vmatprep.mubr.msk.bf16.mxu1 %vm963_vm1, %v4040_v41  ;;  %v4102_v39 = vld [vmem:[%s5238_s0 + $0x378] sm:$0xff]   ;;  %v4103_v40 = vld [vmem:[%s5238_s0 + $0x180] sm:$0xff]  }
  0x58   :  { %v4104_v41 = vld [vmem:[%s5238_s0 + $0x380] sm:$0xff]  }
  0x5e   :  { %3761 = vmatmul.mubr.msk.bf16.gmra.mxu0 %vm963_vm1, %v4041_v42  ;;  %3889 = vmatmul.mubr.msk.bf16.gmra.mxu1 %vm963_vm1, %v4042_v43  ;;  %v4105_v42 = vld [vmem:[%s5238_s0 + $0x188] sm:$0xff]  }
  0x5f   :  { %3764 = vmatprep.mubr.msk.bf16.mxu0 %vm963_vm1, %v4043_v44  ;;  %3892 = vmatprep.mubr.msk.bf16.mxu1 %vm963_vm1, %v4044_v45  ;;  %v4106_v43 = vld [vmem:[%s5238_s0 + $0x388] sm:$0xff]   ;;  %v4107_v44 = vld [vmem:[%s5238_s0 + $0x190] sm:$0xff]  }
  0x60   :  { %v4108_v45 = vld [vmem:[%s5238_s0 + $0x390] sm:$0xff]  }
  0x66   :  { %3765 = vmatmul.mubr.msk.bf16.gmra.mxu0 %vm963_vm1, %v4045_v46  ;;  %3893 = vmatmul.mubr.msk.bf16.gmra.mxu1 %vm963_vm1, %v4046_v47 }
  0x67   :  { %3768 = vmatprep.mubr.msk.bf16.mxu0 %vm963_vm1, %v4047_v48  ;;  %3896 = vmatprep.mubr.msk.bf16.mxu1 %vm963_vm1, %v4048_v49 }
  0x6e   :  { %3769 = vmatmul.mubr.msk.bf16.gmra.mxu0 %vm963_vm1, %v4049_v50  ;;  %3897 = vmatmul.mubr.msk.bf16.gmra.mxu1 %vm963_vm1, %v4050_v51 }
  0x6f   :  { %3772 = vmatprep.mubr.msk.bf16.mxu0 %vm963_vm1, %v4051_v52  ;;  %3900 = vmatprep.mubr.msk.bf16.mxu1 %vm963_vm1, %v4052_v53  ;;  %v4109_v52 = vld [vmem:[%s5238_s0 + $0x198] sm:$0xff]  }
  0x70   :  { %v4110_v53 = vld [vmem:[%s5238_s0 + $0x398] sm:$0xff]  }
  0x76   :  { %3773 = vmatmul.mubr.msk.bf16.gmra.mxu0 %vm963_vm1, %v4053_v54  ;;  %3901 = vmatmul.mubr.msk.bf16.gmra.mxu1 %vm963_vm1, %v4054_v55  ;;  %v4111_v54 = vld [vmem:[%s5238_s0 + $0x1a0] sm:$0xff]  }
  0x77   :  { %3776 = vmatprep.mubr.msk.bf16.mxu0 %vm963_vm1, %v4055_v56  ;;  %3904 = vmatprep.mubr.msk.bf16.mxu1 %vm963_vm1, %v4056_v57  ;;  %v4112_v55 = vld [vmem:[%s5238_s0 + $0x3a0] sm:$0xff]  }
  0x7e   :  { %3777 = vmatmul.mubr.msk.bf16.gmra.mxu0 %vm963_vm1, %v4057_v58  ;;  %3905 = vmatmul.mubr.msk.bf16.gmra.mxu1 %vm963_vm1, %v4058_v59 }
  0x7f   :  { %3780 = vmatprep.mubr.msk.bf16.mxu0 %vm963_vm1, %v4059_v60  ;;  %3908 = vmatprep.mubr.msk.bf16.mxu1 %vm963_vm1, %v4060_v61 }
  0x86   :  { %3781 = vmatmul.mubr.msk.bf16.gmra.mxu0 %vm963_vm1, %v4061_v62  ;;  %3909 = vmatmul.mubr.msk.bf16.gmra.mxu1 %vm963_vm1, %v4062_v63 }
  0x87   :  { %3784 = vmatprep.mubr.msk.bf16.mxu0 %vm963_vm1, %v4063_v0  ;;  %3912 = vmatprep.mubr.msk.bf16.mxu1 %vm963_vm1, %v4064_v1  ;;  %v4113_v0 = vld [vmem:[%s5238_s0 + $0x1a8] sm:$0xff]  }
  0x88   :  { %v4114_v1 = vld [vmem:[%s5238_s0 + $0x3a8] sm:$0xff]  }
  0x8e   :  { %3785 = vmatmul.mubr.msk.bf16.gmra.mxu0 %vm963_vm1, %v4065_v2  ;;  %3913 = vmatmul.mubr.msk.bf16.gmra.mxu1 %vm963_vm1, %v4066_v3  ;;  %v4115_v2 = vld [vmem:[%s5238_s0 + $0x1b0] sm:$0xff]  }
  0x8f   :  { %3788 = vmatprep.mubr.msk.bf16.mxu0 %vm963_vm1, %v4067_v4  ;;  %3916 = vmatprep.mubr.msk.bf16.mxu1 %vm963_vm1, %v4068_v5  ;;  %v4116_v3 = vld [vmem:[%s5238_s0 + $0x3b0] sm:$0xff]  }
  0x96   :  { %3789 = vmatmul.mubr.msk.bf16.gmra.mxu0 %vm963_vm1, %v4069_v6  ;;  %3917 = vmatmul.mubr.msk.bf16.gmra.mxu1 %vm963_vm1, %v4070_v7 }
  0x97   :  { %3792 = vmatprep.mubr.msk.bf16.mxu0 %vm963_vm1, %v4071_v8  ;;  %3920 = vmatprep.mubr.msk.bf16.mxu1 %vm963_vm1, %v4072_v9 }
  0x9e   :  { %3793 = vmatmul.mubr.msk.bf16.gmra.mxu0 %vm963_vm1, %v4073_v10  ;;  %3921 = vmatmul.mubr.msk.bf16.gmra.mxu1 %vm963_vm1, %v4074_v11 }
  0x9f   :  { %3796 = vmatprep.mubr.msk.bf16.mxu0 %vm963_vm1, %v4075_v12  ;;  %3924 = vmatprep.mubr.msk.bf16.mxu1 %vm963_vm1, %v4076_v13  ;;  %v4117_v12 = vld [vmem:[%s5238_s0 + $0x1b8] sm:$0xff]  }
  0xa0   :  { %v4118_v13 = vld [vmem:[%s5238_s0 + $0x3b8] sm:$0xff]  }
  0xa6   :  { %3797 = vmatmul.mubr.msk.bf16.gmra.mxu0 %vm963_vm1, %v4077_v14  ;;  %3925 = vmatmul.mubr.msk.bf16.gmra.mxu1 %vm963_vm1, %v4078_v15  ;;  %v4119_v14 = vld [vmem:[%s5238_s0 + $0x1c0] sm:$0xff]  }
  0xa7   :  { %3800 = vmatprep.mubr.msk.bf16.mxu0 %vm963_vm1, %v4079_v16  ;;  %3928 = vmatprep.mubr.msk.bf16.mxu1 %vm963_vm1, %v4080_v17  ;;  %v4120_v15 = vld [vmem:[%s5238_s0 + $0x3c0] sm:$0xff]  }
  0xae   :  { %3801 = vmatmul.mubr.msk.bf16.gmra.mxu0 %vm963_vm1, %v4081_v18  ;;  %3929 = vmatmul.mubr.msk.bf16.gmra.mxu1 %vm963_vm1, %v4082_v19 }
  0xaf   :  { %3804 = vmatprep.mubr.msk.bf16.mxu0 %vm963_vm1, %v4083_v20  ;;  %3932 = vmatprep.mubr.msk.bf16.mxu1 %vm963_vm1, %v4084_v21 }
  0xb6   :  { %3805 = vmatmul.mubr.msk.bf16.gmra.mxu0 %vm963_vm1, %v4085_v22  ;;  %3933 = vmatmul.mubr.msk.bf16.gmra.mxu1 %vm963_vm1, %v4086_v23 }
  0xb7   :  { %3808 = vmatprep.mubr.msk.bf16.mxu0 %vm963_vm1, %v4087_v24  ;;  %3936 = vmatprep.mubr.msk.bf16.mxu1 %vm963_vm1, %v4088_v25  ;;  %v4121_v24 = vld [vmem:[%s5238_s0 + $0x1c8] sm:$0xff]  }
  0xb8   :  { %v4122_v25 = vld [vmem:[%s5238_s0 + $0x3c8] sm:$0xff]  }
  0xbe   :  { %3809 = vmatmul.mubr.msk.bf16.gmra.mxu0 %vm963_vm1, %v4089_v26  ;;  %3937 = vmatmul.mubr.msk.bf16.gmra.mxu1 %vm963_vm1, %v4090_v27  ;;  %v4123_v26 = vld [vmem:[%s5238_s0 + $0x1d0] sm:$0xff]  }
  0xbf   :  { %3812 = vmatprep.mubr.msk.bf16.mxu0 %vm963_vm1, %v4091_v28  ;;  %3940 = vmatprep.mubr.msk.bf16.mxu1 %vm963_vm1, %v4092_v29  ;;  %v4124_v27 = vld [vmem:[%s5238_s0 + $0x3d0] sm:$0xff]  }
  0xc6   :  { %3813 = vmatmul.mubr.msk.bf16.gmra.mxu0 %vm963_vm1, %v4093_v30  ;;  %3941 = vmatmul.mubr.msk.bf16.gmra.mxu1 %vm963_vm1, %v4094_v31 }
  0xc7   :  { %3816 = vmatprep.mubr.msk.bf16.mxu0 %vm963_vm1, %v4095_v32  ;;  %3944 = vmatprep.mubr.msk.bf16.mxu1 %vm963_vm1, %v4096_v33 }
  0xce   :  { %3817 = vmatmul.mubr.msk.bf16.gmra.mxu0 %vm963_vm1, %v4097_v34  ;;  %3945 = vmatmul.mubr.msk.bf16.gmra.mxu1 %vm963_vm1, %v4098_v35 }
  0xcf   :  { %3820 = vmatprep.mubr.msk.bf16.mxu0 %vm963_vm1, %v4099_v36  ;;  %3948 = vmatprep.mubr.msk.bf16.mxu1 %vm963_vm1, %v4100_v37  ;;  %v4125_v36 = vld [vmem:[%s5238_s0 + $0x1d8] sm:$0xff]  }
  0xd0   :  { %v4126_v37 = vld [vmem:[%s5238_s0 + $0x3d8] sm:$0xff]  }
  0xd6   :  { %3821 = vmatmul.mubr.msk.bf16.gmra.mxu0 %vm963_vm1, %v4101_v38  ;;  %3949 = vmatmul.mubr.msk.bf16.gmra.mxu1 %vm963_vm1, %v4102_v39  ;;  %v4127_v38 = vld [vmem:[%s5238_s0 + $0x1e0] sm:$0xff]  }
  0xd7   :  { %3824 = vmatprep.mubr.msk.bf16.mxu0 %vm963_vm1, %v4103_v40  ;;  %3952 = vmatprep.mubr.msk.bf16.mxu1 %vm963_vm1, %v4104_v41  ;;  %v4128_v39 = vld [vmem:[%s5238_s0 + $0x3e0] sm:$0xff]  }
  0xde   :  { %v4580_v46 = vpop.f32.mrf.mxu0  ;;  %3825 = vmatmul.mubr.msk.bf16.gmra.mxu0 %vm963_vm1, %v4105_v42  ;;  %v4583_v47 = vpop.f32.mrf.mxu1  ;;  %3953 = vmatmul.mubr.msk.bf16.gmra.mxu1 %vm963_vm1, %v4106_v43 }
  0xdf   :  { %3828 = vmatprep.mubr.msk.bf16.mxu0 %vm963_vm1, %v4107_v44  ;;  %3956 = vmatprep.mubr.msk.bf16.mxu1 %vm963_vm1, %v4108_v45 }
  0xe0   :  { %v4588_v48 = vpop.f32.mrf.mxu0  ;;  %v4590_v49 = vpop.f32.mrf.mxu1 }
  0xe2   :  { %v4592_v50 = vpop.f32.mrf.mxu0  ;;  %v4594_v51 = vpop.f32.mrf.mxu1 }
  0xe4   :  { %v4608_v56 = vpop.f32.mrf.mxu0  ;;  %v4610_v57 = vpop.f32.mrf.mxu1 }
  0xe6   :  { %v4612_v58 = vpop.f32.mrf.mxu0  ;;  %3829 = vmatmul.mubr.msk.bf16.gmra.mxu0 %vm963_vm1, %v4109_v52  ;;  %v4615_v59 = vpop.f32.mrf.mxu1  ;;  %3957 = vmatmul.mubr.msk.bf16.gmra.mxu1 %vm963_vm1, %v4110_v53 }
  0xe7   :  { %3832 = vmatprep.mubr.msk.bf16.mxu0 %vm963_vm1, %v4111_v54  ;;  %3960 = vmatprep.mubr.msk.bf16.mxu1 %vm963_vm1, %v4112_v55  ;;  %v4129_v54 = vld [vmem:[%s5238_s0 + $0x1e8] sm:$0xff]  }
  0xe8   :  { %v4620_v60 = vpop.f32.mrf.mxu0  ;;  %v4622_v61 = vpop.f32.mrf.mxu1  ;;  %v4130_v55 = vld [vmem:[%s5238_s0 + $0x3e8] sm:$0xff]  }
  0xea   :  { %v4624_v62 = vpop.f32.mrf.mxu0  ;;  %v4626_v63 = vpop.f32.mrf.mxu1 }
  0xec   :  { %v4640_v4 = vpop.f32.mrf.mxu0  ;;  %v4642_v5 = vpop.f32.mrf.mxu1 }
  0xee   :  { %v4644_v6 = vpop.f32.mrf.mxu0  ;;  %3833 = vmatmul.mubr.msk.bf16.gmra.mxu0 %vm963_vm1, %v4113_v0  ;;  %v4647_v7 = vpop.f32.mrf.mxu1  ;;  %3961 = vmatmul.mubr.msk.bf16.gmra.mxu1 %vm963_vm1, %v4114_v1  ;;  %v4131_v0 = vld [vmem:[%s5238_s0 + $0x1f0] sm:$0xff]  }
  0xef   :  { %3836 = vmatprep.mubr.msk.bf16.mxu0 %vm963_vm1, %v4115_v2  ;;  %3964 = vmatprep.mubr.msk.bf16.mxu1 %vm963_vm1, %v4116_v3  ;;  %v4132_v1 = vld [vmem:[%s5238_s0 + $0x3f0] sm:$0xff]  }
  0xf0   :  { %v4652_v8 = vpop.f32.mrf.mxu0  ;;  %v4654_v9 = vpop.f32.mrf.mxu1 }
  0xf2   :  { %v4656_v10 = vpop.f32.mrf.mxu0  ;;  %v4658_v11 = vpop.f32.mrf.mxu1 }
  0xf4   :  { %v4672_v16 = vpop.f32.mrf.mxu0  ;;  %v4674_v17 = vpop.f32.mrf.mxu1 }
  0xf6   :  { %v4676_v18 = vpop.f32.mrf.mxu0  ;;  %3837 = vmatmul.mubr.msk.bf16.gmra.mxu0 %vm963_vm1, %v4117_v12  ;;  %v4679_v19 = vpop.f32.mrf.mxu1  ;;  %3965 = vmatmul.mubr.msk.bf16.gmra.mxu1 %vm963_vm1, %v4118_v13 }
  0xf7   :  { %3840 = vmatprep.mubr.msk.bf16.mxu0 %vm963_vm1, %v4119_v14  ;;  %3968 = vmatprep.mubr.msk.bf16.mxu1 %vm963_vm1, %v4120_v15 }
  0xf8   :  { %v4684_v20 = vpop.f32.mrf.mxu0  ;;  %v4686_v21 = vpop.f32.mrf.mxu1 }
  0xfa   :  { %v4688_v22 = vpop.f32.mrf.mxu0  ;;  %v4690_v23 = vpop.f32.mrf.mxu1 }
  0xfc   :  { %v4704_v28 = vpop.f32.mrf.mxu0  ;;  %v4706_v29 = vpop.f32.mrf.mxu1 }
  0xfe   :  { %v4708_v30 = vpop.f32.mrf.mxu0  ;;  %3841 = vmatmul.mubr.msk.bf16.gmra.mxu0 %vm963_vm1, %v4121_v24  ;;  %v4711_v31 = vpop.f32.mrf.mxu1  ;;  %3969 = vmatmul.mubr.msk.bf16.gmra.mxu1 %vm963_vm1, %v4122_v25 }
  0xff   :  { %3844 = vmatprep.mubr.msk.bf16.mxu0 %vm963_vm1, %v4123_v26  ;;  %3972 = vmatprep.mubr.msk.bf16.mxu1 %vm963_vm1, %v4124_v27  ;;  %v4133_v26 = vld [vmem:[%s5238_s0 + $0x1f8] sm:$0xff]  }
 0x100   :  { %v4716_v32 = vpop.f32.mrf.mxu0  ;;  %v4718_v33 = vpop.f32.mrf.mxu1  ;;  %v4134_v27 = vld [vmem:[%s5238_s0 + $0x3f8] sm:$0xff]  }
 0x102   :  { %v4720_v34 = vpop.f32.mrf.mxu0  ;;  %v4722_v35 = vpop.f32.mrf.mxu1 }
 0x104   :  { %v4736_v40 = vpop.f32.mrf.mxu0  ;;  %v4738_v41 = vpop.f32.mrf.mxu1 }
 0x106   :  { %v4740_v42 = vpop.f32.mrf.mxu0  ;;  %3845 = vmatmul.mubr.msk.bf16.gmra.mxu0 %vm963_vm1, %v4125_v36  ;;  %v4743_v43 = vpop.f32.mrf.mxu1  ;;  %3973 = vmatmul.mubr.msk.bf16.gmra.mxu1 %vm963_vm1, %v4126_v37 }
 0x107   :  { %3848 = vmatprep.mubr.msk.bf16.mxu0 %vm963_vm1, %v4127_v38  ;;  %3976 = vmatprep.mubr.msk.bf16.mxu1 %vm963_vm1, %v4128_v39 }
 0x108   :  { %v4748_v44 = vpop.f32.mrf.mxu0  ;;  %v4750_v45 = vpop.f32.mrf.mxu1 }
 0x10a   :  { %v4752_v52 = vpop.f32.mrf.mxu0  ;;  %v4754_v53 = vpop.f32.mrf.mxu1 }
 0x10c   :  { %v4768_v2 = vpop.f32.mrf.mxu0  ;;  %v4770_v3 = vpop.f32.mrf.mxu1 }
 0x10e   :  { %v4772_v12 = vpop.f32.mrf.mxu0  ;;  %3849 = vmatmul.mubr.msk.bf16.gmra.mxu0 %vm963_vm1, %v4129_v54  ;;  %v4775_v13 = vpop.f32.mrf.mxu1  ;;  %3977 = vmatmul.mubr.msk.bf16.gmra.mxu1 %vm963_vm1, %v4130_v55 }
 0x10f   :  { %5241 = vst [vmem:[#allocation2_spill] sm:$0xff] %v4772_v12  ;;  %5242 = vst [vmem:[#allocation3_spill] sm:$0xff] %v4775_v13  ;;  %3852 = vmatprep.mubr.msk.bf16.mxu0 %vm963_vm1, %v4131_v0  ;;  %3980 = vmatprep.mubr.msk.bf16.mxu1 %vm963_vm1, %v4132_v1 }
 0x110   :  { %v4780_v14 = vpop.f32.mrf.mxu0  ;;  %v4782_v15 = vpop.f32.mrf.mxu1 }
 0x111   :  { %5243 = vst [vmem:[#allocation4_spill] sm:$0xff] %v4780_v14  ;;  %5244 = vst [vmem:[#allocation5_spill] sm:$0xff] %v4782_v15 }
 0x112   :  { %v4784_v24 = vpop.f32.mrf.mxu0  ;;  %v4786_v25 = vpop.f32.mrf.mxu1 }
 0x113   :  { %5245 = vst [vmem:[#allocation6_spill] sm:$0xff] %v4784_v24  ;;  %5246 = vst [vmem:[#allocation7_spill] sm:$0xff] %v4786_v25 }
 0x114   :  { %v4794_v36 = vpop.f32.mrf.mxu0  ;;  %v4796_v37 = vpop.f32.mrf.mxu1 }
 0x115   :  { %5247 = vst [vmem:[#allocation8_spill] sm:$0xff] %v4794_v36  ;;  %5248 = vst [vmem:[#allocation9_spill] sm:$0xff] %v4796_v37 }
 0x116   :  { %v4798_v38 = vpop.f32.mrf.mxu0  ;;  %3853 = vmatmul.mubr.msk.bf16.gmra.mxu0 %vm963_vm1, %v4133_v26  ;;  %v4801_v39 = vpop.f32.mrf.mxu1  ;;  %3981 = vmatmul.mubr.msk.bf16.gmra.mxu1 %vm963_vm1, %v4134_v27 }
 0x117   :  { %5249 = vst [vmem:[#allocation10_spill] sm:$0xff] %v4798_v38  ;;  %5250 = vst [vmem:[#allocation11_spill] sm:$0xff] %v4801_v39 }
 0x118   :  { %v4804_v54 = vpop.f32.mrf.mxu0  ;;  %v4806_v55 = vpop.f32.mrf.mxu1 }
 0x119   :  { %5251 = vst [vmem:[#allocation12_spill] sm:$0xff] %v4804_v54  ;;  %5252 = vst [vmem:[#allocation13_spill] sm:$0xff] %v4806_v55 }
 0x11a   :  { %v4808_v0 = vpop.f32.mrf.mxu0  ;;  %v4810_v1 = vpop.f32.mrf.mxu1 }
 0x11b   :  { %5253 = vst [vmem:[#allocation14_spill] sm:$0xff] %v4808_v0  ;;  %5254 = vst [vmem:[#allocation15_spill] sm:$0xff] %v4810_v1 }
 0x11c   :  { %v4812_v25 = vpop.f32.mrf.mxu0  ;;  %v4814_v36 = vpop.f32.mrf.mxu1 }
 0x11d   :  { %5255 = vst [vmem:[#allocation16_spill] sm:$0xff] %v4812_v25  ;;  %5256 = vst [vmem:[#allocation17_spill] sm:$0xff] %v4814_v36 }
 0x11e   :  { %v4816_v37 = vpop.f32.mrf.mxu0  ;;  %v4818_v38 = vpop.f32.mrf.mxu1 }
 0x11f   :  { %5257 = vst [vmem:[#allocation18_spill] sm:$0xff] %v4816_v37  ;;  %5258 = vst [vmem:[#allocation19_spill] sm:$0xff] %v4818_v38 }
 0x120   :  { %v4820_v26 = vpop.f32.mrf.mxu0  ;;  %v4822_v39 = vpop.f32.mrf.mxu1 }
 0x121   :  { %5259 = vst [vmem:[#allocation20_spill] sm:$0xff] %v4820_v26  ;;  %5260 = vst [vmem:[#allocation21_spill] sm:$0xff] %v4822_v39 }
 0x122   :  { %v4824_v27 = vpop.f32.mrf.mxu0  ;;  %v4826_v54 = vpop.f32.mrf.mxu1 }
 0x123   :  { %5261 = vst [vmem:[#allocation22_spill] sm:$0xff] %v4824_v27  ;;  %5262 = vst [vmem:[#allocation23_spill] sm:$0xff] %v4826_v54 }
 0x124   :  { %v4828_v55 = vpop.f32.mrf.mxu0  ;;  %v4830_v0 = vpop.f32.mrf.mxu1 }
 0x125   :  { %5263 = vst [vmem:[#allocation24_spill] sm:$0xff] %v4828_v55  ;;  %5264 = vst [vmem:[#allocation25_spill] sm:$0xff] %v4830_v0 }
 0x126   :  { %v4832_v1 = vpop.f32.mrf.mxu0  ;;  %v4834_v25 = vpop.f32.mrf.mxu1 }
 0x127   :  { %5265 = vst [vmem:[#allocation26_spill] sm:$0xff] %v4832_v1  ;;  %5266 = vst [vmem:[#allocation27_spill] sm:$0xff] %v4834_v25 }
 0x128   :  { %v4836_v36 = vpop.f32.mrf.mxu0  ;;  %v4838_v37 = vpop.f32.mrf.mxu1 }
 0x129   :  { %5267 = vst [vmem:[#allocation28_spill] sm:$0xff] %v4836_v36  ;;  %5268 = vst [vmem:[#allocation29_spill] sm:$0xff] %v4838_v37 }
 0x12a   :  { %v4840_v38 = vpop.f32.mrf.mxu0  ;;  %v4842_v26 = vpop.f32.mrf.mxu1 }
 0x12b   :  { %5269 = vst [vmem:[#allocation30_spill] sm:$0xff] %v4840_v38  ;;  %5270 = vst [vmem:[#allocation31_spill] sm:$0xff] %v4842_v26 }
 0x12c   :  { %v4844_v39 = vpop.f32.mrf.mxu0  ;;  %v4846_v27 = vpop.f32.mrf.mxu1 }
 0x12d   :  { %5271 = vst [vmem:[#allocation32_spill] sm:$0xff] %v4844_v39  ;;  %5272 = vst [vmem:[#allocation33_spill] sm:$0xff] %v4846_v27 }
 0x12e   :  { %v4848_v54 = vpop.f32.mrf.mxu0  ;;  %v4850_v55 = vpop.f32.mrf.mxu1 }
 0x12f   :  { %5273 = vst [vmem:[#allocation34_spill] sm:$0xff] %v4848_v54  ;;  %5274 = vst [vmem:[#allocation35_spill] sm:$0xff] %v4850_v55 }
 0x130   :  { %v4852_v0 = vpop.f32.mrf.mxu0  ;;  %v4854_v1 = vpop.f32.mrf.mxu1 }
 0x131   :  { %5275 = vst [vmem:[#allocation36_spill] sm:$0xff] %v4852_v0  ;;  %5276 = vst [vmem:[#allocation37_spill] sm:$0xff] %v4854_v1 }
 0x132   :  { %v4856_v25 = vpop.f32.mrf.mxu0  ;;  %v4858_v36 = vpop.f32.mrf.mxu1 }
 0x133   :  { %5277 = vst [vmem:[#allocation38_spill] sm:$0xff] %v4856_v25  ;;  %5278 = vst [vmem:[#allocation39_spill] sm:$0xff] %v4858_v36 }
 0x134   :  { %v4860_v37 = vpop.f32.mrf.mxu0  ;;  %v4862_v38 = vpop.f32.mrf.mxu1 }
 0x135   :  { %5279 = vst [vmem:[#allocation40_spill] sm:$0xff] %v4860_v37  ;;  %5280 = vst [vmem:[#allocation41_spill] sm:$0xff] %v4862_v38 }
 0x136   :  { %v4864_v26 = vpop.f32.mrf.mxu0  ;;  %v4866_v39 = vpop.f32.mrf.mxu1 }
 0x137   :  { %5281 = vst [vmem:[#allocation42_spill] sm:$0xff] %v4864_v26  ;;  %5282 = vst [vmem:[#allocation43_spill] sm:$0xff] %v4866_v39 }
 0x138   :  { %v4868_v27 = vpop.f32.mrf.mxu0  ;;  %v4870_v54 = vpop.f32.mrf.mxu1 }
 0x139   :  { %5283 = vst [vmem:[#allocation44_spill] sm:$0xff] %v4868_v27  ;;  %5284 = vst [vmem:[#allocation45_spill] sm:$0xff] %v4870_v54 }
 0x13a   :  { %v4872_v55 = vpop.f32.mrf.mxu0  ;;  %v4874_v0 = vpop.f32.mrf.mxu1 }
 0x13b   :  { %5285 = vst [vmem:[#allocation46_spill] sm:$0xff] %v4872_v55  ;;  %5286 = vst [vmem:[#allocation47_spill] sm:$0xff] %v4874_v0 }
 0x13c   :  { %v4876_v1 = vpop.f32.mrf.mxu0  ;;  %v4878_v25 = vpop.f32.mrf.mxu1 }
 0x13d   :  { %5287 = vst [vmem:[#allocation48_spill] sm:$0xff] %v4876_v1  ;;  %5288 = vst [vmem:[#allocation49_spill] sm:$0xff] %v4878_v25 }
 0x13e   :  { %v4880_v36 = vpop.f32.mrf.mxu0  ;;  %v4882_v37 = vpop.f32.mrf.mxu1 }
 0x13f   :  { %5289 = vst [vmem:[#allocation50_spill] sm:$0xff] %v4880_v36  ;;  %5290 = vst [vmem:[#allocation51_spill] sm:$0xff] %v4882_v37 }
 0x140   :  { %v4884_v38 = vpop.f32.mrf.mxu0  ;;  %v4886_v26 = vpop.f32.mrf.mxu1 }
 0x141   :  { %5291 = vst [vmem:[#allocation52_spill] sm:$0xff] %v4884_v38  ;;  %5292 = vst [vmem:[#allocation53_spill] sm:$0xff] %v4886_v26 }
 0x142   :  { %v4888_v39 = vpop.f32.mrf.mxu0  ;;  %v4890_v27 = vpop.f32.mrf.mxu1 }
 0x143   :  { %5293 = vst [vmem:[#allocation54_spill] sm:$0xff] %v4888_v39  ;;  %5294 = vst [vmem:[#allocation55_spill] sm:$0xff] %v4890_v27 }
 0x144   :  { %v4892_v54 = vpop.f32.mrf.mxu0  ;;  %v4894_v55 = vpop.f32.mrf.mxu1 }
 0x145   :  { %5295 = vst [vmem:[#allocation56_spill] sm:$0xff] %v4892_v54  ;;  %5296 = vst [vmem:[#allocation57_spill] sm:$0xff] %v4894_v55 }
 0x146   :  { %v4896_v0 = vpop.f32.mrf.mxu0  ;;  %v4898_v1 = vpop.f32.mrf.mxu1 }
 0x147   :  { %5297 = vst [vmem:[#allocation58_spill] sm:$0xff] %v4896_v0  ;;  %5298 = vst [vmem:[#allocation59_spill] sm:$0xff] %v4898_v1 }
 0x148   :  { %v4900_v25 = vpop.f32.mrf.mxu0  ;;  %v4902_v36 = vpop.f32.mrf.mxu1 }
 0x149   :  { %5299 = vst [vmem:[#allocation60_spill] sm:$0xff] %v4900_v25  ;;  %5300 = vst [vmem:[#allocation61_spill] sm:$0xff] %v4902_v36 }
 0x14a   :  { %v4904_v37 = vpop.f32.mrf.mxu0  ;;  %v4906_v38 = vpop.f32.mrf.mxu1 }
 0x14b   :  { %5301 = vst [vmem:[#allocation62_spill] sm:$0xff] %v4904_v37  ;;  %5302 = vst [vmem:[#allocation63_spill] sm:$0xff] %v4906_v38 }
 0x14c   :  { %v4908_v26 = vpop.f32.mrf.mxu0  ;;  %v4910_v39 = vpop.f32.mrf.mxu1 }
 0x14d   :  { %5303 = vst [vmem:[#allocation64_spill] sm:$0xff] %v4908_v26  ;;  %5304 = vst [vmem:[#allocation65_spill] sm:$0xff] %v4910_v39 }
 0x14e   :  { %v4912_v27 = vpop.f32.mrf.mxu0  ;;  %v4914_v54 = vpop.f32.mrf.mxu1 }
 0x14f   :  { %5305 = vst [vmem:[#allocation66_spill] sm:$0xff] %v4912_v27  ;;  %5306 = vst [vmem:[#allocation67_spill] sm:$0xff] %v4914_v54 }
 0x150   :  { %v4916_v55 = vpop.f32.mrf.mxu0  ;;  %v4918_v0 = vpop.f32.mrf.mxu1 }
 0x151   :  { %5307 = vst [vmem:[#allocation68_spill] sm:$0xff] %v4916_v55  ;;  %5308 = vst [vmem:[#allocation69_spill] sm:$0xff] %v4918_v0 }
 0x152   :  { %v4920_v1 = vpop.f32.mrf.mxu0  ;;  %v4922_v25 = vpop.f32.mrf.mxu1 }
 0x153   :  { %5309 = vst [vmem:[#allocation70_spill] sm:$0xff] %v4920_v1  ;;  %5310 = vst [vmem:[#allocation71_spill] sm:$0xff] %v4922_v25 }
 0x154   :  { %v4924_v36 = vpop.f32.mrf.mxu0  ;;  %v4926_v37 = vpop.f32.mrf.mxu1 }
 0x155   :  { %5311 = vst [vmem:[#allocation72_spill] sm:$0xff] %v4924_v36  ;;  %5312 = vst [vmem:[#allocation73_spill] sm:$0xff] %v4926_v37 }
 0x156   :  { %v4928_v38 = vpop.f32.mrf.mxu0  ;;  %v4930_v26 = vpop.f32.mrf.mxu1 }
 0x157   :  { %5313 = vst [vmem:[#allocation74_spill] sm:$0xff] %v4928_v38  ;;  %5314 = vst [vmem:[#allocation75_spill] sm:$0xff] %v4930_v26 }
 0x158   :  { %v4932_v39 = vpop.f32.mrf.mxu0  ;;  %v4934_v27 = vpop.f32.mrf.mxu1 }
 0x159   :  { %5315 = vst [vmem:[#allocation76_spill] sm:$0xff] %v4932_v39  ;;  %5316 = vst [vmem:[#allocation77_spill] sm:$0xff] %v4934_v27 }
 0x15a   :  { %v4936_v54 = vpop.f32.mrf.mxu0  ;;  %v4938_v55 = vpop.f32.mrf.mxu1 }
 0x15b   :  { %5317 = vst [vmem:[#allocation78_spill] sm:$0xff] %v4936_v54  ;;  %5318 = vst [vmem:[#allocation79_spill] sm:$0xff] %v4938_v55 }
 0x15c   :  { %v4940_v0 = vpop.f32.mrf.mxu0  ;;  %v4942_v1 = vpop.f32.mrf.mxu1 }
 0x15d   :  { %5319 = vst [vmem:[#allocation80_spill] sm:$0xff] %v4940_v0  ;;  %5320 = vst [vmem:[#allocation81_spill] sm:$0xff] %v4942_v1  ;;  %v4951_v0 = vld [vmem:[%s5239_s2] ss:$0 sm:$0xff] }
 0x15e   :  { %v3794_v25 = vpop.f32.mrf.mxu0  ;;  %v3922_v36 = vpop.f32.mrf.mxu1 }
 0x15f   :  { %v2411_v37 = vmax.f32 %v4580_v46, %v3794_v25  ;;  %v2475_v38 = vmax.f32 %v4583_v47, %v3922_v36 }
 0x160   :  { %v1642_v24 = vpop.f32.mrf.mxu0  ;;  %v2154_v26 = vpop.f32.mrf.mxu1 }
 0x161   :  { %v2409_v39 = vmax.f32 %v4588_v48, %v1642_v24  ;;  %v2473_v27 = vmax.f32 %v4590_v49, %v2154_v26  ;;  %v2539_v15 = vmax.f32 %v2411_v37, %v2475_v38 }
 0x162   :  { %v3795_v54 = vpop.f32.mrf.mxu0  ;;  %v3923_v14 = vpop.f32.mrf.mxu1 }
 0x163   :  { %v2412_v1 = vmax.f32 %v4592_v50, %v3795_v54  ;;  %v2476_v46 = vmax.f32 %v4594_v51, %v3923_v14  ;;  %v2537_v36 = vmax.f32 %v2409_v39, %v2473_v27  ;;  %v2610_v24 = vadd.f32 %v4951_v0, %v2539_v15 }
 0x164   :  { %v1645_v25 = vpop.f32.mrf.mxu0  ;;  %v2157_v47 = vpop.f32.mrf.mxu1 }
 0x165   :  { %v2540_v55 = vmax.f32 %v2412_v1, %v2476_v46  ;;  %v2410_v48 = vmax.f32 %v4608_v56, %v1645_v25  ;;  %v2474_v49 = vmax.f32 %v4610_v57, %v2157_v47  ;;  %v2608_v39 = vadd.f32 %v4951_v0, %v2537_v36 }
 0x166   :  { %v3798_v37 = vpop.f32.mrf.mxu0  ;;  %v3926_v38 = vpop.f32.mrf.mxu1 }
 0x167   :  { %v2611_v26 = vadd.f32 %v4951_v0, %v2540_v55  ;;  %v2538_v13 = vmax.f32 %v2410_v48, %v2474_v49  ;;  %v2415_v12 = vmax.f32 %v4612_v58, %v3798_v37  ;;  %v2479_v50 = vmax.f32 %v4615_v59, %v3926_v38 }
 0x168   :  { %v1658_v51 = vpop.f32.mrf.mxu0  ;;  %v2170_v14 = vpop.f32.mrf.mxu1 }
 0x169   :  { %v3396_v54 = vpack.c.bf16 %v2611_v26, %v2610_v24  ;;  %v2609_v56 = vadd.f32 %v4951_v0, %v2538_v13  ;;  %v2413_v57 = vmax.f32 %v4620_v60, %v1658_v51  ;;  %v2543_v1 = vmax.f32 %v2415_v12, %v2479_v50 }
 0x16a   :  { %v2477_v15 = vmax.f32 %v4622_v61, %v2170_v14  ;;  %v3799_v27 = vpop.f32.mrf.mxu0  ;;  %v3927_v46 = vpop.f32.mrf.mxu1 }
 0x16b   :  { %3548 = vst [vmem:[%s5240_s3 + $0x8] sm:$0xff] %v3396_v54   ;;  %v3391_v58 = vpack.c.bf16 %v2609_v56, %v2608_v39  ;;  %v2416_v59 = vmax.f32 %v4624_v62, %v3799_v27  ;;  %v2480_v55 = vmax.f32 %v4626_v63, %v3927_v46  ;;  %v2614_v36 = vadd.f32 %v4951_v0, %v2543_v1 }
 0x16c   :  { %v1661_v25 = vpop.f32.mrf.mxu0  ;;  %v2173_v47 = vpop.f32.mrf.mxu1  ;;  %v2541_v60 = vmax.f32 %v2413_v57, %v2477_v15 }
 0x16d   :  { %3392 = vst [vmem:[%s5240_s3] sm:$0xff] %v3391_v58   ;;  %v2544_v12 = vmax.f32 %v2416_v59, %v2480_v55  ;;  %v2414_v61 = vmax.f32 %v4640_v4, %v1661_v25  ;;  %v2478_v13 = vmax.f32 %v4642_v5, %v2173_v47 }
 0x16e   :  { %v3802_v48 = vpop.f32.mrf.mxu0  ;;  %v3930_v49 = vpop.f32.mrf.mxu1  ;;  %v2612_v50 = vadd.f32 %v4951_v0, %v2541_v60 }
 0x16f   :  { %v2615_v62 = vadd.f32 %v4951_v0, %v2544_v12  ;;  %v2542_v24 = vmax.f32 %v2414_v61, %v2478_v13  ;;  %v2419_v63 = vmax.f32 %v4644_v6, %v3802_v48  ;;  %v2483_v37 = vmax.f32 %v4647_v7, %v3930_v49 }
 0x170   :  { %v1674_v38 = vpop.f32.mrf.mxu0  ;;  %v2186_v26 = vpop.f32.mrf.mxu1 }
 0x171   :  { %v3406_v51 = vpack.c.bf16 %v2615_v62, %v2614_v36  ;;  %v2613_v4 = vadd.f32 %v4951_v0, %v2542_v24  ;;  %v2417_v5 = vmax.f32 %v4652_v8, %v1674_v38  ;;  %v2547_v14 = vmax.f32 %v2419_v63, %v2483_v37 }
 0x172   :  { %v2481_v39 = vmax.f32 %v4654_v9, %v2186_v26  ;;  %v3803_v54 = vpop.f32.mrf.mxu0  ;;  %v3931_v56 = vpop.f32.mrf.mxu1 }
 0x173   :  { %3550 = vst [vmem:[%s5240_s3 + $0x18] sm:$0xff] %v3406_v51   ;;  %v3401_v6 = vpack.c.bf16 %v2613_v4, %v2612_v50  ;;  %v2420_v7 = vmax.f32 %v4656_v10, %v3803_v54  ;;  %v2484_v57 = vmax.f32 %v4658_v11, %v3931_v56  ;;  %v2618_v58 = vadd.f32 %v4951_v0, %v2547_v14 }
 0x174   :  { %v1677_v1 = vpop.f32.mrf.mxu0  ;;  %v2189_v15 = vpop.f32.mrf.mxu1  ;;  %v2545_v8 = vmax.f32 %v2417_v5, %v2481_v39 }
 0x175   :  { %3549 = vst [vmem:[%s5240_s3 + $0x10] sm:$0xff] %v3401_v6   ;;  %v2548_v27 = vmax.f32 %v2420_v7, %v2484_v57  ;;  %v2418_v9 = vmax.f32 %v4672_v16, %v1677_v1  ;;  %v2482_v46 = vmax.f32 %v4674_v17, %v2189_v15 }
 0x176   :  { %v3806_v59 = vpop.f32.mrf.mxu0  ;;  %v3934_v55 = vpop.f32.mrf.mxu1  ;;  %v2616_v61 = vadd.f32 %v4951_v0, %v2545_v8 }
 0x177   :  { %v2619_v10 = vadd.f32 %v4951_v0, %v2548_v27  ;;  %v2546_v25 = vmax.f32 %v2418_v9, %v2482_v46  ;;  %v2423_v11 = vmax.f32 %v4676_v18, %v3806_v59  ;;  %v2487_v47 = vmax.f32 %v4679_v19, %v3934_v55 }
 0x178   :  { %v1690_v60 = vpop.f32.mrf.mxu0  ;;  %v2202_v12 = vpop.f32.mrf.mxu1 }
 0x179   :  { %v3416_v13 = vpack.c.bf16 %v2619_v10, %v2618_v58  ;;  %v2617_v16 = vadd.f32 %v4951_v0, %v2546_v25  ;;  %v2421_v17 = vmax.f32 %v4684_v20, %v1690_v60  ;;  %v2551_v36 = vmax.f32 %v2423_v11, %v2487_v47 }
 0x17a   :  { %v2485_v48 = vmax.f32 %v4686_v21, %v2202_v12  ;;  %v3807_v49 = vpop.f32.mrf.mxu0  ;;  %v3935_v62 = vpop.f32.mrf.mxu1 }
 0x17b   :  { %3552 = vst [vmem:[%s5240_s3 + $0x28] sm:$0xff] %v3416_v13   ;;  %v3411_v18 = vpack.c.bf16 %v2617_v16, %v2616_v61  ;;  %v2424_v19 = vmax.f32 %v4688_v22, %v3807_v49  ;;  %v2488_v24 = vmax.f32 %v4690_v23, %v3935_v62  ;;  %v2622_v50 = vadd.f32 %v4951_v0, %v2551_v36 }
 0x17c   :  { %v1693_v63 = vpop.f32.mrf.mxu0  ;;  %v2205_v37 = vpop.f32.mrf.mxu1  ;;  %v2549_v20 = vmax.f32 %v2421_v17, %v2485_v48 }
 0x17d   :  { %3551 = vst [vmem:[%s5240_s3 + $0x20] sm:$0xff] %v3411_v18   ;;  %v2552_v38 = vmax.f32 %v2424_v19, %v2488_v24  ;;  %v2422_v21 = vmax.f32 %v4704_v28, %v1693_v63  ;;  %v2486_v26 = vmax.f32 %v4706_v29, %v2205_v37 }
 0x17e   :  { %v3810_v51 = vpop.f32.mrf.mxu0  ;;  %v3938_v4 = vpop.f32.mrf.mxu1  ;;  %v2620_v56 = vadd.f32 %v4951_v0, %v2549_v20 }
 0x17f   :  { %v2623_v22 = vadd.f32 %v4951_v0, %v2552_v38  ;;  %v2550_v5 = vmax.f32 %v2422_v21, %v2486_v26  ;;  %v2427_v23 = vmax.f32 %v4708_v30, %v3810_v51  ;;  %v2491_v14 = vmax.f32 %v4711_v31, %v3938_v4  ;;  %v5322_v21 = vld [vmem:[#allocation3_spill] sm:$0xff] }
 0x180   :  { %v1706_v39 = vpop.f32.mrf.mxu0  ;;  %v2218_v54 = vpop.f32.mrf.mxu1 }
 0x181   :  { %v3426_v6 = vpack.c.bf16 %v2623_v22, %v2622_v50  ;;  %v2621_v28 = vadd.f32 %v4951_v0, %v2550_v5  ;;  %v2425_v29 = vmax.f32 %v4716_v32, %v1706_v39  ;;  %v2555_v7 = vmax.f32 %v2427_v23, %v2491_v14  ;;  %v5323_v5 = vld [vmem:[#allocation4_spill] sm:$0xff]  ;;  %v5324_v14 = vld [vmem:[#allocation5_spill] sm:$0xff] }
 0x182   :  { %v2489_v57 = vmax.f32 %v4718_v33, %v2218_v54  ;;  %v3811_v1 = vpop.f32.mrf.mxu0  ;;  %v3939_v15 = vpop.f32.mrf.mxu1 }
 0x183   :  { %3554 = vst [vmem:[%s5240_s3 + $0x38] sm:$0xff] %v3426_v6   ;;  %v3421_v30 = vpack.c.bf16 %v2621_v28, %v2620_v56  ;;  %v2428_v31 = vmax.f32 %v4720_v34, %v3811_v1  ;;  %v2492_v8 = vmax.f32 %v4722_v35, %v3939_v15  ;;  %v2626_v59 = vadd.f32 %v4951_v0, %v2555_v7  ;;  %v5325_v28 = vld [vmem:[#allocation6_spill] sm:$0xff]  ;;  %v5326_v7 = vld [vmem:[#allocation7_spill] sm:$0xff] }
 0x184   :  { %v1709_v27 = vpop.f32.mrf.mxu0  ;;  %v2221_v9 = vpop.f32.mrf.mxu1  ;;  %v2553_v32 = vmax.f32 %v2425_v29, %v2489_v57 }
 0x185   :  { %3553 = vst [vmem:[%s5240_s3 + $0x30] sm:$0xff] %v3421_v30   ;;  %v2556_v46 = vmax.f32 %v2428_v31, %v2492_v8  ;;  %v2426_v33 = vmax.f32 %v4736_v40, %v1709_v27  ;;  %v2490_v58 = vmax.f32 %v4738_v41, %v2221_v9  ;;  %v5327_v8 = vld [vmem:[#allocation8_spill] sm:$0xff]  ;;  %v5328_v9 = vld [vmem:[#allocation9_spill] sm:$0xff] }
 0x186   :  { %v3814_v55 = vpop.f32.mrf.mxu0  ;;  %v3942_v10 = vpop.f32.mrf.mxu1  ;;  %v2624_v12 = vadd.f32 %v4951_v0, %v2553_v32 }
 0x187   :  { %v2627_v34 = vadd.f32 %v4951_v0, %v2556_v46  ;;  %v2554_v25 = vmax.f32 %v2426_v33, %v2490_v58  ;;  %v2431_v35 = vmax.f32 %v4740_v42, %v3814_v55  ;;  %v2495_v11 = vmax.f32 %v4743_v43, %v3942_v10  ;;  %v5329_v10 = vld [vmem:[#allocation10_spill] sm:$0xff] }
 0x188   :  { %v1722_v47 = vpop.f32.mrf.mxu0  ;;  %v2234_v60 = vpop.f32.mrf.mxu1 }
 0x189   :  { %v3436_v61 = vpack.c.bf16 %v2627_v34, %v2626_v59  ;;  %v2625_v40 = vadd.f32 %v4951_v0, %v2554_v25  ;;  %v2429_v41 = vmax.f32 %v4748_v44, %v1722_v47  ;;  %v2559_v13 = vmax.f32 %v2431_v35, %v2495_v11  ;;  %v5330_v25 = vld [vmem:[#allocation11_spill] sm:$0xff] }
 0x18a   :  { %v2493_v16 = vmax.f32 %v4750_v45, %v2234_v60  ;;  %v3815_v17 = vpop.f32.mrf.mxu0  ;;  %v3943_v36 = vpop.f32.mrf.mxu1 }
 0x18b   :  { %3556 = vst [vmem:[%s5240_s3 + $0x48] sm:$0xff] %v3436_v61   ;;  %v3431_v42 = vpack.c.bf16 %v2625_v40, %v2624_v12  ;;  %v2432_v43 = vmax.f32 %v4752_v52, %v3815_v17  ;;  %v2496_v48 = vmax.f32 %v4754_v53, %v3943_v36  ;;  %v2630_v24 = vadd.f32 %v4951_v0, %v2559_v13  ;;  %v5321_v53 = vld [vmem:[#allocation2_spill] sm:$0xff]  ;;  %v5331_v40 = vld [vmem:[#allocation12_spill] sm:$0xff] }
 0x18c   :  { %v1725_v49 = vpop.f32.mrf.mxu0  ;;  %v2237_v62 = vpop.f32.mrf.mxu1  ;;  %v2557_v44 = vmax.f32 %v2429_v41, %v2493_v16  ;;  %v5332_v16 = vld [vmem:[#allocation13_spill] sm:$0xff] }
 0x18d   :  { %3555 = vst [vmem:[%s5240_s3 + $0x40] sm:$0xff] %v3431_v42   ;;  %v2560_v18 = vmax.f32 %v2432_v43, %v2496_v48  ;;  %v2430_v45 = vmax.f32 %v4768_v2, %v1725_v49  ;;  %v2494_v19 = vmax.f32 %v4770_v3, %v2237_v62  ;;  %v5333_v48 = vld [vmem:[#allocation14_spill] sm:$0xff]  ;;  %v5334_v62 = vld [vmem:[#allocation15_spill] sm:$0xff] }
 0x18e   :  { %v3818_v63 = vpop.f32.mrf.mxu0  ;;  %v3946_v37 = vpop.f32.mrf.mxu1  ;;  %v2628_v4 = vadd.f32 %v4951_v0, %v2557_v44 }
 0x18f   :  { %v2631_v52 = vadd.f32 %v4951_v0, %v2560_v18  ;;  %v2558_v20 = vmax.f32 %v2430_v45, %v2494_v19  ;;  %v2435_v38 = vmax.f32 %v5321_v53, %v3818_v63  ;;  %v2499_v26 = vmax.f32 %v5322_v21, %v3946_v37  ;;  %v5335_v63 = vld [vmem:[#allocation16_spill] sm:$0xff] }
 0x190   :  { %v1738_v50 = vpop.f32.mrf.mxu0  ;;  %v2250_v51 = vpop.f32.mrf.mxu1 }
 0x191   :  { %v3446_v22 = vpack.c.bf16 %v2631_v52, %v2630_v24  ;;  %v2629_v2 = vadd.f32 %v4951_v0, %v2558_v20  ;;  %v2433_v3 = vmax.f32 %v5323_v5, %v1738_v50  ;;  %v2563_v23 = vmax.f32 %v2435_v38, %v2499_v26  ;;  %v5336_v52 = vld [vmem:[#allocation17_spill] sm:$0xff] }
 0x192   :  { %v2497_v39 = vmax.f32 %v5324_v14, %v2250_v51  ;;  %v3819_v54 = vpop.f32.mrf.mxu0  ;;  %v3947_v56 = vpop.f32.mrf.mxu1  ;;  %v5337_v51 = vld [vmem:[#allocation18_spill] sm:$0xff] }
 0x193   :  { %3558 = vst [vmem:[%s5240_s3 + $0x58] sm:$0xff] %v3446_v22   ;;  %v3441_v6 = vpack.c.bf16 %v2629_v2, %v2628_v4  ;;  %v2436_v29 = vmax.f32 %v5325_v28, %v3819_v54  ;;  %v2500_v57 = vmax.f32 %v5326_v7, %v3947_v56  ;;  %v2634_v46 = vadd.f32 %v4951_v0, %v2563_v23  ;;  %v5338_v22 = vld [vmem:[#allocation19_spill] sm:$0xff]  ;;  %v5339_v54 = vld [vmem:[#allocation20_spill] sm:$0xff]  ;;  %v5340_v28 = vld [vmem:[#allocation21_spill] sm:$0xff] }
 0x194   :  { %v1741_v1 = vpop.f32.mrf.mxu0  ;;  %v2253_v15 = vpop.f32.mrf.mxu1  ;;  %v2561_v30 = vmax.f32 %v2433_v3, %v2497_v39 }
 0x195   :  { %3557 = vst [vmem:[%s5240_s3 + $0x50] sm:$0xff] %v3441_v6   ;;  %v2564_v31 = vmax.f32 %v2436_v29, %v2500_v57  ;;  %v2434_v27 = vmax.f32 %v5327_v8, %v1741_v1  ;;  %v2498_v32 = vmax.f32 %v5328_v9, %v2253_v15  ;;  %v5341_v15 = vld [vmem:[#allocation22_spill] sm:$0xff] }
 0x196   :  { %v3822_v33 = vpop.f32.mrf.mxu0  ;;  %v3950_v58 = vpop.f32.mrf.mxu1  ;;  %v2632_v60 = vadd.f32 %v4951_v0, %v2561_v30 }
 0x197   :  { %v2635_v59 = vadd.f32 %v4951_v0, %v2564_v31  ;;  %v2562_v55 = vmax.f32 %v2434_v27, %v2498_v32  ;;  %v2439_v34 = vmax.f32 %v5329_v10, %v3822_v33  ;;  %v2503_v35 = vmax.f32 %v5330_v25, %v3950_v58  ;;  %v5342_v31 = vld [vmem:[#allocation23_spill] sm:$0xff]  ;;  %v5343_v33 = vld [vmem:[#allocation24_spill] sm:$0xff] }
 0x198   :  { %v1754_v11 = vpop.f32.mrf.mxu0  ;;  %v2266_v47 = vpop.f32.mrf.mxu1 }
 0x199   :  { %v3456_v12 = vpack.c.bf16 %v2635_v59, %v2634_v46  ;;  %v2633_v61 = vadd.f32 %v4951_v0, %v2562_v55  ;;  %v2437_v41 = vmax.f32 %v5331_v40, %v1754_v11  ;;  %v2567_v13 = vmax.f32 %v2439_v34, %v2503_v35  ;;  %v5344_v59 = vld [vmem:[#allocation25_spill] sm:$0xff] }
 0x19a   :  { %v2501_v17 = vmax.f32 %v5332_v16, %v2266_v47  ;;  %v3823_v36 = vpop.f32.mrf.mxu0  ;;  %v3951_v42 = vpop.f32.mrf.mxu1  ;;  %v5345_v47 = vld [vmem:[#allocation26_spill] sm:$0xff] }
 0x19b   :  { %3560 = vst [vmem:[%s5240_s3 + $0x68] sm:$0xff] %v3456_v12   ;;  %v3451_v43 = vpack.c.bf16 %v2633_v61, %v2632_v60  ;;  %v2440_v49 = vmax.f32 %v5333_v48, %v3823_v36  ;;  %v2504_v44 = vmax.f32 %v5334_v62, %v3951_v42  ;;  %v2638_v53 = vadd.f32 %v4951_v0, %v2567_v13  ;;  %v5346_v12 = vld [vmem:[#allocation27_spill] sm:$0xff]  ;;  %v5347_v36 = vld [vmem:[#allocation28_spill] sm:$0xff]  ;;  %v5348_v48 = vld [vmem:[#allocation29_spill] sm:$0xff] }
 0x19c   :  { %v1757_v18 = vpop.f32.mrf.mxu0  ;;  %v2269_v45 = vpop.f32.mrf.mxu1  ;;  %v2565_v19 = vmax.f32 %v2437_v41, %v2501_v17 }
 0x19d   :  { %3559 = vst [vmem:[%s5240_s3 + $0x60] sm:$0xff] %v3451_v43   ;;  %v2568_v24 = vmax.f32 %v2440_v49, %v2504_v44  ;;  %v2438_v37 = vmax.f32 %v5335_v63, %v1757_v18  ;;  %v2502_v20 = vmax.f32 %v5336_v52, %v2269_v45  ;;  %v5349_v45 = vld [vmem:[#allocation30_spill] sm:$0xff] }
 0x19e   :  { %v3826_v38 = vpop.f32.mrf.mxu0  ;;  %v3954_v21 = vpop.f32.mrf.mxu1  ;;  %v2636_v23 = vadd.f32 %v4951_v0, %v2565_v19 }
 0x19f   :  { %v2639_v26 = vadd.f32 %v4951_v0, %v2568_v24  ;;  %v2566_v50 = vmax.f32 %v2438_v37, %v2502_v20  ;;  %v2443_v4 = vmax.f32 %v5337_v51, %v3826_v38  ;;  %v2507_v2 = vmax.f32 %v5338_v22, %v3954_v21  ;;  %v5350_v24 = vld [vmem:[#allocation31_spill] sm:$0xff]  ;;  %v5351_v38 = vld [vmem:[#allocation32_spill] sm:$0xff] }
 0x1a0   :  { %v1770_v5 = vpop.f32.mrf.mxu0  ;;  %v2282_v3 = vpop.f32.mrf.mxu1 }
 0x1a1   :  { %v3466_v14 = vpack.c.bf16 %v2639_v26, %v2638_v53  ;;  %v2637_v39 = vadd.f32 %v4951_v0, %v2566_v50  ;;  %v2441_v56 = vmax.f32 %v5339_v54, %v1770_v5  ;;  %v2571_v6 = vmax.f32 %v2443_v4, %v2507_v2  ;;  %v5352_v26 = vld [vmem:[#allocation33_spill] sm:$0xff] }
 0x1a2   :  { %v2505_v29 = vmax.f32 %v5340_v28, %v2282_v3  ;;  %v3827_v7 = vpop.f32.mrf.mxu0  ;;  %v3955_v57 = vpop.f32.mrf.mxu1  ;;  %v5353_v3 = vld [vmem:[#allocation34_spill] sm:$0xff] }
 0x1a3   :  { %3562 = vst [vmem:[%s5240_s3 + $0x78] sm:$0xff] %v3466_v14   ;;  %v3461_v1 = vpack.c.bf16 %v2637_v39, %v2636_v23  ;;  %v2444_v30 = vmax.f32 %v5341_v15, %v3827_v7  ;;  %v2508_v8 = vmax.f32 %v5342_v31, %v3955_v57  ;;  %v2642_v10 = vadd.f32 %v4951_v0, %v2571_v6  ;;  %v5354_v14 = vld [vmem:[#allocation35_spill] sm:$0xff]  ;;  %v5355_v7 = vld [vmem:[#allocation36_spill] sm:$0xff]  ;;  %v5356_v15 = vld [vmem:[#allocation37_spill] sm:$0xff] }
 0x1a4   :  { %v1773_v27 = vpop.f32.mrf.mxu0  ;;  %v2285_v9 = vpop.f32.mrf.mxu1  ;;  %v2569_v32 = vmax.f32 %v2441_v56, %v2505_v29 }
 0x1a5   :  { %3561 = vst [vmem:[%s5240_s3 + $0x70] sm:$0xff] %v3461_v1   ;;  %v2572_v46 = vmax.f32 %v2444_v30, %v2508_v8  ;;  %v2442_v58 = vmax.f32 %v5343_v33, %v1773_v27  ;;  %v2506_v55 = vmax.f32 %v5344_v59, %v2285_v9  ;;  %v5357_v9 = vld [vmem:[#allocation38_spill] sm:$0xff] }
 0x1a6   :  { %v3830_v34 = vpop.f32.mrf.mxu0  ;;  %v3958_v25 = vpop.f32.mrf.mxu1  ;;  %v2640_v13 = vadd.f32 %v4951_v0, %v2569_v32 }
 0x1a7   :  { %v2643_v35 = vadd.f32 %v4951_v0, %v2572_v46  ;;  %v2570_v11 = vmax.f32 %v2442_v58, %v2506_v55  ;;  %v2447_v60 = vmax.f32 %v5345_v47, %v3830_v34  ;;  %v2511_v61 = vmax.f32 %v5346_v12, %v3958_v25  ;;  %v5358_v46 = vld [vmem:[#allocation39_spill] sm:$0xff]  ;;  %v5359_v34 = vld [vmem:[#allocation40_spill] sm:$0xff] }
 0x1a8   :  { %v1786_v40 = vpop.f32.mrf.mxu0  ;;  %v2298_v41 = vpop.f32.mrf.mxu1 }
 0x1a9   :  { %v3476_v16 = vpack.c.bf16 %v2643_v35, %v2642_v10  ;;  %v2641_v17 = vadd.f32 %v4951_v0, %v2570_v11  ;;  %v2445_v42 = vmax.f32 %v5347_v36, %v1786_v40  ;;  %v2575_v43 = vmax.f32 %v2447_v60, %v2511_v61  ;;  %v5360_v35 = vld [vmem:[#allocation41_spill] sm:$0xff] }
 0x1aa   :  { %v2509_v49 = vmax.f32 %v5348_v48, %v2298_v41  ;;  %v3831_v62 = vpop.f32.mrf.mxu0  ;;  %v3959_v44 = vpop.f32.mrf.mxu1  ;;  %v5361_v41 = vld [vmem:[#allocation42_spill] sm:$0xff] }
 0x1ab   :  { %3564 = vst [vmem:[%s5240_s3 + $0x88] sm:$0xff] %v3476_v16   ;;  %v3471_v18 = vpack.c.bf16 %v2641_v17, %v2640_v13  ;;  %v2448_v19 = vmax.f32 %v5349_v45, %v3831_v62  ;;  %v2512_v63 = vmax.f32 %v5350_v24, %v3959_v44  ;;  %v2646_v51 = vadd.f32 %v4951_v0, %v2575_v43  ;;  %v5362_v16 = vld [vmem:[#allocation43_spill] sm:$0xff]  ;;  %v5363_v62 = vld [vmem:[#allocation44_spill] sm:$0xff]  ;;  %v5364_v45 = vld [vmem:[#allocation45_spill] sm:$0xff] }
 0x1ac   :  { %v1789_v37 = vpop.f32.mrf.mxu0  ;;  %v2301_v52 = vpop.f32.mrf.mxu1  ;;  %v2573_v20 = vmax.f32 %v2445_v42, %v2509_v49 }
 0x1ad   :  { %3563 = vst [vmem:[%s5240_s3 + $0x80] sm:$0xff] %v3471_v18   ;;  %v2576_v53 = vmax.f32 %v2448_v19, %v2512_v63  ;;  %v2446_v21 = vmax.f32 %v5351_v38, %v1789_v37  ;;  %v2510_v50 = vmax.f32 %v5352_v26, %v2301_v52  ;;  %v5365_v52 = vld [vmem:[#allocation46_spill] sm:$0xff] }
 0x1ae   :  { %v3834_v4 = vpop.f32.mrf.mxu0  ;;  %v3962_v22 = vpop.f32.mrf.mxu1  ;;  %v2644_v6 = vadd.f32 %v4951_v0, %v2573_v20 }
 0x1af   :  { %v2647_v2 = vadd.f32 %v4951_v0, %v2576_v53  ;;  %v2574_v5 = vmax.f32 %v2446_v21, %v2510_v50  ;;  %v2451_v23 = vmax.f32 %v5353_v3, %v3834_v4  ;;  %v2515_v39 = vmax.f32 %v5354_v14, %v3962_v22  ;;  %v5366_v53 = vld [vmem:[#allocation47_spill] sm:$0xff]  ;;  %v5367_v4 = vld [vmem:[#allocation48_spill] sm:$0xff] }
 0x1b0   :  { %v1802_v54 = vpop.f32.mrf.mxu0  ;;  %v2314_v56 = vpop.f32.mrf.mxu1 }
 0x1b1   :  { %v3486_v28 = vpack.c.bf16 %v2647_v2, %v2646_v51  ;;  %v2645_v29 = vadd.f32 %v4951_v0, %v2574_v5  ;;  %v2449_v57 = vmax.f32 %v5355_v7, %v1802_v54  ;;  %v2579_v1 = vmax.f32 %v2451_v23, %v2515_v39  ;;  %v5368_v2 = vld [vmem:[#allocation49_spill] sm:$0xff] }
 0x1b2   :  { %v2513_v30 = vmax.f32 %v5356_v15, %v2314_v56  ;;  %v3835_v31 = vpop.f32.mrf.mxu0  ;;  %v3963_v8 = vpop.f32.mrf.mxu1  ;;  %v5369_v56 = vld [vmem:[#allocation50_spill] sm:$0xff] }
 0x1b3   :  { %3566 = vst [vmem:[%s5240_s3 + $0x98] sm:$0xff] %v3486_v28   ;;  %v3481_v27 = vpack.c.bf16 %v2645_v29, %v2644_v6  ;;  %v2452_v32 = vmax.f32 %v5357_v9, %v3835_v31  ;;  %v2516_v33 = vmax.f32 %v5358_v46, %v3963_v8  ;;  %v2650_v47 = vadd.f32 %v4951_v0, %v2579_v1  ;;  %v5370_v28 = vld [vmem:[#allocation51_spill] sm:$0xff]  ;;  %v5371_v31 = vld [vmem:[#allocation52_spill] sm:$0xff]  ;;  %v5372_v9 = vld [vmem:[#allocation53_spill] sm:$0xff] }
 0x1b4   :  { %v1805_v58 = vpop.f32.mrf.mxu0  ;;  %v2317_v59 = vpop.f32.mrf.mxu1  ;;  %v2577_v55 = vmax.f32 %v2449_v57, %v2513_v30 }
 0x1b5   :  { %3565 = vst [vmem:[%s5240_s3 + $0x90] sm:$0xff] %v3481_v27   ;;  %v2580_v10 = vmax.f32 %v2452_v32, %v2516_v33  ;;  %v2450_v25 = vmax.f32 %v5359_v34, %v1805_v58  ;;  %v2514_v11 = vmax.f32 %v5360_v35, %v2317_v59  ;;  %v5373_v59 = vld [vmem:[#allocation54_spill] sm:$0xff] }
 0x1b6   :  { %v3838_v60 = vpop.f32.mrf.mxu0  ;;  %v3966_v12 = vpop.f32.mrf.mxu1  ;;  %v2648_v43 = vadd.f32 %v4951_v0, %v2577_v55 }
 0x1b7   :  { %v2651_v61 = vadd.f32 %v4951_v0, %v2580_v10  ;;  %v2578_v40 = vmax.f32 %v2450_v25, %v2514_v11  ;;  %v2455_v13 = vmax.f32 %v5361_v41, %v3838_v60  ;;  %v2519_v17 = vmax.f32 %v5362_v16, %v3966_v12  ;;  %v5374_v10 = vld [vmem:[#allocation55_spill] sm:$0xff]  ;;  %v5375_v60 = vld [vmem:[#allocation56_spill] sm:$0xff] }
 0x1b8   :  { %v1818_v36 = vpop.f32.mrf.mxu0  ;;  %v2330_v42 = vpop.f32.mrf.mxu1 }
 0x1b9   :  { %v3496_v48 = vpack.c.bf16 %v2651_v61, %v2650_v47  ;;  %v2649_v49 = vadd.f32 %v4951_v0, %v2578_v40  ;;  %v2453_v44 = vmax.f32 %v5363_v62, %v1818_v36  ;;  %v2583_v18 = vmax.f32 %v2455_v13, %v2519_v17  ;;  %v5376_v61 = vld [vmem:[#allocation57_spill] sm:$0xff] }
 0x1ba   :  { %v2517_v19 = vmax.f32 %v5364_v45, %v2330_v42  ;;  %v3839_v24 = vpop.f32.mrf.mxu0  ;;  %v3967_v63 = vpop.f32.mrf.mxu1  ;;  %v5377_v42 = vld [vmem:[#allocation58_spill] sm:$0xff] }
 0x1bb   :  { %3568 = vst [vmem:[%s5240_s3 + $0xa8] sm:$0xff] %v3496_v48   ;;  %v3491_v37 = vpack.c.bf16 %v2649_v49, %v2648_v43  ;;  %v2456_v20 = vmax.f32 %v5365_v52, %v3839_v24  ;;  %v2520_v38 = vmax.f32 %v5366_v53, %v3967_v63  ;;  %v2654_v3 = vadd.f32 %v4951_v0, %v2583_v18  ;;  %v5378_v48 = vld [vmem:[#allocation59_spill] sm:$0xff]  ;;  %v5379_v24 = vld [vmem:[#allocation60_spill] sm:$0xff]  ;;  %v5380_v52 = vld [vmem:[#allocation61_spill] sm:$0xff] }
 0x1bc   :  { %v1821_v21 = vpop.f32.mrf.mxu0  ;;  %v2333_v26 = vpop.f32.mrf.mxu1  ;;  %v2581_v50 = vmax.f32 %v2453_v44, %v2517_v19 }
 0x1bd   :  { %3567 = vst [vmem:[%s5240_s3 + $0xa0] sm:$0xff] %v3491_v37   ;;  %v2584_v51 = vmax.f32 %v2456_v20, %v2520_v38  ;;  %v2454_v22 = vmax.f32 %v5367_v4, %v1821_v21  ;;  %v2518_v5 = vmax.f32 %v5368_v2, %v2333_v26  ;;  %v5381_v26 = vld [vmem:[#allocation62_spill] sm:$0xff] }
 0x1be   :  { %v3842_v23 = vpop.f32.mrf.mxu0  ;;  %v3970_v14 = vpop.f32.mrf.mxu1  ;;  %v2652_v1 = vadd.f32 %v4951_v0, %v2581_v50 }
 0x1bf   :  { %v2655_v39 = vadd.f32 %v4951_v0, %v2584_v51  ;;  %v2582_v54 = vmax.f32 %v2454_v22, %v2518_v5  ;;  %v2459_v6 = vmax.f32 %v5369_v56, %v3842_v23  ;;  %v2523_v29 = vmax.f32 %v5370_v28, %v3970_v14  ;;  %v5382_v51 = vld [vmem:[#allocation63_spill] sm:$0xff]  ;;  %v5383_v23 = vld [vmem:[#allocation64_spill] sm:$0xff] }
 0x1c0   :  { %v1834_v7 = vpop.f32.mrf.mxu0  ;;  %v2346_v57 = vpop.f32.mrf.mxu1 }
 0x1c1   :  { %v3506_v15 = vpack.c.bf16 %v2655_v39, %v2654_v3  ;;  %v2653_v30 = vadd.f32 %v4951_v0, %v2582_v54  ;;  %v2457_v8 = vmax.f32 %v5371_v31, %v1834_v7  ;;  %v2587_v27 = vmax.f32 %v2459_v6, %v2523_v29  ;;  %v5384_v39 = vld [vmem:[#allocation65_spill] sm:$0xff] }
 0x1c2   :  { %v2521_v32 = vmax.f32 %v5372_v9, %v2346_v57  ;;  %v3843_v46 = vpop.f32.mrf.mxu0  ;;  %v3971_v33 = vpop.f32.mrf.mxu1  ;;  %v5385_v57 = vld [vmem:[#allocation66_spill] sm:$0xff] }
 0x1c3   :  { %3570 = vst [vmem:[%s5240_s3 + $0xb8] sm:$0xff] %v3506_v15   ;;  %v3501_v58 = vpack.c.bf16 %v2653_v30, %v2652_v1  ;;  %v2460_v55 = vmax.f32 %v5373_v59, %v3843_v46  ;;  %v2524_v34 = vmax.f32 %v5374_v10, %v3971_v33  ;;  %v2658_v41 = vadd.f32 %v4951_v0, %v2587_v27  ;;  %v5386_v15 = vld [vmem:[#allocation67_spill] sm:$0xff]  ;;  %v5387_v46 = vld [vmem:[#allocation68_spill] sm:$0xff]  ;;  %v5388_v59 = vld [vmem:[#allocation69_spill] sm:$0xff] }
 0x1c4   :  { %v1837_v25 = vpop.f32.mrf.mxu0  ;;  %v2349_v35 = vpop.f32.mrf.mxu1  ;;  %v2585_v11 = vmax.f32 %v2457_v8, %v2521_v32 }
 0x1c5   :  { %3569 = vst [vmem:[%s5240_s3 + $0xb0] sm:$0xff] %v3501_v58   ;;  %v2588_v47 = vmax.f32 %v2460_v55, %v2524_v34  ;;  %v2458_v12 = vmax.f32 %v5375_v60, %v1837_v25  ;;  %v2522_v40 = vmax.f32 %v5376_v61, %v2349_v35  ;;  %v5389_v35 = vld [vmem:[#allocation70_spill] sm:$0xff] }
 0x1c6   :  { %v3846_v13 = vpop.f32.mrf.mxu0  ;;  %v3974_v16 = vpop.f32.mrf.mxu1  ;;  %v2656_v18 = vadd.f32 %v4951_v0, %v2585_v11 }
 0x1c7   :  { %v2659_v17 = vadd.f32 %v4951_v0, %v2588_v47  ;;  %v2586_v36 = vmax.f32 %v2458_v12, %v2522_v40  ;;  %v2463_v43 = vmax.f32 %v5377_v42, %v3846_v13  ;;  %v2527_v49 = vmax.f32 %v5378_v48, %v3974_v16  ;;  %v5390_v47 = vld [vmem:[#allocation71_spill] sm:$0xff]  ;;  %v5391_v13 = vld [vmem:[#allocation72_spill] sm:$0xff] }
 0x1c8   :  { %v1850_v62 = vpop.f32.mrf.mxu0  ;;  %v2362_v44 = vpop.f32.mrf.mxu1 }
 0x1c9   :  { %v3516_v45 = vpack.c.bf16 %v2659_v17, %v2658_v41  ;;  %v2657_v19 = vadd.f32 %v4951_v0, %v2586_v36  ;;  %v2461_v63 = vmax.f32 %v5379_v24, %v1850_v62  ;;  %v2591_v37 = vmax.f32 %v2463_v43, %v2527_v49  ;;  %v5392_v17 = vld [vmem:[#allocation73_spill] sm:$0xff] }
 0x1ca   :  { %v2525_v20 = vmax.f32 %v5380_v52, %v2362_v44  ;;  %v3847_v53 = vpop.f32.mrf.mxu0  ;;  %v3975_v38 = vpop.f32.mrf.mxu1  ;;  %v5393_v44 = vld [vmem:[#allocation74_spill] sm:$0xff] }
 0x1cb   :  { %3572 = vst [vmem:[%s5240_s3 + $0xc8] sm:$0xff] %v3516_v45   ;;  %v3511_v21 = vpack.c.bf16 %v2657_v19, %v2656_v18  ;;  %v2464_v50 = vmax.f32 %v5381_v26, %v3847_v53  ;;  %v2528_v4 = vmax.f32 %v5382_v51, %v3975_v38  ;;  %v2662_v56 = vadd.f32 %v4951_v0, %v2591_v37  ;;  %v5394_v45 = vld [vmem:[#allocation75_spill] sm:$0xff]  ;;  %v5395_v53 = vld [vmem:[#allocation76_spill] sm:$0xff] }
 0x1cc   :  { %v1853_v22 = vpop.f32.mrf.mxu0  ;;  %v2365_v2 = vpop.f32.mrf.mxu1  ;;  %v2589_v5 = vmax.f32 %v2461_v63, %v2525_v20 }
 0x1cd   :  { %3571 = vst [vmem:[%s5240_s3 + $0xc0] sm:$0xff] %v3511_v21   ;;  %v2592_v3 = vmax.f32 %v2464_v50, %v2528_v4  ;;  %v2462_v14 = vmax.f32 %v5383_v23, %v1853_v22  ;;  %v2526_v54 = vmax.f32 %v5384_v39, %v2365_v2  ;;  %v5396_v21 = vld [vmem:[#allocation77_spill] sm:$0xff]  ;;  %v5397_v2 = vld [vmem:[#allocation78_spill] sm:$0xff] }
 0x1ce   :  { %v3850_v6 = vpop.f32.mrf.mxu0  ;;  %v3978_v28 = vpop.f32.mrf.mxu1  ;;  %v2660_v27 = vadd.f32 %v4951_v0, %v2589_v5 }
 0x1cf   :  { %v2663_v29 = vadd.f32 %v4951_v0, %v2592_v3  ;;  %v2590_v7 = vmax.f32 %v2462_v14, %v2526_v54  ;;  %v2467_v1 = vmax.f32 %v5385_v57, %v3850_v6  ;;  %v2531_v30 = vmax.f32 %v5386_v15, %v3978_v28  ;;  %v5398_v3 = vld [vmem:[#allocation79_spill] sm:$0xff]  ;;  %v5399_v6 = vld [vmem:[#allocation80_spill] sm:$0xff] }
 0x1d0   :  { %v1866_v31 = vpop.f32.mrf.mxu0  ;;  %v2378_v8 = vpop.f32.mrf.mxu1 }
 0x1d1   :  { %v3526_v9 = vpack.c.bf16 %v2663_v29, %v2662_v56  ;;  %v2661_v32 = vadd.f32 %v4951_v0, %v2590_v7  ;;  %v2465_v33 = vmax.f32 %v5387_v46, %v1866_v31  ;;  %v2595_v58 = vmax.f32 %v2467_v1, %v2531_v30  ;;  %v5400_v29 = vld [vmem:[#allocation81_spill] sm:$0xff] }
 0x1d2   :  { %v2529_v55 = vmax.f32 %v5388_v59, %v2378_v8  ;;  %v3851_v10 = vpop.f32.mrf.mxu0  ;;  %v3979_v34 = vpop.f32.mrf.mxu1 }
 0x1d3   :  { %3574 = vst [vmem:[%s5240_s3 + $0xd8] sm:$0xff] %v3526_v9   ;;  %v3521_v25 = vpack.c.bf16 %v2661_v32, %v2660_v27  ;;  %v2468_v11 = vmax.f32 %v5389_v35, %v3851_v10  ;;  %v2532_v60 = vmax.f32 %v5390_v47, %v3979_v34  ;;  %v2666_v42 = vadd.f32 %v4951_v0, %v2595_v58 }
 0x1d4   :  { %v1869_v12 = vpop.f32.mrf.mxu0  ;;  %v2381_v61 = vpop.f32.mrf.mxu1  ;;  %v2593_v40 = vmax.f32 %v2465_v33, %v2529_v55 }
 0x1d5   :  { %3573 = vst [vmem:[%s5240_s3 + $0xd0] sm:$0xff] %v3521_v25   ;;  %v2596_v41 = vmax.f32 %v2468_v11, %v2532_v60  ;;  %v2466_v16 = vmax.f32 %v5391_v13, %v1869_v12  ;;  %v2530_v36 = vmax.f32 %v5392_v17, %v2381_v61 }
 0x1d6   :  { %v3854_v43 = vpop.f32.mrf.mxu0  ;;  %v3982_v48 = vpop.f32.mrf.mxu1  ;;  %v2664_v37 = vadd.f32 %v4951_v0, %v2593_v40 }
 0x1d7   :  { %v2667_v49 = vadd.f32 %v4951_v0, %v2596_v41  ;;  %v2594_v62 = vmax.f32 %v2466_v16, %v2530_v36  ;;  %v2471_v18 = vmax.f32 %v5393_v44, %v3854_v43  ;;  %v2535_v19 = vmax.f32 %v5394_v45, %v3982_v48 }
 0x1d8   :  { %v1882_v24 = vpop.f32.mrf.mxu0  ;;  %v2394_v63 = vpop.f32.mrf.mxu1 }
 0x1d9   :  { %v3536_v52 = vpack.c.bf16 %v2667_v49, %v2666_v42  ;;  %v2665_v20 = vadd.f32 %v4951_v0, %v2594_v62  ;;  %v2469_v38 = vmax.f32 %v5395_v53, %v1882_v24  ;;  %v2533_v26 = vmax.f32 %v5396_v21, %v2394_v63 }
 0x1da   :  { %v3855_v50 = vpop.f32.mrf.mxu0  ;;  %v3983_v51 = vpop.f32.mrf.mxu1  ;;  %v2599_v22 = vmax.f32 %v2471_v18, %v2535_v19 }
 0x1db   :  { %3576 = vst [vmem:[%s5240_s3 + $0xe8] sm:$0xff] %v3536_v52   ;;  %v3531_v4 = vpack.c.bf16 %v2665_v20, %v2664_v37  ;;  %v2472_v5 = vmax.f32 %v5397_v2, %v3855_v50  ;;  %v2536_v23 = vmax.f32 %v5398_v3, %v3983_v51  ;;  %v2597_v54 = vmax.f32 %v2469_v38, %v2533_v26 }
 0x1dc   :  { %v1885_v14 = vpop.f32.mrf.mxu0  ;;  %v2397_v39 = vpop.f32.mrf.mxu1  ;;  %v2670_v57 = vadd.f32 %v4951_v0, %v2599_v22 }
 0x1dd   :  { %3575 = vst [vmem:[%s5240_s3 + $0xe0] sm:$0xff] %v3531_v4   ;;  %v2600_v56 = vmax.f32 %v2472_v5, %v2536_v23  ;;  %v2470_v28 = vmax.f32 %v5399_v6, %v1885_v14  ;;  %v2534_v7 = vmax.f32 %v5400_v29, %v2397_v39  ;;  %v2668_v30 = vadd.f32 %v4951_v0, %v2597_v54 }
 0x1df   :  { %v2671_v1 = vadd.f32 %v4951_v0, %v2600_v56  ;;  %v2598_v15 = vmax.f32 %v2470_v28, %v2534_v7 }
 0x1e1   :  { %v3546_v31 = vpack.c.bf16 %v2671_v1, %v2670_v57  ;;  %v2669_v8 = vadd.f32 %v4951_v0, %v2598_v15 }
 0x1e3   :  { %3578 = vst [vmem:[%s5240_s3 + $0xf8] sm:$0xff] %v3546_v31   ;;  %v3541_v27 = vpack.c.bf16 %v2669_v8, %v2668_v30 }
 0x1e5   :  { %3577 = vst [vmem:[%s5240_s3 + $0xf0] sm:$0xff] %v3541_v27  }

// kernel: tudui_forward.4
= control target key start
LH: loop header
LB: loop body
LE: loop exit
PB: predicated region body
PF: predicated region fallthrough
CT: control target
= control target key end

     0   :  { %v4090_v0 = vmov 0   ;;  %vm1791_vm0 = vcmask 261120   ;;  %s5791_s1 = inlined_call_operand.vmem [shape: bf16[800,128], index: 1, kind: input, shape index: {}]   ;;  %s5792_s0 = inlined_call_operand.vmem [shape: bf16[512,800], index: 0, kind: input, shape index: {}]   ;;  %s5793_s2 = inlined_call_operand.vmem [shape: f32[1,128], index: 2, kind: input, shape index: {}]   ;;  %s5794_s3 = inlined_call_operand.vmem [shape: bf16[128,128], index: 3, kind: output, shape index: {}]  }
   0x1   :  { %1888 = vmatprep.subr.bf16.mxu0 %v4090_v0  ;;  %3687 = vmatprep.subr.bf16.mxu1 %v4090_v0  ;;  %v3720_v1 = vld [vmem:[%s5791_s1 + $0x38] sm:$0xff]   ;;  %v3721_v2 = vld [vmem:[%s5791_s1 + $0x30] sm:$0xff]   ;;  %v3722_v3 = vld [vmem:[%s5791_s1 + $0x28] sm:$0xff]  }
   0x2   :  { %1889 = vmatpush1.bf16.msra.mxu0 %v3720_v1  ;;  %3703 = vmatpush1.bf16.msra.mxu1 %v3720_v1  ;;  %v3723_v4 = vld [vmem:[%s5791_s1 + $0x20] sm:$0xff]   ;;  %v3724_v5 = vld [vmem:[%s5791_s1 + $0x18] sm:$0xff]   ;;  %v3725_v7 = vld [vmem:[%s5791_s1 + $0x10] sm:$0xff]  }
   0x3   :  { %1890 = vmatprep.subr.bf16.mxu0 %v4090_v0  ;;  %3688 = vmatprep.subr.bf16.mxu1 %v4090_v0  ;;  %v3738_v6 = vld [vmem:[%s5792_s0 + $0x4] ss:$28 sps:$4 sm:$0xff]   ;;  %v3726_v9 = vld [vmem:[%s5791_s1 + $0x8] sm:$0xff]   ;;  %v3728_v11 = vld [vmem:[%s5791_s1 + $0x78] sm:$0xff]  }
   0x4   :  { %v3741_v8 = vld [vmem:[%s5792_s0 + $0x544] ss:$28 sps:$4 sm:$0xff]   ;;  %1920 = vmatprep.mubr.bf16.mxu0 %v3738_v6  ;;  %v3729_v12 = vld [vmem:[%s5791_s1 + $0x70] sm:$0xff]   ;;  %v3730_v13 = vld [vmem:[%s5791_s1 + $0x68] sm:$0xff]  }
   0x5   :  { %2112 = vmatprep.mubr.bf16.mxu1 %v3741_v8  ;;  %v3727_v10 = vld [vmem:[%s5791_s1] sm:$0xff]   ;;  %v3732_v15 = vld [vmem:[%s5791_s1 + $0x58] sm:$0xff]   ;;  %v3733_v16 = vld [vmem:[%s5791_s1 + $0x50] sm:$0xff]  }
   0x6   :  { %1891 = vmatpush1.bf16.msra.mxu0 %v3721_v2  ;;  %3704 = vmatpush1.bf16.msra.mxu1 %v3721_v2  ;;  %v3731_v14 = vld [vmem:[%s5791_s1 + $0x60] sm:$0xff]   ;;  %v3734_v17 = vld [vmem:[%s5791_s1 + $0x48] sm:$0xff]   ;;  %v3742_v21 = vld [vmem:[%s5791_s1 + $0xb8] sm:$0xff]  }
   0x7   :  { %1892 = vmatprep.subr.bf16.mxu0 %v4090_v0  ;;  %3689 = vmatprep.subr.bf16.mxu1 %v4090_v0  ;;  %v3735_v18 = vld [vmem:[%s5791_s1 + $0x40] sm:$0xff]   ;;  %v3743_v22 = vld [vmem:[%s5791_s1 + $0x138] sm:$0xff]   ;;  %v3744_v25 = vld [vmem:[%s5791_s1 + $0xb0] sm:$0xff]  }
   0x8   :  { %v3736_v19 = vld [vmem:[%s5792_s0] ss:$28 sps:$4 sm:$0xff]   ;;  %v3753_v26 = vld [vmem:[%s5791_s1 + $0x130] sm:$0xff]   ;;  %v3751_v29 = vld [vmem:[%s5791_s1 + $0xa8] sm:$0xff]  }
   0x9   :  { %v3739_v20 = vld [vmem:[%s5792_s0 + $0x540] ss:$28 sps:$4 sm:$0xff]   ;;  %v3749_v27 = vld [vmem:[%s5792_s0 + $0x38] ss:$28 sps:$4 sm:$0xff]   ;;  %v3769_v32 = vld [vmem:[%s5791_s1 + $0x128] sm:$0xff]  }
   0xa   :  { %1893 = vmatpush1.bf16.msra.mxu0 %v3722_v3  ;;  %3705 = vmatpush1.bf16.msra.mxu1 %v3722_v3  ;;  %v3745_v23 = vld [vmem:[%s5792_s0 + $0x3c] ss:$28 sps:$4 sm:$0xff]   ;;  %v3754_v30 = vld [vmem:[%s5792_s0 + $0x74] ss:$28 sps:$4 sm:$0xff]   ;;  %v3752_v33 = vld [vmem:[%s5791_s1 + $0xa0] sm:$0xff]  }
   0xb   :  { %1894 = vmatprep.subr.bf16.mxu0 %v4090_v0  ;;  %3690 = vmatprep.subr.bf16.mxu1 %v4090_v0  ;;  %v3747_v24 = vld [vmem:[%s5792_s0 + $0x57c] ss:$28 sps:$4 sm:$0xff]   ;;  %v3756_v31 = vld [vmem:[%s5792_s0 + $0x5b4] ss:$28 sps:$4 sm:$0xff]   ;;  %v3779_v35 = vld [vmem:[%s5791_s1 + $0x120] sm:$0xff]  }
   0xc   :  { %v3750_v28 = vld [vmem:[%s5792_s0 + $0x578] ss:$28 sps:$4 sm:$0xff]   ;;  %v3758_v34 = vld [vmem:[%s5792_s0 + $0x70] ss:$28 sps:$4 sm:$0xff]   ;;  %v3766_v42 = vld [vmem:[%s5792_s0 + $0xa8] ss:$28 sps:$4 sm:$0xff]  }
   0xd   :  { %v3759_v36 = vld [vmem:[%s5792_s0 + $0x5b0] ss:$28 sps:$4 sm:$0xff]   ;;  %v3760_v37 = vld [vmem:[%s5791_s1 + $0x98] sm:$0xff]   ;;  %v3767_v43 = vld [vmem:[%s5792_s0 + $0x5e8] ss:$28 sps:$4 sm:$0xff]  }
   0xe   :  { %1895 = vmatpush1.bf16.msra.mxu0 %v3723_v4  ;;  %3706 = vmatpush1.bf16.msra.mxu1 %v3723_v4  ;;  %v3762_v38 = vld [vmem:[%s5792_s0 + $0xac] ss:$28 sps:$4 sm:$0xff]   ;;  %v3795_v40 = vld [vmem:[%s5791_s1 + $0x118] sm:$0xff]   ;;  %v3761_v41 = vld [vmem:[%s5791_s1 + $0x90] sm:$0xff]  }
   0xf   :  { %1896 = vmatprep.subr.bf16.mxu0 %v4090_v0  ;;  %3691 = vmatprep.subr.bf16.mxu1 %v4090_v0  ;;  %v3764_v39 = vld [vmem:[%s5792_s0 + $0x5ec] ss:$28 sps:$4 sm:$0xff]   ;;  %v3771_v45 = vld [vmem:[%s5792_s0 + $0xe4] ss:$28 sps:$4 sm:$0xff]   ;;  %v3805_v47 = vld [vmem:[%s5791_s1 + $0x110] sm:$0xff]  }
  0x10   :  { %v3768_v44 = vld [vmem:[%s5791_s1 + $0x88] sm:$0xff]   ;;  %v3773_v46 = vld [vmem:[%s5792_s0 + $0x624] ss:$28 sps:$4 sm:$0xff]   ;;  %v3777_v52 = vld [vmem:[%s5791_s1 + $0xf8] sm:$0xff]  }
  0x11   :  { %v3770_v48 = vld [vmem:[%s5791_s1 + $0x80] sm:$0xff]   ;;  %v3819_v51 = vld [vmem:[%s5791_s1 + $0x108] sm:$0xff]   ;;  %v3780_v53 = vld [vmem:[%s5792_s0 + $0x11c] ss:$28 sps:$4 sm:$0xff]  }
  0x12   :  { %1897 = vmatpush1.bf16.msra.mxu0 %v3724_v5  ;;  %3707 = vmatpush1.bf16.msra.mxu1 %v3724_v5  ;;  %v3775_v49 = vld [vmem:[%s5792_s0 + $0xe0] ss:$28 sps:$4 sm:$0xff]   ;;  %v3778_v56 = vld [vmem:[%s5791_s1 + $0xf0] sm:$0xff]   ;;  %v3786_v59 = vld [vmem:[%s5791_s1 + $0xe8] sm:$0xff]  }
  0x13   :  { %1898 = vmatprep.subr.bf16.mxu0 %v4090_v0  ;;  %3692 = vmatprep.subr.bf16.mxu1 %v4090_v0  ;;  %v3776_v50 = vld [vmem:[%s5792_s0 + $0x620] ss:$28 sps:$4 sm:$0xff]   ;;  %v3784_v57 = vld [vmem:[%s5792_s0 + $0x118] ss:$28 sps:$4 sm:$0xff]   ;;  %v3792_v1 = vld [vmem:[%s5792_s0 + $0x150] ss:$28 sps:$4 sm:$0xff]  }
  0x14   :  { %v3782_v54 = vld [vmem:[%s5792_s0 + $0x65c] ss:$28 sps:$4 sm:$0xff]   ;;  %v3826_v55 = vld [vmem:[%s5791_s1 + $0x100] sm:$0xff]   ;;  %v3788_v60 = vld [vmem:[%s5792_s0 + $0x154] ss:$28 sps:$4 sm:$0xff]  }
  0x15   :  { %v3785_v58 = vld [vmem:[%s5792_s0 + $0x658] ss:$28 sps:$4 sm:$0xff]   ;;  %v3787_v63 = vld [vmem:[%s5791_s1 + $0xe0] sm:$0xff]   ;;  %v3793_v2 = vld [vmem:[%s5792_s0 + $0x690] ss:$28 sps:$4 sm:$0xff]  }
  0x16   :  { %1899 = vmatpush1.bf16.msra.mxu0 %v3725_v7  ;;  %3708 = vmatpush1.bf16.msra.mxu1 %v3725_v7  ;;  %v3790_v61 = vld [vmem:[%s5792_s0 + $0x694] ss:$28 sps:$4 sm:$0xff]   ;;  %v3839_v62 = vld [vmem:[%s5791_s1 + $0x178] sm:$0xff]   ;;  %v3797_v4 = vld [vmem:[%s5792_s0 + $0x18c] ss:$28 sps:$4 sm:$0xff]  }
  0x17   :  { %1900 = vmatprep.subr.bf16.mxu0 %v4090_v0  ;;  %3693 = vmatprep.subr.bf16.mxu1 %v4090_v0  ;;  %v3794_v3 = vld [vmem:[%s5791_s1 + $0xd8] sm:$0xff]   ;;  %v3846_v5 = vld [vmem:[%s5791_s1 + $0x170] sm:$0xff]   ;;  %v3799_v6 = vld [vmem:[%s5792_s0 + $0x6cc] ss:$28 sps:$4 sm:$0xff]  }
  0x18   :  { %v3859_v7 = vld [vmem:[%s5791_s1 + $0x168] sm:$0xff]   ;;  %v3796_v8 = vld [vmem:[%s5791_s1 + $0xd0] sm:$0xff]  }
  0x1a   :  { %1901 = vmatpush1.bf16.msra.mxu0 %v3726_v9  ;;  %3709 = vmatpush1.bf16.msra.mxu1 %v3726_v9  ;;  %v3801_v9 = vld [vmem:[%s5792_s0 + $0x188] ss:$28 sps:$4 sm:$0xff]  }
  0x1b   :  { %1902 = vmatprep.subr.bf16.mxu0 %v4090_v0  ;;  %3694 = vmatprep.subr.bf16.mxu1 %v4090_v0 }
  0x1e   :  { %1903 = vmatpush1.bf16.msra.mxu0 %v3727_v10  ;;  %3710 = vmatpush1.bf16.msra.mxu1 %v3727_v10  ;;  %v3802_v10 = vld [vmem:[%s5792_s0 + $0x6c8] ss:$28 sps:$4 sm:$0xff]  }
  0x1f   :  { %1904 = vmatprep.subr.bf16.mxu0 %v4090_v0  ;;  %3695 = vmatprep.subr.bf16.mxu1 %v4090_v0 }
  0x22   :  { %1905 = vmatpush2.bf16.msra.mxu0 %v3728_v11  ;;  %3711 = vmatpush2.bf16.msra.mxu1 %v3728_v11  ;;  %v3803_v11 = vld [vmem:[%s5791_s1 + $0xc8] sm:$0xff]  }
  0x23   :  { %1906 = vmatprep.subr.bf16.mxu0 %v4090_v0  ;;  %3696 = vmatprep.subr.bf16.mxu1 %v4090_v0 }
  0x26   :  { %1907 = vmatpush2.bf16.msra.mxu0 %v3729_v12  ;;  %3712 = vmatpush2.bf16.msra.mxu1 %v3729_v12  ;;  %v3806_v12 = vld [vmem:[%s5792_s0 + $0x1c4] ss:$28 sps:$4 sm:$0xff]  }
  0x27   :  { %1908 = vmatprep.subr.bf16.mxu0 %v4090_v0  ;;  %3697 = vmatprep.subr.bf16.mxu1 %v4090_v0 }
  0x2a   :  { %1909 = vmatpush2.bf16.msra.mxu0 %v3730_v13  ;;  %3713 = vmatpush2.bf16.msra.mxu1 %v3730_v13  ;;  %v3810_v13 = vld [vmem:[%s5792_s0 + $0xc] ss:$28 sps:$4 sm:$0xff]  }
  0x2b   :  { %1910 = vmatprep.subr.bf16.mxu0 %v4090_v0  ;;  %3698 = vmatprep.subr.bf16.mxu1 %v4090_v0 }
  0x2e   :  { %1911 = vmatpush2.bf16.msra.mxu0 %v3731_v14  ;;  %3714 = vmatpush2.bf16.msra.mxu1 %v3731_v14  ;;  %v3866_v14 = vld [vmem:[%s5791_s1 + $0x160] sm:$0xff]  }
  0x2f   :  { %1912 = vmatprep.subr.bf16.mxu0 %v4090_v0  ;;  %3699 = vmatprep.subr.bf16.mxu1 %v4090_v0 }
  0x32   :  { %1913 = vmatpush2.bf16.msra.mxu0 %v3732_v15  ;;  %3715 = vmatpush2.bf16.msra.mxu1 %v3732_v15  ;;  %v3804_v15 = vld [vmem:[%s5791_s1 + $0xc0] sm:$0xff]  }
  0x33   :  { %1914 = vmatprep.subr.bf16.mxu0 %v4090_v0  ;;  %3700 = vmatprep.subr.bf16.mxu1 %v4090_v0 }
  0x36   :  { %1915 = vmatpush2.bf16.msra.mxu0 %v3733_v16  ;;  %3716 = vmatpush2.bf16.msra.mxu1 %v3733_v16  ;;  %v3812_v16 = vld [vmem:[%s5791_s1 + $0x188] sm:$0xff]  }
  0x37   :  { %1916 = vmatprep.subr.bf16.mxu0 %v4090_v0  ;;  %3701 = vmatprep.subr.bf16.mxu1 %v4090_v0 }
  0x3a   :  { %1917 = vmatpush2.bf16.msra.mxu0 %v3734_v17  ;;  %3717 = vmatpush2.bf16.msra.mxu1 %v3734_v17  ;;  %v3879_v17 = vld [vmem:[%s5791_s1 + $0x158] sm:$0xff]  }
  0x3b   :  { %1918 = vmatprep.subr.bf16.mxu0 %v4090_v0  ;;  %3702 = vmatprep.subr.bf16.mxu1 %v4090_v0 }
  0x3e   :  { %1919 = vmatpush2.bf16.msra.mxu0 %v3735_v18  ;;  %3718 = vmatpush2.bf16.msra.mxu1 %v3735_v18  ;;  %v3808_v18 = vld [vmem:[%s5792_s0 + $0x8] ss:$28 sps:$4 sm:$0xff]  }
  0x3f   :  { %2177 = vmatprep.subr.bf16.mxu1 %v4090_v0  ;;  %2466 = vmatprep.subr.bf16.mxu0 %v4090_v0 }
  0x41   :  { %1921 = vmatmul.mubr.bf16.vlgmr.msra.gmra.mxu0 %v3736_v19  ;;  %2113 = vmatmul.mubr.bf16.vlgmr.msra.gmra.mxu1 %v3739_v20  ;;  %v3811_v19 = vld [vmem:[%s5792_s0 + $0x1c0] ss:$28 sps:$4 sm:$0xff]  }
  0x42   :  { %2178 = vmatpush1.bf16.msra.mxu1 %v3742_v21  ;;  %2467 = vmatpush1.bf16.msra.mxu0 %v3743_v22  ;;  %v3813_v20 = vld [vmem:[%s5792_s0 + $0x1fc] ss:$28 sps:$4 sm:$0xff]   ;;  %v3815_v21 = vld [vmem:[%s5792_s0 + $0x44] ss:$28 sps:$4 sm:$0xff]   ;;  %v3886_v22 = vld [vmem:[%s5791_s1 + $0x150] sm:$0xff]  }
  0x43   :  { %2179 = vmatprep.subr.bf16.mxu1 %v4090_v0  ;;  %1928 = vmatprep.mubr.bf16.mxu0 %v3745_v23  ;;  %v3919_v23 = vld [vmem:[%s5791_s1 + $0x180] sm:$0xff]  }
  0x44   :  { %2120 = vmatprep.mubr.bf16.mxu1 %v3747_v24  ;;  %2468 = vmatprep.subr.bf16.mxu0 %v4090_v0  ;;  %v3899_v24 = vld [vmem:[%s5791_s1 + $0x148] sm:$0xff]  }
  0x46   :  { %2180 = vmatpush1.bf16.msra.mxu1 %v3744_v25  ;;  %2469 = vmatpush1.bf16.msra.mxu0 %v3753_v26  ;;  %v3817_v25 = vld [vmem:[%s5792_s0 + $0x1f8] ss:$28 sps:$4 sm:$0xff]   ;;  %v3818_v26 = vld [vmem:[%s5792_s0 + $0x40] ss:$28 sps:$4 sm:$0xff]  }
  0x47   :  { %2181 = vmatprep.subr.bf16.mxu1 %v4090_v0  ;;  %2470 = vmatprep.subr.bf16.mxu0 %v4090_v0 }
  0x49   :  { %1929 = vmatmul.mubr.bf16.gmra.mxu0 %v3749_v27  ;;  %2121 = vmatmul.mubr.bf16.gmra.mxu1 %v3750_v28  ;;  %v3820_v27 = vld [vmem:[%s5792_s0 + $0x234] ss:$28 sps:$4 sm:$0xff]   ;;  %v3822_v28 = vld [vmem:[%s5792_s0 + $0x7c] ss:$28 sps:$4 sm:$0xff]  }
  0x4a   :  { %2182 = vmatpush1.bf16.msra.mxu1 %v3751_v29  ;;  %1936 = vmatprep.mubr.bf16.mxu0 %v3754_v30  ;;  %v3906_v29 = vld [vmem:[%s5791_s1 + $0x140] sm:$0xff]   ;;  %v3824_v30 = vld [vmem:[%s5792_s0 + $0x230] ss:$28 sps:$4 sm:$0xff]  }
  0x4b   :  { %2183 = vmatprep.subr.bf16.mxu1 %v4090_v0  ;;  %2128 = vmatprep.mubr.bf16.mxu1 %v3756_v31  ;;  %v3825_v31 = vld [vmem:[%s5792_s0 + $0x78] ss:$28 sps:$4 sm:$0xff]  }
  0x4c   :  { %2471 = vmatpush1.bf16.msra.mxu0 %v3769_v32  ;;  %v3827_v32 = vld [vmem:[%s5792_s0 + $0x26c] ss:$28 sps:$4 sm:$0xff]  }
  0x4d   :  { %2472 = vmatprep.subr.bf16.mxu0 %v4090_v0 }
  0x4e   :  { %2184 = vmatpush1.bf16.msra.mxu1 %v3752_v33  ;;  %v3829_v33 = vld [vmem:[%s5792_s0 + $0xb4] ss:$28 sps:$4 sm:$0xff]  }
  0x4f   :  { %2185 = vmatprep.subr.bf16.mxu1 %v4090_v0 }
  0x50   :  { %2473 = vmatpush1.bf16.msra.mxu0 %v3779_v35  ;;  %v3833_v35 = vld [vmem:[%s5792_s0 + $0x2a4] ss:$28 sps:$4 sm:$0xff]  }
  0x51   :  { %1937 = vmatmul.mubr.bf16.gmra.mxu0 %v3758_v34  ;;  %2129 = vmatmul.mubr.bf16.gmra.mxu1 %v3759_v36  ;;  %v3831_v34 = vld [vmem:[%s5792_s0 + $0x268] ss:$28 sps:$4 sm:$0xff]  }
  0x52   :  { %2186 = vmatpush1.bf16.msra.mxu1 %v3760_v37  ;;  %1944 = vmatprep.mubr.bf16.mxu0 %v3762_v38  ;;  %v3835_v36 = vld [vmem:[%s5792_s0 + $0xec] ss:$28 sps:$4 sm:$0xff]   ;;  %v3837_v37 = vld [vmem:[%s5792_s0 + $0x2a0] ss:$28 sps:$4 sm:$0xff]  }
  0x53   :  { %2187 = vmatprep.subr.bf16.mxu1 %v4090_v0  ;;  %2136 = vmatprep.mubr.bf16.mxu1 %v3764_v39  ;;  %v3838_v38 = vld [vmem:[%s5792_s0 + $0xe8] ss:$28 sps:$4 sm:$0xff]   ;;  %v3840_v39 = vld [vmem:[%s5792_s0 + $0x2dc] ss:$28 sps:$4 sm:$0xff]  }
  0x54   :  { %2474 = vmatprep.subr.bf16.mxu0 %v4090_v0 }
  0x55   :  { %2475 = vmatpush1.bf16.msra.mxu0 %v3795_v40  ;;  %v3842_v40 = vld [vmem:[%s5792_s0 + $0x124] ss:$28 sps:$4 sm:$0xff]  }
  0x56   :  { %2188 = vmatpush1.bf16.msra.mxu1 %v3761_v41  ;;  %2476 = vmatprep.subr.bf16.mxu0 %v4090_v0  ;;  %v3844_v41 = vld [vmem:[%s5792_s0 + $0x2d8] ss:$28 sps:$4 sm:$0xff]  }
  0x57   :  { %2189 = vmatprep.subr.bf16.mxu1 %v4090_v0 }
  0x59   :  { %1945 = vmatmul.mubr.bf16.gmra.mxu0 %v3766_v42  ;;  %2137 = vmatmul.mubr.bf16.gmra.mxu1 %v3767_v43  ;;  %v3845_v42 = vld [vmem:[%s5792_s0 + $0x120] ss:$28 sps:$4 sm:$0xff]   ;;  %v3847_v43 = vld [vmem:[%s5792_s0 + $0x314] ss:$28 sps:$4 sm:$0xff]  }
  0x5a   :  { %2190 = vmatpush1.bf16.msra.mxu1 %v3768_v44  ;;  %1952 = vmatprep.mubr.bf16.mxu0 %v3771_v45  ;;  %v3849_v44 = vld [vmem:[%s5792_s0 + $0x15c] ss:$28 sps:$4 sm:$0xff]   ;;  %v3851_v45 = vld [vmem:[%s5792_s0 + $0x310] ss:$28 sps:$4 sm:$0xff]  }
  0x5b   :  { %2191 = vmatprep.subr.bf16.mxu1 %v4090_v0  ;;  %2144 = vmatprep.mubr.bf16.mxu1 %v3773_v46  ;;  %v3852_v46 = vld [vmem:[%s5792_s0 + $0x158] ss:$28 sps:$4 sm:$0xff]  }
  0x5c   :  { %2477 = vmatpush1.bf16.msra.mxu0 %v3805_v47  ;;  %v3853_v47 = vld [vmem:[%s5792_s0 + $0x34c] ss:$28 sps:$4 sm:$0xff]  }
  0x5d   :  { %2478 = vmatprep.subr.bf16.mxu0 %v4090_v0 }
  0x5e   :  { %2192 = vmatpush1.bf16.msra.mxu1 %v3770_v48  ;;  %v3855_v48 = vld [vmem:[%s5792_s0 + $0x194] ss:$28 sps:$4 sm:$0xff]  }
  0x5f   :  { %2193 = vmatprep.subr.bf16.mxu1 %v4090_v0 }
  0x60   :  { %2479 = vmatpush1.bf16.msra.mxu0 %v3819_v51  ;;  %v3860_v51 = vld [vmem:[%s5792_s0 + $0x384] ss:$28 sps:$4 sm:$0xff]  }
  0x61   :  { %1953 = vmatmul.mubr.bf16.gmra.mxu0 %v3775_v49  ;;  %2145 = vmatmul.mubr.bf16.gmra.mxu1 %v3776_v50  ;;  %v3857_v49 = vld [vmem:[%s5792_s0 + $0x348] ss:$28 sps:$4 sm:$0xff]   ;;  %v3858_v50 = vld [vmem:[%s5792_s0 + $0x190] ss:$28 sps:$4 sm:$0xff]  }
  0x62   :  { %2194 = vmatpush2.bf16.msra.mxu1 %v3777_v52  ;;  %1960 = vmatprep.mubr.bf16.mxu0 %v3780_v53  ;;  %v3862_v52 = vld [vmem:[%s5792_s0 + $0x1cc] ss:$28 sps:$4 sm:$0xff]   ;;  %v3864_v53 = vld [vmem:[%s5792_s0 + $0x380] ss:$28 sps:$4 sm:$0xff]  }
  0x63   :  { %2195 = vmatprep.subr.bf16.mxu1 %v4090_v0  ;;  %2152 = vmatprep.mubr.bf16.mxu1 %v3782_v54  ;;  %v3865_v54 = vld [vmem:[%s5792_s0 + $0x1c8] ss:$28 sps:$4 sm:$0xff]  }
  0x64   :  { %2480 = vmatprep.subr.bf16.mxu0 %v4090_v0 }
  0x65   :  { %2481 = vmatpush1.bf16.msra.mxu0 %v3826_v55  ;;  %v3867_v55 = vld [vmem:[%s5792_s0 + $0x3bc] ss:$28 sps:$4 sm:$0xff]  }
  0x66   :  { %2196 = vmatpush2.bf16.msra.mxu1 %v3778_v56  ;;  %2482 = vmatprep.subr.bf16.mxu0 %v4090_v0  ;;  %v3869_v56 = vld [vmem:[%s5792_s0 + $0x204] ss:$28 sps:$4 sm:$0xff]  }
  0x67   :  { %2197 = vmatprep.subr.bf16.mxu1 %v4090_v0 }
  0x69   :  { %1961 = vmatmul.mubr.bf16.gmra.mxu0 %v3784_v57  ;;  %2153 = vmatmul.mubr.bf16.gmra.mxu1 %v3785_v58  ;;  %v3871_v57 = vld [vmem:[%s5792_s0 + $0x3b8] ss:$28 sps:$4 sm:$0xff]   ;;  %v3872_v58 = vld [vmem:[%s5792_s0 + $0x200] ss:$28 sps:$4 sm:$0xff]  }
  0x6a   :  { %2198 = vmatpush2.bf16.msra.mxu1 %v3786_v59  ;;  %1968 = vmatprep.mubr.bf16.mxu0 %v3788_v60  ;;  %v3873_v59 = vld [vmem:[%s5792_s0 + $0x3f4] ss:$28 sps:$4 sm:$0xff]   ;;  %v3875_v60 = vld [vmem:[%s5792_s0 + $0x23c] ss:$28 sps:$4 sm:$0xff]  }
  0x6b   :  { %2199 = vmatprep.subr.bf16.mxu1 %v4090_v0  ;;  %2160 = vmatprep.mubr.bf16.mxu1 %v3790_v61  ;;  %v3877_v61 = vld [vmem:[%s5792_s0 + $0x3f0] ss:$28 sps:$4 sm:$0xff]  }
  0x6c   :  { %2483 = vmatpush2.bf16.msra.mxu0 %v3839_v62  ;;  %v3878_v62 = vld [vmem:[%s5792_s0 + $0x238] ss:$28 sps:$4 sm:$0xff]  }
  0x6d   :  { %2484 = vmatprep.subr.bf16.mxu0 %v4090_v0 }
  0x6e   :  { %2200 = vmatpush2.bf16.msra.mxu1 %v3787_v63  ;;  %v3880_v63 = vld [vmem:[%s5792_s0 + $0x42c] ss:$28 sps:$4 sm:$0xff]  }
  0x6f   :  { %2201 = vmatprep.subr.bf16.mxu1 %v4090_v0 }
  0x70   :  { %2485 = vmatpush2.bf16.msra.mxu0 %v3846_v5  ;;  %v3889_v5 = vld [vmem:[%s5792_s0 + $0x2ac] ss:$28 sps:$4 sm:$0xff]  }
  0x71   :  { %1969 = vmatmul.mubr.bf16.gmra.mxu0 %v3792_v1  ;;  %2161 = vmatmul.mubr.bf16.gmra.mxu1 %v3793_v2  ;;  %v3882_v1 = vld [vmem:[%s5792_s0 + $0x274] ss:$28 sps:$4 sm:$0xff]   ;;  %v3884_v2 = vld [vmem:[%s5792_s0 + $0x428] ss:$28 sps:$4 sm:$0xff]  }
  0x72   :  { %2202 = vmatpush2.bf16.msra.mxu1 %v3794_v3  ;;  %1976 = vmatprep.mubr.bf16.mxu0 %v3797_v4  ;;  %v3885_v3 = vld [vmem:[%s5792_s0 + $0x270] ss:$28 sps:$4 sm:$0xff]   ;;  %v3887_v4 = vld [vmem:[%s5792_s0 + $0x464] ss:$28 sps:$4 sm:$0xff]  }
  0x73   :  { %2203 = vmatprep.subr.bf16.mxu1 %v4090_v0  ;;  %2168 = vmatprep.mubr.bf16.mxu1 %v3799_v6  ;;  %v3891_v6 = vld [vmem:[%s5792_s0 + $0x460] ss:$28 sps:$4 sm:$0xff]  }
  0x74   :  { %2486 = vmatprep.subr.bf16.mxu0 %v4090_v0 }
  0x75   :  { %2487 = vmatpush2.bf16.msra.mxu0 %v3859_v7  ;;  %v3892_v7 = vld [vmem:[%s5792_s0 + $0x2a8] ss:$28 sps:$4 sm:$0xff]  }
  0x76   :  { %2204 = vmatpush2.bf16.msra.mxu1 %v3796_v8  ;;  %2488 = vmatprep.subr.bf16.mxu0 %v4090_v0  ;;  %v3893_v8 = vld [vmem:[%s5792_s0 + $0x49c] ss:$28 sps:$4 sm:$0xff]  }
  0x77   :  { %2205 = vmatprep.subr.bf16.mxu1 %v4090_v0 }
  0x79   :  { %1977 = vmatmul.mubr.bf16.gmra.mxu0 %v3801_v9  ;;  %2169 = vmatmul.mubr.bf16.gmra.mxu1 %v3802_v10  ;;  %v3895_v9 = vld [vmem:[%s5792_s0 + $0x2e4] ss:$28 sps:$4 sm:$0xff]   ;;  %v3897_v10 = vld [vmem:[%s5792_s0 + $0x498] ss:$28 sps:$4 sm:$0xff]  }
  0x7a   :  { %2206 = vmatpush2.bf16.msra.mxu1 %v3803_v11  ;;  %1984 = vmatprep.mubr.bf16.mxu0 %v3806_v12  ;;  %v3898_v11 = vld [vmem:[%s5792_s0 + $0x2e0] ss:$28 sps:$4 sm:$0xff]   ;;  %v3900_v12 = vld [vmem:[%s5792_s0 + $0x4d4] ss:$28 sps:$4 sm:$0xff]  }
  0x7b   :  { %2207 = vmatprep.subr.bf16.mxu1 %v4090_v0  ;;  %2209 = vmatprep.mubr.bf16.mxu1 %v3810_v13  ;;  %v3902_v13 = vld [vmem:[%s5792_s0 + $0x31c] ss:$28 sps:$4 sm:$0xff]  }
  0x7c   :  { %2489 = vmatpush2.bf16.msra.mxu0 %v3866_v14  ;;  %v3904_v14 = vld [vmem:[%s5792_s0 + $0x4d0] ss:$28 sps:$4 sm:$0xff]  }
  0x7d   :  { %2490 = vmatprep.subr.bf16.mxu0 %v4090_v0 }
  0x7e   :  { %2208 = vmatpush2.bf16.msra.mxu1 %v3804_v15  ;;  %v3905_v15 = vld [vmem:[%s5792_s0 + $0x318] ss:$28 sps:$4 sm:$0xff]  }
  0x7f   :  { %3619 = vmatprep.subr.bf16.mxu1 %v3812_v16 }
  0x80   :  { %2491 = vmatpush2.bf16.msra.mxu0 %v3879_v17  ;;  %v3909_v17 = vld [vmem:[%s5792_s0 + $0x354] ss:$28 sps:$4 sm:$0xff]  }
  0x81   :  { %1985 = vmatmul.mubr.bf16.gmra.mxu0 %v3811_v19  ;;  %2210 = vmatmul.mubr.bf16.vlgmr.msra.gmra.mxu1 %v3808_v18  ;;  %v3911_v18 = vld [vmem:[%s5792_s0 + $0x508] ss:$28 sps:$4 sm:$0xff]   ;;  %v3912_v19 = vld [vmem:[%s5792_s0 + $0x350] ss:$28 sps:$4 sm:$0xff]  }
  0x82   :  { %3620 = vmatpush3.bf16.msra.mxu1 %v3812_v16  ;;  %1992 = vmatprep.mubr.bf16.mxu0 %v3813_v20  ;;  %v3907_v16 = vld [vmem:[%s5792_s0 + $0x50c] ss:$28 sps:$4 sm:$0xff]  }
  0x83   :  { %2217 = vmatprep.mubr.bf16.mxu1 %v3815_v21  ;;  %2492 = vmatprep.subr.bf16.mxu0 %v4090_v0  ;;  %v3913_v20 = vld [vmem:[%s5792_s0 + $0x38c] ss:$28 sps:$4 sm:$0xff]   ;;  %v3917_v21 = vld [vmem:[%s5792_s0 + $0x14] ss:$28 sps:$4 sm:$0xff]  }
  0x84   :  { %2493 = vmatpush2.bf16.msra.mxu0 %v3886_v22  ;;  %3621 = vmatprep.subr.bf16.mxu1 %v3919_v23  ;;  %v3915_v22 = vld [vmem:[%s5792_s0 + $0x10] ss:$28 sps:$4 sm:$0xff]  }
  0x85   :  { %2494 = vmatprep.subr.bf16.mxu0 %v4090_v0 }
  0x86   :  { %3622 = vmatpush3.bf16.msra.mxu1 %v3919_v23  ;;  %v3918_v23 = vld [vmem:[%s5792_s0 + $0x388] ss:$28 sps:$4 sm:$0xff]  }
  0x88   :  { %2495 = vmatpush2.bf16.msra.mxu0 %v3899_v24  ;;  %v3920_v24 = vld [vmem:[%s5792_s0 + $0x3c4] ss:$28 sps:$4 sm:$0xff]  }
  0x89   :  { %1993 = vmatmul.mubr.bf16.gmra.mxu0 %v3817_v25  ;;  %2218 = vmatmul.mubr.bf16.gmra.mxu1 %v3818_v26  ;;  %v3922_v25 = vld [vmem:[%s5792_s0 + $0x4c] ss:$28 sps:$4 sm:$0xff]  }
  0x8a   :  { %2000 = vmatprep.mubr.bf16.mxu0 %v3820_v27  ;;  %2225 = vmatprep.mubr.bf16.mxu1 %v3822_v28 }
  0x8b   :  { %2496 = vmatprep.subr.bf16.mxu0 %v4090_v0  ;;  %v3832_v0 = vld [vmem:[%s5792_s0 + $0xb0] ss:$28 sps:$4 sm:$0xff]  }
  0x8c   :  { %2497 = vmatpush2.bf16.msra.mxu0 %v3906_v29 }
  0x91   :  { %2001 = vmatmul.mubr.bf16.gmra.mxu0 %v3824_v30  ;;  %2226 = vmatmul.mubr.bf16.gmra.mxu1 %v3825_v31 }
  0x92   :  { %2008 = vmatprep.mubr.bf16.mxu0 %v3827_v32  ;;  %2233 = vmatprep.mubr.bf16.mxu1 %v3829_v33  ;;  %v3924_v32 = vld [vmem:[%s5792_s0 + $0x3c0] ss:$28 sps:$4 sm:$0xff]   ;;  %v3925_v33 = vld [vmem:[%s5792_s0 + $0x48] ss:$28 sps:$4 sm:$0xff]  }
  0x99   :  { %2009 = vmatmul.mubr.bf16.gmra.mxu0 %v3831_v34  ;;  %2234 = vmatmul.mubr.bf16.gmra.mxu1 %v3832_v0  ;;  %v3926_v34 = vld [vmem:[%s5792_s0 + $0x3fc] ss:$28 sps:$4 sm:$0xff]   ;;  %v3928_v0 = vld [vmem:[%s5792_s0 + $0x84] ss:$28 sps:$4 sm:$0xff]  }
  0x9a   :  { %2016 = vmatprep.mubr.bf16.mxu0 %v3833_v35  ;;  %2241 = vmatprep.mubr.bf16.mxu1 %v3835_v36 }
  0xa1   :  { %2017 = vmatmul.mubr.bf16.gmra.mxu0 %v3837_v37  ;;  %2242 = vmatmul.mubr.bf16.gmra.mxu1 %v3838_v38 }
  0xa2   :  { %2024 = vmatprep.mubr.bf16.mxu0 %v3840_v39  ;;  %2249 = vmatprep.mubr.bf16.mxu1 %v3842_v40 }
  0xa9   :  { %2025 = vmatmul.mubr.bf16.gmra.mxu0 %v3844_v41  ;;  %2250 = vmatmul.mubr.bf16.gmra.mxu1 %v3845_v42 }
  0xaa   :  { %2032 = vmatprep.mubr.bf16.mxu0 %v3847_v43  ;;  %2257 = vmatprep.mubr.bf16.mxu1 %v3849_v44  ;;  %v3930_v43 = vld [vmem:[%s5792_s0 + $0x3f8] ss:$28 sps:$4 sm:$0xff]   ;;  %v3931_v44 = vld [vmem:[%s5792_s0 + $0x80] ss:$28 sps:$4 sm:$0xff]  }
  0xb1   :  { %2033 = vmatmul.mubr.bf16.gmra.mxu0 %v3851_v45  ;;  %2258 = vmatmul.mubr.bf16.gmra.mxu1 %v3852_v46  ;;  %v3932_v45 = vld [vmem:[%s5792_s0 + $0x434] ss:$28 sps:$4 sm:$0xff]   ;;  %v3934_v46 = vld [vmem:[%s5792_s0 + $0xbc] ss:$28 sps:$4 sm:$0xff]  }
  0xb2   :  { %2040 = vmatprep.mubr.bf16.mxu0 %v3853_v47  ;;  %2265 = vmatprep.mubr.bf16.mxu1 %v3855_v48 }
  0xb9   :  { %2041 = vmatmul.mubr.bf16.gmra.mxu0 %v3857_v49  ;;  %2266 = vmatmul.mubr.bf16.gmra.mxu1 %v3858_v50 }
  0xba   :  { %2048 = vmatprep.mubr.bf16.mxu0 %v3860_v51  ;;  %2273 = vmatprep.mubr.bf16.mxu1 %v3862_v52 }
  0xc1   :  { %2049 = vmatmul.mubr.bf16.gmra.mxu0 %v3864_v53  ;;  %2274 = vmatmul.mubr.bf16.gmra.mxu1 %v3865_v54 }
  0xc2   :  { %2056 = vmatprep.mubr.bf16.mxu0 %v3867_v55  ;;  %2281 = vmatprep.mubr.bf16.mxu1 %v3869_v56  ;;  %v3936_v55 = vld [vmem:[%s5792_s0 + $0x430] ss:$28 sps:$4 sm:$0xff]   ;;  %v3937_v56 = vld [vmem:[%s5792_s0 + $0xb8] ss:$28 sps:$4 sm:$0xff]  }
  0xc9   :  { %2057 = vmatmul.mubr.bf16.gmra.mxu0 %v3871_v57  ;;  %2282 = vmatmul.mubr.bf16.gmra.mxu1 %v3872_v58  ;;  %v3940_v57 = vld [vmem:[%s5792_s0 + $0x46c] ss:$28 sps:$4 sm:$0xff]   ;;  %v3943_v58 = vld [vmem:[%s5792_s0 + $0xf4] ss:$28 sps:$4 sm:$0xff]  }
  0xca   :  { %2064 = vmatprep.mubr.bf16.mxu0 %v3873_v59  ;;  %2289 = vmatprep.mubr.bf16.mxu1 %v3875_v60 }
  0xd1   :  { %2065 = vmatmul.mubr.bf16.gmra.mxu0 %v3877_v61  ;;  %2290 = vmatmul.mubr.bf16.gmra.mxu1 %v3878_v62 }
  0xd2   :  { %2072 = vmatprep.mubr.bf16.mxu0 %v3880_v63  ;;  %2297 = vmatprep.mubr.bf16.mxu1 %v3882_v1 }
  0xd9   :  { %2073 = vmatmul.mubr.bf16.gmra.mxu0 %v3884_v2  ;;  %2298 = vmatmul.mubr.bf16.gmra.mxu1 %v3885_v3 }
  0xda   :  { %2080 = vmatprep.mubr.bf16.mxu0 %v3887_v4  ;;  %2305 = vmatprep.mubr.bf16.mxu1 %v3889_v5  ;;  %v3938_v4 = vld [vmem:[%s5792_s0 + $0x468] ss:$28 sps:$4 sm:$0xff]   ;;  %v3941_v5 = vld [vmem:[%s5792_s0 + $0xf0] ss:$28 sps:$4 sm:$0xff]  }
  0xe1   :  { %2081 = vmatmul.mubr.bf16.gmra.mxu0 %v3891_v6  ;;  %2306 = vmatmul.mubr.bf16.gmra.mxu1 %v3892_v7  ;;  %v3946_v6 = vld [vmem:[%s5792_s0 + $0x4a4] ss:$28 sps:$4 sm:$0xff]   ;;  %v3949_v7 = vld [vmem:[%s5792_s0 + $0x12c] ss:$28 sps:$4 sm:$0xff]  }
  0xe2   :  { %2088 = vmatprep.mubr.bf16.mxu0 %v3893_v8  ;;  %2313 = vmatprep.mubr.bf16.mxu1 %v3895_v9 }
  0xe9   :  { %2089 = vmatmul.mubr.bf16.gmra.mxu0 %v3897_v10  ;;  %2314 = vmatmul.mubr.bf16.gmra.mxu1 %v3898_v11 }
  0xea   :  { %2096 = vmatprep.mubr.bf16.mxu0 %v3900_v12  ;;  %2321 = vmatprep.mubr.bf16.mxu1 %v3902_v13 }
  0xf1   :  { %2097 = vmatmul.mubr.bf16.gmra.mxu0 %v3904_v14  ;;  %2322 = vmatmul.mubr.bf16.gmra.mxu1 %v3905_v15 }
  0xf2   :  { %2104 = vmatprep.mubr.bf16.mxu0 %v3907_v16  ;;  %2329 = vmatprep.mubr.bf16.mxu1 %v3909_v17  ;;  %v3944_v16 = vld [vmem:[%s5792_s0 + $0x4a0] ss:$28 sps:$4 sm:$0xff]   ;;  %v3947_v17 = vld [vmem:[%s5792_s0 + $0x128] ss:$28 sps:$4 sm:$0xff]  }
  0xf9   :  { %2105 = vmatmul.mubr.bf16.gmra.mxu0 %v3911_v18  ;;  %2330 = vmatmul.mubr.bf16.gmra.mxu1 %v3912_v19  ;;  %v3952_v18 = vld [vmem:[%s5792_s0 + $0x4dc] ss:$28 sps:$4 sm:$0xff]   ;;  %v3955_v19 = vld [vmem:[%s5792_s0 + $0x164] ss:$28 sps:$4 sm:$0xff]  }
  0xfa   :  { %2337 = vmatprep.mubr.bf16.mxu1 %v3913_v20  ;;  %2498 = vmatprep.mubr.bf16.mxu0 %v3917_v21 }
 0x101   :  { %v4631_v26 = vpop.f32.mrf.mxu0  ;;  %v4633_v27 = vpop.f32.mrf.mxu1  ;;  %2338 = vmatmul.mubr.bf16.gmra.mxu1 %v3918_v23  ;;  %2499 = vmatmul.mubr.bf16.vlgmr.msra.gmra.mxu0 %v3915_v22 }
 0x102   :  { %5812 = vst [vmem:[#allocation2_spill] sm:$0xff] %v4633_v27  ;;  %2345 = vmatprep.mubr.bf16.mxu1 %v3920_v24  ;;  %2506 = vmatprep.mubr.bf16.mxu0 %v3922_v25 }
 0x103   :  { %v1924_v28 = vpop.f32.mrf.mxu0  ;;  %v2116_v29 = vpop.f32.mrf.mxu1 }
 0x105   :  { %v4635_v30 = vpop.f32.mrf.mxu0  ;;  %v4637_v31 = vpop.f32.mrf.mxu1 }
 0x106   :  { %5813 = vst [vmem:[#allocation3_spill] sm:$0xff] %v4637_v31 }
 0x107   :  { %v1927_v35 = vpop.f32.mrf.mxu0  ;;  %v2119_v36 = vpop.f32.mrf.mxu1 }
 0x109   :  { %v4651_v37 = vpop.f32.mrf.mxu0  ;;  %v4653_v38 = vpop.f32.mrf.mxu1  ;;  %2346 = vmatmul.mubr.bf16.gmra.mxu1 %v3924_v32  ;;  %2507 = vmatmul.mubr.bf16.gmra.mxu0 %v3925_v33  ;;  %v3950_v32 = vld [vmem:[%s5792_s0 + $0x4d8] ss:$28 sps:$4 sm:$0xff]   ;;  %v3953_v33 = vld [vmem:[%s5792_s0 + $0x160] ss:$28 sps:$4 sm:$0xff]  }
 0x10a   :  { %2353 = vmatprep.mubr.bf16.mxu1 %v3926_v34  ;;  %2514 = vmatprep.mubr.bf16.mxu0 %v3928_v0  ;;  %v3958_v34 = vld [vmem:[%s5792_s0 + $0x514] ss:$28 sps:$4 sm:$0xff]   ;;  %v3961_v0 = vld [vmem:[%s5792_s0 + $0x19c] ss:$28 sps:$4 sm:$0xff]  }
 0x10b   :  { %v1932_v39 = vpop.f32.mrf.mxu0  ;;  %v2124_v40 = vpop.f32.mrf.mxu1 }
 0x10d   :  { %v4655_v41 = vpop.f32.mrf.mxu0  ;;  %v4657_v42 = vpop.f32.mrf.mxu1 }
 0x10e   :  { %5814 = vst [vmem:[#allocation4_spill] sm:$0xff] %v4657_v42 }
 0x10f   :  { %v1935_v47 = vpop.f32.mrf.mxu0  ;;  %v2127_v48 = vpop.f32.mrf.mxu1 }
 0x110   :  { %v3956_v47 = vld [vmem:[%s5792_s0 + $0x510] ss:$28 sps:$4 sm:$0xff]   ;;  %v3959_v48 = vld [vmem:[%s5792_s0 + $0x198] ss:$28 sps:$4 sm:$0xff]  }
 0x111   :  { %v4671_v49 = vpop.f32.mrf.mxu0  ;;  %v4673_v50 = vpop.f32.mrf.mxu1  ;;  %2354 = vmatmul.mubr.bf16.gmra.mxu1 %v3930_v43  ;;  %2515 = vmatmul.mubr.bf16.gmra.mxu0 %v3931_v44 }
 0x112   :  { %5815 = vst [vmem:[#allocation5_spill] sm:$0xff] %v4673_v50  ;;  %2361 = vmatprep.mubr.bf16.mxu1 %v3932_v45  ;;  %2522 = vmatprep.mubr.bf16.mxu0 %v3934_v46 }
 0x113   :  { %v1940_v51 = vpop.f32.mrf.mxu0  ;;  %v2132_v52 = vpop.f32.mrf.mxu1 }
 0x114   :  { %v3964_v51 = vld [vmem:[%s5792_s0 + $0x54c] ss:$28 sps:$4 sm:$0xff]   ;;  %v3967_v52 = vld [vmem:[%s5792_s0 + $0x1d4] ss:$28 sps:$4 sm:$0xff]  }
 0x115   :  { %v4675_v53 = vpop.f32.mrf.mxu0  ;;  %v4677_v54 = vpop.f32.mrf.mxu1 }
 0x116   :  { %5816 = vst [vmem:[#allocation6_spill] sm:$0xff] %v4677_v54 }
 0x117   :  { %v1943_v59 = vpop.f32.mrf.mxu0  ;;  %v2135_v60 = vpop.f32.mrf.mxu1 }
 0x119   :  { %v4691_v61 = vpop.f32.mrf.mxu0  ;;  %v4693_v62 = vpop.f32.mrf.mxu1  ;;  %2362 = vmatmul.mubr.bf16.gmra.mxu1 %v3936_v55  ;;  %2523 = vmatmul.mubr.bf16.gmra.mxu0 %v3937_v56 }
 0x11a   :  { %5817 = vst [vmem:[#allocation7_spill] sm:$0xff] %v4693_v62  ;;  %2369 = vmatprep.mubr.bf16.mxu1 %v3940_v57  ;;  %2530 = vmatprep.mubr.bf16.mxu0 %v3943_v58 }
 0x11b   :  { %v1948_v63 = vpop.f32.mrf.mxu0  ;;  %v2140_v1 = vpop.f32.mrf.mxu1 }
 0x11d   :  { %v4695_v2 = vpop.f32.mrf.mxu0  ;;  %v4697_v3 = vpop.f32.mrf.mxu1 }
 0x11e   :  { %5818 = vst [vmem:[#allocation8_spill] sm:$0xff] %v4697_v3 }
 0x11f   :  { %v1951_v8 = vpop.f32.mrf.mxu0  ;;  %v2143_v9 = vpop.f32.mrf.mxu1 }
 0x121   :  { %v4711_v10 = vpop.f32.mrf.mxu0  ;;  %v4713_v11 = vpop.f32.mrf.mxu1  ;;  %2370 = vmatmul.mubr.bf16.gmra.mxu1 %v3938_v4  ;;  %2531 = vmatmul.mubr.bf16.gmra.mxu0 %v3941_v5  ;;  %v3962_v4 = vld [vmem:[%s5792_s0 + $0x548] ss:$28 sps:$4 sm:$0xff]   ;;  %v3965_v5 = vld [vmem:[%s5792_s0 + $0x1d0] ss:$28 sps:$4 sm:$0xff]  }
 0x122   :  { %5819 = vst [vmem:[#allocation9_spill] sm:$0xff] %v4713_v11  ;;  %2377 = vmatprep.mubr.bf16.mxu1 %v3946_v6  ;;  %2538 = vmatprep.mubr.bf16.mxu0 %v3949_v7  ;;  %v3970_v6 = vld [vmem:[%s5792_s0 + $0x584] ss:$28 sps:$4 sm:$0xff]   ;;  %v3973_v7 = vld [vmem:[%s5792_s0 + $0x20c] ss:$28 sps:$4 sm:$0xff]  }
 0x123   :  { %v1956_v12 = vpop.f32.mrf.mxu0  ;;  %v2148_v13 = vpop.f32.mrf.mxu1 }
 0x125   :  { %v4715_v14 = vpop.f32.mrf.mxu0  ;;  %v4717_v15 = vpop.f32.mrf.mxu1 }
 0x126   :  { %5820 = vst [vmem:[#allocation10_spill] sm:$0xff] %v4717_v15 }
 0x127   :  { %v1959_v20 = vpop.f32.mrf.mxu0  ;;  %v2151_v21 = vpop.f32.mrf.mxu1 }
 0x128   :  { %v3968_v21 = vld [vmem:[%s5792_s0 + $0x580] ss:$28 sps:$4 sm:$0xff]  }
 0x129   :  { %v4731_v22 = vpop.f32.mrf.mxu0  ;;  %v4733_v23 = vpop.f32.mrf.mxu1  ;;  %2378 = vmatmul.mubr.bf16.gmra.mxu1 %v3944_v16  ;;  %2539 = vmatmul.mubr.bf16.gmra.mxu0 %v3947_v17 }
 0x12a   :  { %5821 = vst [vmem:[#allocation11_spill] sm:$0xff] %v4733_v23  ;;  %2385 = vmatprep.mubr.bf16.mxu1 %v3952_v18  ;;  %2546 = vmatprep.mubr.bf16.mxu0 %v3955_v19 }
 0x12b   :  { %v1964_v24 = vpop.f32.mrf.mxu0  ;;  %v2156_v25 = vpop.f32.mrf.mxu1 }
 0x12c   :  { %v3971_v24 = vld [vmem:[%s5792_s0 + $0x208] ss:$28 sps:$4 sm:$0xff]  }
 0x12d   :  { %v4735_v28 = vpop.f32.mrf.mxu0  ;;  %v4737_v29 = vpop.f32.mrf.mxu1 }
 0x12e   :  { %5822 = vst [vmem:[#allocation12_spill] sm:$0xff] %v4737_v29 }
 0x12f   :  { %v1967_v35 = vpop.f32.mrf.mxu0  ;;  %v2159_v36 = vpop.f32.mrf.mxu1 }
 0x131   :  { %v4751_v39 = vpop.f32.mrf.mxu0  ;;  %v4753_v40 = vpop.f32.mrf.mxu1  ;;  %2386 = vmatmul.mubr.bf16.gmra.mxu1 %v3950_v32  ;;  %2547 = vmatmul.mubr.bf16.gmra.mxu0 %v3953_v33  ;;  %v3979_v32 = vld [vmem:[%s5792_s0 + $0x244] ss:$28 sps:$4 sm:$0xff]  }
 0x132   :  { %5823 = vst [vmem:[#allocation13_spill] sm:$0xff] %v4753_v40  ;;  %2393 = vmatprep.mubr.bf16.mxu1 %v3958_v34  ;;  %2554 = vmatprep.mubr.bf16.mxu0 %v3961_v0 }
 0x133   :  { %v1972_v43 = vpop.f32.mrf.mxu0  ;;  %v2164_v44 = vpop.f32.mrf.mxu1 }
 0x135   :  { %v4755_v45 = vpop.f32.mrf.mxu0  ;;  %v4757_v46 = vpop.f32.mrf.mxu1 }
 0x136   :  { %5824 = vst [vmem:[#allocation14_spill] sm:$0xff] %v4757_v46 }
 0x137   :  { %v1975_v55 = vpop.f32.mrf.mxu0  ;;  %v2167_v56 = vpop.f32.mrf.mxu1 }
 0x138   :  { %v3985_v55 = vld [vmem:[%s5792_s0 + $0x27c] ss:$28 sps:$4 sm:$0xff]  }
 0x139   :  { %v4771_v57 = vpop.f32.mrf.mxu0  ;;  %v4773_v58 = vpop.f32.mrf.mxu1  ;;  %2394 = vmatmul.mubr.bf16.gmra.mxu1 %v3956_v47  ;;  %2555 = vmatmul.mubr.bf16.gmra.mxu0 %v3959_v48  ;;  %v3974_v48 = vld [vmem:[%s5792_s0 + $0x5b8] ss:$28 sps:$4 sm:$0xff]  }
 0x13a   :  { %5825 = vst [vmem:[#allocation15_spill] sm:$0xff] %v4773_v58  ;;  %2401 = vmatprep.mubr.bf16.mxu1 %v3964_v51  ;;  %2562 = vmatprep.mubr.bf16.mxu0 %v3967_v52  ;;  %v3977_v51 = vld [vmem:[%s5792_s0 + $0x240] ss:$28 sps:$4 sm:$0xff]  }
 0x13b   :  { %v1980_v59 = vpop.f32.mrf.mxu0  ;;  %v2172_v60 = vpop.f32.mrf.mxu1 }
 0x13d   :  { %v4775_v63 = vpop.f32.mrf.mxu0  ;;  %v4777_v1 = vpop.f32.mrf.mxu1 }
 0x13e   :  { %5826 = vst [vmem:[#allocation16_spill] sm:$0xff] %v4777_v1 }
 0x13f   :  { %v1983_v8 = vpop.f32.mrf.mxu0  ;;  %v2175_v9 = vpop.f32.mrf.mxu1 }
 0x140   :  { %v3980_v9 = vld [vmem:[%s5792_s0 + $0x5f0] ss:$28 sps:$4 sm:$0xff]  }
 0x141   :  { %v4791_v12 = vpop.f32.mrf.mxu0  ;;  %v2211_v13 = vpop.f32.mrf.mxu1  ;;  %2402 = vmatmul.mubr.bf16.gmra.mxu1 %v3962_v4  ;;  %2563 = vmatmul.mubr.bf16.gmra.mxu0 %v3965_v5 }
 0x142   :  { %v4794_v16 = vadd.f32 %v2211_v13, %v4631_v26  ;;  %2409 = vmatprep.mubr.bf16.mxu1 %v3970_v6  ;;  %2570 = vmatprep.mubr.bf16.mxu0 %v3973_v7  ;;  %v3976_v26 = vld [vmem:[%s5792_s0 + $0x5bc] ss:$28 sps:$4 sm:$0xff]  }
 0x143   :  { %v1988_v17 = vpop.f32.mrf.mxu0  ;;  %v2213_v18 = vpop.f32.mrf.mxu1  ;;  %v3983_v13 = vld [vmem:[%s5792_s0 + $0x278] ss:$28 sps:$4 sm:$0xff]  }
 0x144   :  { %v3991_v18 = vld [vmem:[%s5792_s0 + $0x2b4] ss:$28 sps:$4 sm:$0xff]  }
 0x145   :  { %v4796_v19 = vpop.f32.mrf.mxu0  ;;  %v2214_v20 = vpop.f32.mrf.mxu1 }
 0x146   :  { %v4805_v25 = vadd.f32 %v2214_v20, %v4635_v30 }
 0x147   :  { %v1991_v33 = vpop.f32.mrf.mxu0  ;;  %v2216_v34 = vpop.f32.mrf.mxu1 }
 0x149   :  { %v4813_v0 = vpop.f32.mrf.mxu0  ;;  %v2219_v35 = vpop.f32.mrf.mxu1  ;;  %2410 = vmatmul.mubr.bf16.gmra.mxu1 %v3968_v21  ;;  %2571 = vmatmul.mubr.bf16.gmra.mxu0 %v3971_v24 }
 0x14a   :  { %v4816_v36 = vadd.f32 %v2219_v35, %v4651_v37  ;;  %2417 = vmatprep.mubr.bf16.mxu1 %v3976_v26  ;;  %2578 = vmatprep.mubr.bf16.mxu0 %v3979_v32  ;;  %v3982_v37 = vld [vmem:[%s5792_s0 + $0x5f4] ss:$28 sps:$4 sm:$0xff]  }
 0x14b   :  { %v1996_v30 = vpop.f32.mrf.mxu0  ;;  %v2221_v43 = vpop.f32.mrf.mxu1 }
 0x14c   :  { %v3986_v30 = vld [vmem:[%s5792_s0 + $0x628] ss:$28 sps:$4 sm:$0xff]   ;;  %v3989_v43 = vld [vmem:[%s5792_s0 + $0x2b0] ss:$28 sps:$4 sm:$0xff]  }
 0x14d   :  { %v4818_v44 = vpop.f32.mrf.mxu0  ;;  %v2222_v47 = vpop.f32.mrf.mxu1 }
 0x14e   :  { %v4827_v52 = vadd.f32 %v2222_v47, %v4655_v41 }
 0x14f   :  { %v1999_v56 = vpop.f32.mrf.mxu0  ;;  %v2224_v59 = vpop.f32.mrf.mxu1 }
 0x151   :  { %v4835_v60 = vpop.f32.mrf.mxu0  ;;  %v2227_v4 = vpop.f32.mrf.mxu1  ;;  %2418 = vmatmul.mubr.bf16.gmra.mxu1 %v3974_v48  ;;  %2579 = vmatmul.mubr.bf16.gmra.mxu0 %v3977_v51  ;;  %v3997_v48 = vld [vmem:[%s5792_s0 + $0x2ec] ss:$28 sps:$4 sm:$0xff]  }
 0x152   :  { %v4838_v5 = vadd.f32 %v2227_v4, %v4671_v49  ;;  %2425 = vmatprep.mubr.bf16.mxu1 %v3982_v37  ;;  %2586 = vmatprep.mubr.bf16.mxu0 %v3985_v55  ;;  %v3988_v49 = vld [vmem:[%s5792_s0 + $0x62c] ss:$28 sps:$4 sm:$0xff]  }
 0x153   :  { %v2004_v41 = vpop.f32.mrf.mxu0  ;;  %v2229_v6 = vpop.f32.mrf.mxu1 }
 0x155   :  { %v4840_v7 = vpop.f32.mrf.mxu0  ;;  %v2230_v8 = vpop.f32.mrf.mxu1 }
 0x156   :  { %v4849_v17 = vadd.f32 %v2230_v8, %v4675_v53  ;;  %v3992_v8 = vld [vmem:[%s5792_s0 + $0x660] ss:$28 sps:$4 sm:$0xff]  }
 0x157   :  { %v2007_v20 = vpop.f32.mrf.mxu0  ;;  %v2232_v21 = vpop.f32.mrf.mxu1 }
 0x159   :  { %v4857_v24 = vpop.f32.mrf.mxu0  ;;  %v2235_v26 = vpop.f32.mrf.mxu1  ;;  %2426 = vmatmul.mubr.bf16.gmra.mxu1 %v3980_v9  ;;  %2587 = vmatmul.mubr.bf16.gmra.mxu0 %v3983_v13  ;;  %v3995_v9 = vld [vmem:[%s5792_s0 + $0x2e8] ss:$28 sps:$4 sm:$0xff]  }
 0x15a   :  { %v4860_v32 = vadd.f32 %v2235_v26, %v4691_v61  ;;  %2433 = vmatprep.mubr.bf16.mxu1 %v3988_v49  ;;  %2594 = vmatprep.mubr.bf16.mxu0 %v3991_v18  ;;  %v3994_v61 = vld [vmem:[%s5792_s0 + $0x664] ss:$28 sps:$4 sm:$0xff]  }
 0x15b   :  { %v2012_v53 = vpop.f32.mrf.mxu0  ;;  %v2237_v33 = vpop.f32.mrf.mxu1  ;;  %v4003_v49 = vld [vmem:[%s5792_s0 + $0x324] ss:$28 sps:$4 sm:$0xff]  }
 0x15d   :  { %v4862_v34 = vpop.f32.mrf.mxu0  ;;  %v2238_v35 = vpop.f32.mrf.mxu1 }
 0x15e   :  { %v4871_v47 = vadd.f32 %v2238_v35, %v4695_v2 }
 0x15f   :  { %v2015_v51 = vpop.f32.mrf.mxu0  ;;  %v2240_v37 = vpop.f32.mrf.mxu1 }
 0x160   :  { %v4009_v51 = vld [vmem:[%s5792_s0 + $0x35c] ss:$28 sps:$4 sm:$0xff]  }
 0x161   :  { %v4879_v55 = vpop.f32.mrf.mxu0  ;;  %v2243_v56 = vpop.f32.mrf.mxu1  ;;  %2434 = vmatmul.mubr.bf16.gmra.mxu1 %v3986_v30  ;;  %2595 = vmatmul.mubr.bf16.gmra.mxu0 %v3989_v43  ;;  %v3998_v43 = vld [vmem:[%s5792_s0 + $0x698] ss:$28 sps:$4 sm:$0xff]  }
 0x162   :  { %v4882_v59 = vadd.f32 %v2243_v56, %v4711_v10  ;;  %2441 = vmatprep.mubr.bf16.mxu1 %v3994_v61  ;;  %2602 = vmatprep.mubr.bf16.mxu0 %v3997_v48  ;;  %v4000_v10 = vld [vmem:[%s5792_s0 + $0x69c] ss:$28 sps:$4 sm:$0xff]  }
 0x163   :  { %v2020_v2 = vpop.f32.mrf.mxu0  ;;  %v2245_v4 = vpop.f32.mrf.mxu1  ;;  %v4001_v61 = vld [vmem:[%s5792_s0 + $0x320] ss:$28 sps:$4 sm:$0xff]  }
 0x165   :  { %v4884_v41 = vpop.f32.mrf.mxu0  ;;  %v2246_v6 = vpop.f32.mrf.mxu1 }
 0x166   :  { %v4893_v13 = vadd.f32 %v2246_v6, %v4715_v14 }
 0x167   :  { %v2023_v18 = vpop.f32.mrf.mxu0  ;;  %v2248_v20 = vpop.f32.mrf.mxu1 }
 0x168   :  { %v4007_v18 = vld [vmem:[%s5792_s0 + $0x358] ss:$28 sps:$4 sm:$0xff]  }
 0x169   :  { %v4901_v21 = vpop.f32.mrf.mxu0  ;;  %v2251_v26 = vpop.f32.mrf.mxu1  ;;  %2442 = vmatmul.mubr.bf16.gmra.mxu1 %v3992_v8  ;;  %2603 = vmatmul.mubr.bf16.gmra.mxu0 %v3995_v9 }
 0x16a   :  { %v4904_v53 = vadd.f32 %v2251_v26, %v4731_v22  ;;  %2449 = vmatprep.mubr.bf16.mxu1 %v4000_v10  ;;  %2610 = vmatprep.mubr.bf16.mxu0 %v4003_v49  ;;  %v4006_v22 = vld [vmem:[%s5792_s0 + $0x6d4] ss:$28 sps:$4 sm:$0xff]  }
 0x16b   :  { %v2028_v14 = vpop.f32.mrf.mxu0  ;;  %v2253_v33 = vpop.f32.mrf.mxu1  ;;  %v4004_v49 = vld [vmem:[%s5792_s0 + $0x6d0] ss:$28 sps:$4 sm:$0xff]   ;;  %v4013_v26 = vld [vmem:[%s5792_s0 + $0x18] ss:$28 sps:$4 sm:$0xff]  }
 0x16d   :  { %v4906_v35 = vpop.f32.mrf.mxu0  ;;  %v2254_v30 = vpop.f32.mrf.mxu1 }
 0x16e   :  { %v4915_v48 = vadd.f32 %v2254_v30, %v4735_v28 }
 0x16f   :  { %v2031_v37 = vpop.f32.mrf.mxu0  ;;  %v2256_v56 = vpop.f32.mrf.mxu1 }
 0x170   :  { %v4010_v56 = vld [vmem:[%s5792_s0 + $0x390] ss:$28 sps:$4 sm:$0xff]  }
 0x171   :  { %v4923_v2 = vpop.f32.mrf.mxu0  ;;  %v2259_v4 = vpop.f32.mrf.mxu1  ;;  %2450 = vmatmul.mubr.bf16.gmra.mxu1 %v3998_v43  ;;  %2611 = vmatmul.mubr.bf16.gmra.mxu0 %v4001_v61 }
 0x172   :  { %v4926_v6 = vadd.f32 %v2259_v4, %v4751_v39  ;;  %2457 = vmatprep.mubr.bf16.mxu1 %v4006_v22  ;;  %2618 = vmatprep.mubr.bf16.mxu0 %v4009_v51  ;;  %v4012_v39 = vld [vmem:[%s5792_s0 + $0x394] ss:$28 sps:$4 sm:$0xff]  }
 0x173   :  { %v2036_v28 = vpop.f32.mrf.mxu0  ;;  %v2261_v8 = vpop.f32.mrf.mxu1  ;;  %v4014_v4 = vld [vmem:[%s5792_s0 + $0x50] ss:$28 sps:$4 sm:$0xff]  }
 0x174   :  { %v4018_v8 = vld [vmem:[%s5792_s0 + $0x88] ss:$28 sps:$4 sm:$0xff]  }
 0x175   :  { %v4928_v9 = vpop.f32.mrf.mxu0  ;;  %v2262_v10 = vpop.f32.mrf.mxu1 }
 0x176   :  { %v4937_v20 = vadd.f32 %v2262_v10, %v4755_v45 }
 0x177   :  { %v2039_v14 = vpop.f32.mrf.mxu0  ;;  %v2264_v33 = vpop.f32.mrf.mxu1 }
 0x179   :  { %v4945_v30 = vpop.f32.mrf.mxu0  ;;  %v2267_v43 = vpop.f32.mrf.mxu1  ;;  %2458 = vmatmul.mubr.bf16.gmra.mxu1 %v4004_v49  ;;  %2619 = vmatmul.mubr.bf16.gmra.mxu0 %v4007_v18 }
 0x17a   :  { %v4948_v61 = vadd.f32 %v2267_v43, %v4771_v57  ;;  %2626 = vmatprep.mubr.bf16.mxu0 %v4012_v39  ;;  %3623 = vmatprep.mubr.msk.bf16.mxu1 %vm1791_vm0, %v4013_v26  ;;  %v4017_v57 = vld [vmem:[%s5792_s0 + $0x3cc] ss:$28 sps:$4 sm:$0xff]  }
 0x17b   :  { %v2044_v45 = vpop.f32.mrf.mxu0  ;;  %v2269_v22 = vpop.f32.mrf.mxu1 }
 0x17c   :  { %v4015_v45 = vld [vmem:[%s5792_s0 + $0x3c8] ss:$28 sps:$4 sm:$0xff]   ;;  %v4019_v22 = vld [vmem:[%s5792_s0 + $0xc0] ss:$28 sps:$4 sm:$0xff]  }
 0x17d   :  { %v4951_v51 = vpop.f32.mrf.mxu0  ;;  %v2270_v37 = vpop.f32.mrf.mxu1 }
 0x17e   :  { %v4960_v28 = vadd.f32 %v2270_v37, %v4775_v63 }
 0x17f   :  { %v2047_v10 = vpop.f32.mrf.mxu0  ;;  %v2272_v49 = vpop.f32.mrf.mxu1 }
 0x181   :  { %v4968_v18 = vpop.f32.mrf.mxu0  ;;  %v2275_v39 = vpop.f32.mrf.mxu1  ;;  %2627 = vmatmul.mubr.bf16.gmra.mxu0 %v4010_v56  ;;  %3624 = vmatmul.mubr.msk.bf16.vlgmr.msra.gmra.mxu1 %vm1791_vm0, %v4014_v4  ;;  %v4023_v56 = vld [vmem:[%s5792_s0 + $0xf8] ss:$28 sps:$4 sm:$0xff]  }
 0x182   :  { %v4972_v26 = vadd.f32 %v2275_v39, %v4791_v12  ;;  %2634 = vmatprep.mubr.bf16.mxu0 %v4017_v57  ;;  %3627 = vmatprep.mubr.msk.bf16.mxu1 %vm1791_vm0, %v4018_v8  ;;  %v4022_v12 = vld [vmem:[%s5792_s0 + $0x404] ss:$28 sps:$4 sm:$0xff]  }
 0x183   :  { %v2052_v63 = vpop.f32.mrf.mxu0  ;;  %v2277_v14 = vpop.f32.mrf.mxu1 }
 0x185   :  { %v4975_v33 = vpop.f32.mrf.mxu0  ;;  %v2278_v43 = vpop.f32.mrf.mxu1 }
 0x186   :  { %v4984_v37 = vadd.f32 %v2278_v43, %v4796_v19  ;;  %v4020_v43 = vld [vmem:[%s5792_s0 + $0x400] ss:$28 sps:$4 sm:$0xff]  }
 0x187   :  { %v2055_v4 = vpop.f32.mrf.mxu0  ;;  %v2280_v57 = vpop.f32.mrf.mxu1 }
 0x189   :  { %v4992_v8 = vpop.f32.mrf.mxu0  ;;  %v2283_v10 = vpop.f32.mrf.mxu1  ;;  %2635 = vmatmul.mubr.bf16.gmra.mxu0 %v4015_v45  ;;  %3628 = vmatmul.mubr.msk.bf16.gmra.mxu1 %vm1791_vm0, %v4019_v22  ;;  %v4024_v45 = vld [vmem:[%s5792_s0 + $0x130] ss:$28 sps:$4 sm:$0xff]  }
 0x18a   :  { %v4996_v49 = vadd.f32 %v2283_v10, %v4813_v0  ;;  %2642 = vmatprep.mubr.bf16.mxu0 %v4022_v12  ;;  %3631 = vmatprep.mubr.msk.bf16.mxu1 %vm1791_vm0, %v4023_v56  ;;  %v4027_v0 = vld [vmem:[%s5792_s0 + $0x43c] ss:$28 sps:$4 sm:$0xff]   ;;  %v4028_v12 = vld [vmem:[%s5792_s0 + $0x168] ss:$28 sps:$4 sm:$0xff]  }
 0x18b   :  { %v2060_v19 = vpop.f32.mrf.mxu0  ;;  %v2285_v39 = vpop.f32.mrf.mxu1 }
 0x18d   :  { %v4999_v63 = vpop.f32.mrf.mxu0  ;;  %v2286_v14 = vpop.f32.mrf.mxu1 }
 0x18e   :  { %v5008_v22 = vadd.f32 %v2286_v14, %v4818_v44 }
 0x18f   :  { %v2063_v56 = vpop.f32.mrf.mxu0  ;;  %v2288_v4 = vpop.f32.mrf.mxu1 }
 0x190   :  { %v4025_v56 = vld [vmem:[%s5792_s0 + $0x438] ss:$28 sps:$4 sm:$0xff]  }
 0x191   :  { %v5016_v57 = vpop.f32.mrf.mxu0  ;;  %v2291_v10 = vpop.f32.mrf.mxu1  ;;  %2643 = vmatmul.mubr.bf16.gmra.mxu0 %v4020_v43  ;;  %3632 = vmatmul.mubr.msk.bf16.gmra.mxu1 %vm1791_vm0, %v4024_v45  ;;  %v4029_v43 = vld [vmem:[%s5792_s0 + $0x1a0] ss:$28 sps:$4 sm:$0xff]  }
 0x192   :  { %v5020_v19 = vadd.f32 %v2291_v10, %v4835_v60  ;;  %2650 = vmatprep.mubr.bf16.mxu0 %v4027_v0  ;;  %3635 = vmatprep.mubr.msk.bf16.mxu1 %vm1791_vm0, %v4028_v12  ;;  %v4032_v60 = vld [vmem:[%s5792_s0 + $0x474] ss:$28 sps:$4 sm:$0xff]  }
 0x193   :  { %v2068_v44 = vpop.f32.mrf.mxu0  ;;  %v2293_v39 = vpop.f32.mrf.mxu1  ;;  %v4033_v0 = vld [vmem:[%s5792_s0 + $0x1d8] ss:$28 sps:$4 sm:$0xff]  }
 0x195   :  { %v5023_v14 = vpop.f32.mrf.mxu0  ;;  %v2294_v46 = vpop.f32.mrf.mxu1 }
 0x196   :  { %v5032_v45 = vadd.f32 %v2294_v46, %v4840_v7 }
 0x197   :  { %v2071_v12 = vpop.f32.mrf.mxu0  ;;  %v2296_v4 = vpop.f32.mrf.mxu1 }
 0x198   :  { %v4030_v12 = vld [vmem:[%s5792_s0 + $0x470] ss:$28 sps:$4 sm:$0xff]  }
 0x199   :  { %v5040_v10 = vpop.f32.mrf.mxu0  ;;  %v2299_v44 = vpop.f32.mrf.mxu1  ;;  %2651 = vmatmul.mubr.bf16.gmra.mxu0 %v4025_v56  ;;  %3636 = vmatmul.mubr.msk.bf16.gmra.mxu1 %vm1791_vm0, %v4029_v43  ;;  %v4034_v56 = vld [vmem:[%s5792_s0 + $0x210] ss:$28 sps:$4 sm:$0xff]  }
 0x19a   :  { %v5044_v39 = vadd.f32 %v2299_v44, %v4857_v24  ;;  %2658 = vmatprep.mubr.bf16.mxu0 %v4032_v60  ;;  %3639 = vmatprep.mubr.msk.bf16.mxu1 %vm1791_vm0, %v4033_v0  ;;  %v4037_v24 = vld [vmem:[%s5792_s0 + $0x4ac] ss:$28 sps:$4 sm:$0xff]  }
 0x19b   :  { %v2076_v46 = vpop.f32.mrf.mxu0  ;;  %v2301_v7 = vpop.f32.mrf.mxu1  ;;  %v4038_v60 = vld [vmem:[%s5792_s0 + $0x248] ss:$28 sps:$4 sm:$0xff]  }
 0x19d   :  { %v5047_v1 = vpop.f32.mrf.mxu0  ;;  %v2302_v58 = vpop.f32.mrf.mxu1 }
 0x19e   :  { %v5056_v43 = vadd.f32 %v2302_v58, %v4862_v34 }
 0x19f   :  { %v2079_v0 = vpop.f32.mrf.mxu0  ;;  %v2304_v4 = vpop.f32.mrf.mxu1 }
 0x1a0   :  { %v4035_v0 = vld [vmem:[%s5792_s0 + $0x4a8] ss:$28 sps:$4 sm:$0xff]  }
 0x1a1   :  { %v5064_v44 = vpop.f32.mrf.mxu0  ;;  %v2307_v46 = vpop.f32.mrf.mxu1  ;;  %2659 = vmatmul.mubr.bf16.gmra.mxu0 %v4030_v12  ;;  %3640 = vmatmul.mubr.msk.bf16.gmra.mxu1 %vm1791_vm0, %v4034_v56  ;;  %v4039_v12 = vld [vmem:[%s5792_s0 + $0x280] ss:$28 sps:$4 sm:$0xff]  }
 0x1a2   :  { %v5068_v7 = vadd.f32 %v2307_v46, %v4879_v55  ;;  %2666 = vmatprep.mubr.bf16.mxu0 %v4037_v24  ;;  %3643 = vmatprep.mubr.msk.bf16.mxu1 %vm1791_vm0, %v4038_v60  ;;  %v4042_v55 = vld [vmem:[%s5792_s0 + $0x4e4] ss:$28 sps:$4 sm:$0xff]   ;;  %v4043_v24 = vld [vmem:[%s5792_s0 + $0x2b8] ss:$28 sps:$4 sm:$0xff]  }
 0x1a3   :  { %v2084_v58 = vpop.f32.mrf.mxu0  ;;  %v2309_v34 = vpop.f32.mrf.mxu1 }
 0x1a5   :  { %v5071_v40 = vpop.f32.mrf.mxu0  ;;  %v2310_v29 = vpop.f32.mrf.mxu1 }
 0x1a6   :  { %v5080_v56 = vadd.f32 %v2310_v29, %v4884_v41 }
 0x1a7   :  { %v2087_v60 = vpop.f32.mrf.mxu0  ;;  %v2312_v4 = vpop.f32.mrf.mxu1 }
 0x1a8   :  { %v4040_v60 = vld [vmem:[%s5792_s0 + $0x4e0] ss:$28 sps:$4 sm:$0xff]  }
 0x1a9   :  { %v5088_v46 = vpop.f32.mrf.mxu0  ;;  %v2315_v58 = vpop.f32.mrf.mxu1  ;;  %2667 = vmatmul.mubr.bf16.gmra.mxu0 %v4035_v0  ;;  %3644 = vmatmul.mubr.msk.bf16.gmra.mxu1 %vm1791_vm0, %v4039_v12  ;;  %v4044_v0 = vld [vmem:[%s5792_s0 + $0x2f0] ss:$28 sps:$4 sm:$0xff]  }
 0x1aa   :  { %v5092_v34 = vadd.f32 %v2315_v58, %v4901_v21  ;;  %2674 = vmatprep.mubr.bf16.mxu0 %v4042_v55  ;;  %3647 = vmatprep.mubr.msk.bf16.mxu1 %vm1791_vm0, %v4043_v24  ;;  %v4047_v21 = vld [vmem:[%s5792_s0 + $0x51c] ss:$28 sps:$4 sm:$0xff]   ;;  %v4048_v55 = vld [vmem:[%s5792_s0 + $0x328] ss:$28 sps:$4 sm:$0xff]  }
 0x1ab   :  { %v2092_v29 = vpop.f32.mrf.mxu0  ;;  %v2317_v41 = vpop.f32.mrf.mxu1 }
 0x1ad   :  { %v5095_v15 = vpop.f32.mrf.mxu0  ;;  %v2318_v23 = vpop.f32.mrf.mxu1 }
 0x1ae   :  { %v5104_v12 = vadd.f32 %v2318_v23, %v4906_v35 }
 0x1af   :  { %v2095_v24 = vpop.f32.mrf.mxu0  ;;  %v2320_v4 = vpop.f32.mrf.mxu1 }
 0x1b0   :  { %v4045_v24 = vld [vmem:[%s5792_s0 + $0x518] ss:$28 sps:$4 sm:$0xff]  }
 0x1b1   :  { %v5112_v58 = vpop.f32.mrf.mxu0  ;;  %v2323_v29 = vpop.f32.mrf.mxu1  ;;  %2675 = vmatmul.mubr.bf16.gmra.mxu0 %v4040_v60  ;;  %3648 = vmatmul.mubr.msk.bf16.gmra.mxu1 %vm1791_vm0, %v4044_v0  ;;  %v4049_v60 = vld [vmem:[%s5792_s0 + $0x360] ss:$28 sps:$4 sm:$0xff]  }
 0x1b2   :  { %v5116_v41 = vadd.f32 %v2323_v29, %v4923_v2  ;;  %2682 = vmatprep.mubr.bf16.mxu0 %v4047_v21  ;;  %3651 = vmatprep.mubr.msk.bf16.mxu1 %vm1791_vm0, %v4048_v55  ;;  %v4052_v2 = vld [vmem:[%s5792_s0 + $0x554] ss:$28 sps:$4 sm:$0xff]  }
 0x1b3   :  { %v2100_v23 = vpop.f32.mrf.mxu0  ;;  %v2325_v35 = vpop.f32.mrf.mxu1  ;;  %v4053_v21 = vld [vmem:[%s5792_s0 + $0x398] ss:$28 sps:$4 sm:$0xff]  }
 0x1b5   :  { %v5119_v11 = vpop.f32.mrf.mxu0  ;;  %v2326_v3 = vpop.f32.mrf.mxu1 }
 0x1b6   :  { %v5128_v0 = vadd.f32 %v2326_v3, %v4928_v9 }
 0x1b7   :  { %v2103_v55 = vpop.f32.mrf.mxu0  ;;  %v2328_v4 = vpop.f32.mrf.mxu1 }
 0x1b8   :  { %v4050_v55 = vld [vmem:[%s5792_s0 + $0x550] ss:$28 sps:$4 sm:$0xff]  }
 0x1b9   :  { %v5136_v29 = vpop.f32.mrf.mxu0  ;;  %v2331_v23 = vpop.f32.mrf.mxu1  ;;  %2683 = vmatmul.mubr.bf16.gmra.mxu0 %v4045_v24  ;;  %3652 = vmatmul.mubr.msk.bf16.gmra.mxu1 %vm1791_vm0, %v4049_v60  ;;  %v4054_v24 = vld [vmem:[%s5792_s0 + $0x3d0] ss:$28 sps:$4 sm:$0xff]  }
 0x1ba   :  { %v5140_v35 = vadd.f32 %v2331_v23, %v4945_v30  ;;  %2690 = vmatprep.mubr.bf16.mxu0 %v4052_v2  ;;  %3655 = vmatprep.mubr.msk.bf16.mxu1 %vm1791_vm0, %v4053_v21  ;;  %v4057_v30 = vld [vmem:[%s5792_s0 + $0x58c] ss:$28 sps:$4 sm:$0xff]  }
 0x1bb   :  { %v2108_v3 = vpop.f32.mrf.mxu0  ;;  %v2333_v9 = vpop.f32.mrf.mxu1  ;;  %v4058_v2 = vld [vmem:[%s5792_s0 + $0x408] ss:$28 sps:$4 sm:$0xff]  }
 0x1bd   :  { %v5143_v54 = vpop.f32.mrf.mxu0  ;;  %v2334_v62 = vpop.f32.mrf.mxu1 }
 0x1be   :  { %v5152_v60 = vadd.f32 %v2334_v62, %v4951_v51 }
 0x1bf   :  { %v2111_v21 = vpop.f32.mrf.mxu0  ;;  %v2336_v4 = vpop.f32.mrf.mxu1 }
 0x1c0   :  { %v4055_v21 = vld [vmem:[%s5792_s0 + $0x588] ss:$28 sps:$4 sm:$0xff]  }
 0x1c1   :  { %v2339_v23 = vpop.f32.mrf.mxu1  ;;  %v2500_v3 = vpop.f32.mrf.mxu0  ;;  %2691 = vmatmul.mubr.bf16.gmra.mxu0 %v4050_v55  ;;  %3656 = vmatmul.mubr.msk.bf16.gmra.mxu1 %vm1791_vm0, %v4054_v24  ;;  %v4059_v55 = vld [vmem:[%s5792_s0 + $0x440] ss:$28 sps:$4 sm:$0xff]   ;;  %v4063_v24 = vld [vmem:[%s5792_s0 + $0x478] ss:$28 sps:$4 sm:$0xff]  }
 0x1c2   :  { %v5162_v9 = vadd.f32 %v2339_v23, %v4968_v18  ;;  %v5165_v62 = vadd.f32 %v2500_v3, %v4794_v16  ;;  %2698 = vmatprep.mubr.bf16.mxu0 %v4057_v30  ;;  %3659 = vmatprep.mubr.msk.bf16.mxu1 %vm1791_vm0, %v4058_v2 }
 0x1c3   :  { %v2341_v51 = vpop.f32.mrf.mxu1  ;;  %v2502_v50 = vpop.f32.mrf.mxu0 }
 0x1c4   :  { %v4062_v50 = vld [vmem:[%s5792_s0 + $0x5c4] ss:$28 sps:$4 sm:$0xff]  }
 0x1c5   :  { %v2342_v31 = vpop.f32.mrf.mxu1  ;;  %v2503_v42 = vpop.f32.mrf.mxu0 }
 0x1c6   :  { %v5175_v18 = vadd.f32 %v2342_v31, %v4975_v33  ;;  %v5178_v16 = vadd.f32 %v2503_v42, %v4805_v25 }
 0x1c7   :  { %v2344_v30 = vpop.f32.mrf.mxu1  ;;  %v2505_v2 = vpop.f32.mrf.mxu0 }
 0x1c8   :  { %v4060_v30 = vld [vmem:[%s5792_s0 + $0x5c0] ss:$28 sps:$4 sm:$0xff]  }
 0x1c9   :  { %v2347_v4 = vpop.f32.mrf.mxu1  ;;  %v2508_v23 = vpop.f32.mrf.mxu0  ;;  %2699 = vmatmul.mubr.bf16.gmra.mxu0 %v4055_v21  ;;  %3660 = vmatmul.mubr.msk.bf16.gmra.mxu1 %vm1791_vm0, %v4059_v55  ;;  %v4064_v21 = vld [vmem:[%s5792_s0 + $0x4b0] ss:$28 sps:$4 sm:$0xff]   ;;  %v4067_v55 = vld [vmem:[%s5792_s0 + $0x5fc] ss:$28 sps:$4 sm:$0xff]  }
 0x1ca   :  { %v5188_v31 = vadd.f32 %v2347_v4, %v4992_v8  ;;  %v5191_v42 = vadd.f32 %v2508_v23, %v4816_v36  ;;  %2706 = vmatprep.mubr.bf16.mxu0 %v4062_v50  ;;  %3663 = vmatprep.mubr.msk.bf16.mxu1 %vm1791_vm0, %v4063_v24  ;;  %v4068_v50 = vld [vmem:[%s5792_s0 + $0x4e8] ss:$28 sps:$4 sm:$0xff]  }
 0x1cb   :  { %v2349_v25 = vpop.f32.mrf.mxu1  ;;  %v2510_v33 = vpop.f32.mrf.mxu0 }
 0x1cd   :  { %v2350_v3 = vpop.f32.mrf.mxu1  ;;  %v2511_v51 = vpop.f32.mrf.mxu0 }
 0x1ce   :  { %v5201_v8 = vadd.f32 %v2350_v3, %v4999_v63  ;;  %v5204_v36 = vadd.f32 %v2511_v51, %v4827_v52 }
 0x1cf   :  { %v2352_v24 = vpop.f32.mrf.mxu1  ;;  %v2513_v2 = vpop.f32.mrf.mxu0 }
 0x1d0   :  { %v4065_v24 = vld [vmem:[%s5792_s0 + $0x5f8] ss:$28 sps:$4 sm:$0xff]  }
 0x1d1   :  { %v2355_v4 = vpop.f32.mrf.mxu1  ;;  %v2516_v23 = vpop.f32.mrf.mxu0  ;;  %2707 = vmatmul.mubr.bf16.gmra.mxu0 %v4060_v30  ;;  %3664 = vmatmul.mubr.msk.bf16.gmra.mxu1 %vm1791_vm0, %v4064_v21  ;;  %v4069_v30 = vld [vmem:[%s5792_s0 + $0x520] ss:$28 sps:$4 sm:$0xff]   ;;  %v4072_v21 = vld [vmem:[%s5792_s0 + $0x634] ss:$28 sps:$4 sm:$0xff]  }
 0x1d2   :  { %v5214_v63 = vadd.f32 %v2355_v4, %v5016_v57  ;;  %v5217_v52 = vadd.f32 %v2516_v23, %v4838_v5  ;;  %2714 = vmatprep.mubr.bf16.mxu0 %v4067_v55  ;;  %3667 = vmatprep.mubr.msk.bf16.mxu1 %vm1791_vm0, %v4068_v50  ;;  %v4073_v55 = vld [vmem:[%s5792_s0 + $0x558] ss:$28 sps:$4 sm:$0xff]  }
 0x1d3   :  { %v2357_v25 = vpop.f32.mrf.mxu1  ;;  %v2518_v33 = vpop.f32.mrf.mxu0 }
 0x1d5   :  { %v2358_v3 = vpop.f32.mrf.mxu1  ;;  %v2519_v51 = vpop.f32.mrf.mxu0 }
 0x1d6   :  { %v5227_v57 = vadd.f32 %v2358_v3, %v5023_v14  ;;  %v5230_v5 = vadd.f32 %v2519_v51, %v4849_v17 }
 0x1d7   :  { %v2360_v50 = vpop.f32.mrf.mxu1  ;;  %v2521_v2 = vpop.f32.mrf.mxu0 }
 0x1d8   :  { %v4070_v50 = vld [vmem:[%s5792_s0 + $0x630] ss:$28 sps:$4 sm:$0xff]  }
 0x1d9   :  { %v2363_v4 = vpop.f32.mrf.mxu1  ;;  %v2524_v23 = vpop.f32.mrf.mxu0  ;;  %2715 = vmatmul.mubr.bf16.gmra.mxu0 %v4065_v24  ;;  %3668 = vmatmul.mubr.msk.bf16.gmra.mxu1 %vm1791_vm0, %v4069_v30  ;;  %v4074_v24 = vld [vmem:[%s5792_s0 + $0x590] ss:$28 sps:$4 sm:$0xff]  }
 0x1da   :  { %v5240_v14 = vadd.f32 %v2363_v4, %v5040_v10  ;;  %v5243_v17 = vadd.f32 %v2524_v23, %v4860_v32  ;;  %2722 = vmatprep.mubr.bf16.mxu0 %v4072_v21  ;;  %3671 = vmatprep.mubr.msk.bf16.mxu1 %vm1791_vm0, %v4073_v55  ;;  %v4077_v30 = vld [vmem:[%s5792_s0 + $0x66c] ss:$28 sps:$4 sm:$0xff]  }
 0x1db   :  { %v2365_v25 = vpop.f32.mrf.mxu1  ;;  %v2526_v33 = vpop.f32.mrf.mxu0  ;;  %v4078_v21 = vld [vmem:[%s5792_s0 + $0x5c8] ss:$28 sps:$4 sm:$0xff]  }
 0x1dd   :  { %v2366_v3 = vpop.f32.mrf.mxu1  ;;  %v2527_v51 = vpop.f32.mrf.mxu0 }
 0x1de   :  { %v5253_v10 = vadd.f32 %v2366_v3, %v5047_v1  ;;  %v5256_v32 = vadd.f32 %v2527_v51, %v4871_v47 }
 0x1df   :  { %v2368_v55 = vpop.f32.mrf.mxu1  ;;  %v2529_v2 = vpop.f32.mrf.mxu0 }
 0x1e0   :  { %v4075_v55 = vld [vmem:[%s5792_s0 + $0x668] ss:$28 sps:$4 sm:$0xff]  }
 0x1e1   :  { %v2371_v4 = vpop.f32.mrf.mxu1  ;;  %v2532_v23 = vpop.f32.mrf.mxu0  ;;  %2723 = vmatmul.mubr.bf16.gmra.mxu0 %v4070_v50  ;;  %3672 = vmatmul.mubr.msk.bf16.gmra.mxu1 %vm1791_vm0, %v4074_v24  ;;  %v4079_v50 = vld [vmem:[%s5792_s0 + $0x600] ss:$28 sps:$4 sm:$0xff]  }
 0x1e2   :  { %v5266_v1 = vadd.f32 %v2371_v4, %v5064_v44  ;;  %v5269_v47 = vadd.f32 %v2532_v23, %v4882_v59  ;;  %2730 = vmatprep.mubr.bf16.mxu0 %v4077_v30  ;;  %3675 = vmatprep.mubr.msk.bf16.mxu1 %vm1791_vm0, %v4078_v21  ;;  %v4082_v24 = vld [vmem:[%s5792_s0 + $0x6a4] ss:$28 sps:$4 sm:$0xff]   ;;  %v4083_v30 = vld [vmem:[%s5792_s0 + $0x638] ss:$28 sps:$4 sm:$0xff]  }
 0x1e3   :  { %v2373_v25 = vpop.f32.mrf.mxu1  ;;  %v2534_v33 = vpop.f32.mrf.mxu0 }
 0x1e5   :  { %v2374_v3 = vpop.f32.mrf.mxu1  ;;  %v2535_v51 = vpop.f32.mrf.mxu0 }
 0x1e6   :  { %v5279_v44 = vadd.f32 %v2374_v3, %v5071_v40  ;;  %v5282_v59 = vadd.f32 %v2535_v51, %v4893_v13 }
 0x1e7   :  { %v2376_v21 = vpop.f32.mrf.mxu1  ;;  %v2537_v2 = vpop.f32.mrf.mxu0 }
 0x1e8   :  { %v4080_v21 = vld [vmem:[%s5792_s0 + $0x6a0] ss:$28 sps:$4 sm:$0xff]  }
 0x1e9   :  { %v2379_v4 = vpop.f32.mrf.mxu1  ;;  %v2540_v23 = vpop.f32.mrf.mxu0  ;;  %2731 = vmatmul.mubr.bf16.gmra.mxu0 %v4075_v55  ;;  %3676 = vmatmul.mubr.msk.bf16.gmra.mxu1 %vm1791_vm0, %v4079_v50  ;;  %v4084_v55 = vld [vmem:[%s5792_s0 + $0x670] ss:$28 sps:$4 sm:$0xff]   ;;  %v4087_v50 = vld [vmem:[%s5792_s0 + $0x6dc] ss:$28 sps:$4 sm:$0xff]  }
 0x1ea   :  { %v5292_v40 = vadd.f32 %v2379_v4, %v5088_v46  ;;  %v5295_v13 = vadd.f32 %v2540_v23, %v4904_v53  ;;  %2738 = vmatprep.mubr.bf16.mxu0 %v4082_v24  ;;  %3679 = vmatprep.mubr.msk.bf16.mxu1 %vm1791_vm0, %v4083_v30  ;;  %v4088_v24 = vld [vmem:[%s5792_s0 + $0x6a8] ss:$28 sps:$4 sm:$0xff]  }
 0x1eb   :  { %v2381_v25 = vpop.f32.mrf.mxu1  ;;  %v2542_v33 = vpop.f32.mrf.mxu0 }
 0x1ed   :  { %v2382_v3 = vpop.f32.mrf.mxu1  ;;  %v2543_v51 = vpop.f32.mrf.mxu0 }
 0x1ee   :  { %v5305_v46 = vadd.f32 %v2382_v3, %v5095_v15  ;;  %v5308_v53 = vadd.f32 %v2543_v51, %v4915_v48 }
 0x1ef   :  { %v2384_v30 = vpop.f32.mrf.mxu1  ;;  %v2545_v2 = vpop.f32.mrf.mxu0 }
 0x1f0   :  { %v4085_v30 = vld [vmem:[%s5792_s0 + $0x6d8] ss:$28 sps:$4 sm:$0xff]  }
 0x1f1   :  { %v2387_v4 = vpop.f32.mrf.mxu1  ;;  %v2548_v23 = vpop.f32.mrf.mxu0  ;;  %2739 = vmatmul.mubr.bf16.gmra.mxu0 %v4080_v21  ;;  %3680 = vmatmul.mubr.msk.bf16.gmra.mxu1 %vm1791_vm0, %v4084_v55  ;;  %v4089_v21 = vld [vmem:[%s5792_s0 + $0x6e0] ss:$28 sps:$4 sm:$0xff]  }
 0x1f2   :  { %v5318_v15 = vadd.f32 %v2387_v4, %v5112_v58  ;;  %v5321_v48 = vadd.f32 %v2548_v23, %v4926_v6  ;;  %2746 = vmatprep.mubr.bf16.mxu0 %v4087_v50  ;;  %3683 = vmatprep.mubr.msk.bf16.mxu1 %vm1791_vm0, %v4088_v24 }
 0x1f3   :  { %v2389_v25 = vpop.f32.mrf.mxu1  ;;  %v2550_v33 = vpop.f32.mrf.mxu0 }
 0x1f5   :  { %v2390_v3 = vpop.f32.mrf.mxu1  ;;  %v2551_v51 = vpop.f32.mrf.mxu0 }
 0x1f6   :  { %v5331_v58 = vadd.f32 %v2390_v3, %v5119_v11  ;;  %v5334_v6 = vadd.f32 %v2551_v51, %v4937_v20 }
 0x1f7   :  { %v2392_v55 = vpop.f32.mrf.mxu1  ;;  %v2553_v50 = vpop.f32.mrf.mxu0 }
 0x1f9   :  { %v2395_v24 = vpop.f32.mrf.mxu1  ;;  %v2556_v2 = vpop.f32.mrf.mxu0  ;;  %2747 = vmatmul.mubr.bf16.gmra.mxu0 %v4085_v30  ;;  %3684 = vmatmul.mubr.msk.bf16.gmra.mxu1 %vm1791_vm0, %v4089_v21 }
 0x1fa   :  { %v5338_v4 = vadd.f32 %v2395_v24, %v5136_v29  ;;  %v5341_v23 = vadd.f32 %v2556_v2, %v4948_v61 }
 0x1fb   :  { %v2397_v25 = vpop.f32.mrf.mxu1  ;;  %v2558_v33 = vpop.f32.mrf.mxu0 }
 0x1fd   :  { %v2398_v11 = vpop.f32.mrf.mxu1  ;;  %v2559_v3 = vpop.f32.mrf.mxu0 }
 0x1fe   :  { %v5344_v20 = vadd.f32 %v2398_v11, %v5143_v54  ;;  %v5347_v51 = vadd.f32 %v2559_v3, %v4960_v28 }
 0x1ff   :  { %v2400_v55 = vpop.f32.mrf.mxu1  ;;  %v2561_v30 = vpop.f32.mrf.mxu0 }
 0x201   :  { %v5349_v50 = vpop.f32.mrf.mxu1  ;;  %v2564_v21 = vpop.f32.mrf.mxu0 }
 0x202   :  { %5827 = vst [vmem:[#allocation17_spill] sm:$0xff] %v5349_v50  ;;  %v5352_v29 = vadd.f32 %v2564_v21, %v4972_v26 }
 0x203   :  { %v2405_v61 = vpop.f32.mrf.mxu1  ;;  %v2566_v24 = vpop.f32.mrf.mxu0 }
 0x205   :  { %v5354_v2 = vpop.f32.mrf.mxu1  ;;  %v2567_v25 = vpop.f32.mrf.mxu0 }
 0x206   :  { %5828 = vst [vmem:[#allocation18_spill] sm:$0xff] %v5354_v2  ;;  %v5357_v33 = vadd.f32 %v2567_v25, %v4984_v37 }
 0x207   :  { %v2408_v54 = vpop.f32.mrf.mxu1  ;;  %v2569_v11 = vpop.f32.mrf.mxu0 }
 0x209   :  { %v5359_v28 = vpop.f32.mrf.mxu1  ;;  %v2572_v3 = vpop.f32.mrf.mxu0 }
 0x20a   :  { %v5362_v55 = vadd.f32 %v2572_v3, %v4996_v49 }
 0x20b   :  { %v2413_v30 = vpop.f32.mrf.mxu1  ;;  %v2574_v50 = vpop.f32.mrf.mxu0 }
 0x20d   :  { %v5364_v26 = vpop.f32.mrf.mxu1  ;;  %v2575_v21 = vpop.f32.mrf.mxu0 }
 0x20e   :  { %5829 = vst [vmem:[#allocation19_spill] sm:$0xff] %v5364_v26  ;;  %v5367_v61 = vadd.f32 %v2575_v21, %v5008_v22 }
 0x20f   :  { %v2416_v24 = vpop.f32.mrf.mxu1  ;;  %v2577_v2 = vpop.f32.mrf.mxu0 }
 0x211   :  { %v5369_v37 = vpop.f32.mrf.mxu1  ;;  %v2580_v25 = vpop.f32.mrf.mxu0 }
 0x212   :  { %5830 = vst [vmem:[#allocation20_spill] sm:$0xff] %v5369_v37  ;;  %v5372_v54 = vadd.f32 %v2580_v25, %v5020_v19 }
 0x213   :  { %v2421_v11 = vpop.f32.mrf.mxu1  ;;  %v2582_v27 = vpop.f32.mrf.mxu0 }
 0x215   :  { %v5374_v49 = vpop.f32.mrf.mxu1  ;;  %v2583_v3 = vpop.f32.mrf.mxu0 }
 0x216   :  { %5831 = vst [vmem:[#allocation21_spill] sm:$0xff] %v5374_v49  ;;  %v5377_v50 = vadd.f32 %v2583_v3, %v5032_v45 }
 0x217   :  { %v2424_v30 = vpop.f32.mrf.mxu1  ;;  %v2585_v26 = vpop.f32.mrf.mxu0 }
 0x219   :  { %v5379_v22 = vpop.f32.mrf.mxu1  ;;  %v2588_v21 = vpop.f32.mrf.mxu0 }
 0x21a   :  { %5832 = vst [vmem:[#allocation22_spill] sm:$0xff] %v5379_v22  ;;  %v5382_v2 = vadd.f32 %v2588_v21, %v5044_v39 }
 0x21b   :  { %v2429_v24 = vpop.f32.mrf.mxu1  ;;  %v2590_v37 = vpop.f32.mrf.mxu0 }
 0x21d   :  { %v5384_v19 = vpop.f32.mrf.mxu1  ;;  %v2591_v25 = vpop.f32.mrf.mxu0 }
 0x21e   :  { %5833 = vst [vmem:[#allocation23_spill] sm:$0xff] %v5384_v19  ;;  %v5387_v27 = vadd.f32 %v2591_v25, %v5056_v43 }
 0x21f   :  { %v2432_v11 = vpop.f32.mrf.mxu1  ;;  %v2593_v49 = vpop.f32.mrf.mxu0 }
 0x221   :  { %v5389_v45 = vpop.f32.mrf.mxu1  ;;  %v2596_v3 = vpop.f32.mrf.mxu0 }
 0x222   :  { %5834 = vst [vmem:[#allocation24_spill] sm:$0xff] %v5389_v45  ;;  %v5392_v26 = vadd.f32 %v2596_v3, %v5068_v7 }
 0x223   :  { %v2437_v30 = vpop.f32.mrf.mxu1  ;;  %v2598_v22 = vpop.f32.mrf.mxu0 }
 0x225   :  { %v5394_v39 = vpop.f32.mrf.mxu1  ;;  %v2599_v21 = vpop.f32.mrf.mxu0 }
 0x226   :  { %5835 = vst [vmem:[#allocation25_spill] sm:$0xff] %v5394_v39  ;;  %v5397_v37 = vadd.f32 %v2599_v21, %v5080_v56 }
 0x227   :  { %v2440_v24 = vpop.f32.mrf.mxu1  ;;  %v2601_v19 = vpop.f32.mrf.mxu0 }
 0x229   :  { %v5399_v43 = vpop.f32.mrf.mxu1  ;;  %v2604_v25 = vpop.f32.mrf.mxu0 }
 0x22a   :  { %5836 = vst [vmem:[#allocation26_spill] sm:$0xff] %v5399_v43  ;;  %v5402_v49 = vadd.f32 %v2604_v25, %v5092_v34 }
 0x22b   :  { %v2445_v11 = vpop.f32.mrf.mxu1  ;;  %v2606_v45 = vpop.f32.mrf.mxu0 }
 0x22d   :  { %v5404_v7 = vpop.f32.mrf.mxu1  ;;  %v2607_v3 = vpop.f32.mrf.mxu0 }
 0x22e   :  { %5837 = vst [vmem:[#allocation27_spill] sm:$0xff] %v5404_v7  ;;  %v5407_v22 = vadd.f32 %v2607_v3, %v5104_v12 }
 0x22f   :  { %v2448_v30 = vpop.f32.mrf.mxu1  ;;  %v2609_v39 = vpop.f32.mrf.mxu0 }
 0x231   :  { %v5409_v56 = vpop.f32.mrf.mxu1  ;;  %v2612_v21 = vpop.f32.mrf.mxu0 }
 0x232   :  { %5838 = vst [vmem:[#allocation28_spill] sm:$0xff] %v5409_v56  ;;  %v5412_v19 = vadd.f32 %v2612_v21, %v5116_v41 }
 0x233   :  { %v2453_v24 = vpop.f32.mrf.mxu1  ;;  %v2614_v43 = vpop.f32.mrf.mxu0 }
 0x235   :  { %v5414_v34 = vpop.f32.mrf.mxu1  ;;  %v2615_v25 = vpop.f32.mrf.mxu0 }
 0x236   :  { %5839 = vst [vmem:[#allocation29_spill] sm:$0xff] %v5414_v34  ;;  %v5417_v45 = vadd.f32 %v2615_v25, %v5128_v0 }
 0x237   :  { %v2456_v11 = vpop.f32.mrf.mxu1  ;;  %v2617_v7 = vpop.f32.mrf.mxu0 }
 0x239   :  { %v5419_v12 = vpop.f32.mrf.mxu1  ;;  %v2620_v3 = vpop.f32.mrf.mxu0 }
 0x23a   :  { %5840 = vst [vmem:[#allocation30_spill] sm:$0xff] %v5419_v12  ;;  %v5422_v39 = vadd.f32 %v2620_v3, %v5140_v35  ;;  %v5875_v12 = vld [vmem:[#allocation3_spill] sm:$0xff] }
 0x23b   :  { %v2461_v30 = vpop.f32.mrf.mxu1  ;;  %v2622_v56 = vpop.f32.mrf.mxu0 }
 0x23d   :  { %v5424_v41 = vpop.f32.mrf.mxu1  ;;  %v2623_v21 = vpop.f32.mrf.mxu0 }
 0x23e   :  { %5841 = vst [vmem:[#allocation31_spill] sm:$0xff] %v5424_v41  ;;  %v5427_v43 = vadd.f32 %v2623_v21, %v5152_v60 }
 0x23f   :  { %v2464_v24 = vpop.f32.mrf.mxu1  ;;  %v2625_v34 = vpop.f32.mrf.mxu0 }
 0x241   :  { %v2628_v0 = vpop.f32.mrf.mxu0  ;;  %v3625_v25 = vpop.f32.mrf.mxu1 }
 0x242   :  { %v5430_v7 = vadd.f32 %v2628_v0, %v5162_v9  ;;  %v5433_v11 = vadd.f32 %v3625_v25, %v5191_v42 }
 0x243   :  { %v2630_v35 = vpop.f32.mrf.mxu0  ;;  %v2789_v3 = vpop.f32.mrf.mxu1 }
 0x244   :  { %v5436_v56 = vadd.f32 %v2789_v3, %v5165_v62 }
 0x245   :  { %v2631_v30 = vpop.f32.mrf.mxu0  ;;  %v3626_v41 = vpop.f32.mrf.mxu1 }
 0x246   :  { %v5439_v60 = vadd.f32 %v2631_v30, %v5175_v18  ;;  %v5442_v34 = vadd.f32 %v3626_v41, %v5204_v36 }
 0x247   :  { %v2633_v21 = vpop.f32.mrf.mxu0  ;;  %v2792_v24 = vpop.f32.mrf.mxu1 }
 0x248   :  { %v5445_v9 = vadd.f32 %v2792_v24, %v5178_v16 }
 0x249   :  { %v2636_v42 = vpop.f32.mrf.mxu0  ;;  %v3629_v0 = vpop.f32.mrf.mxu1 }
 0x24a   :  { %v5448_v25 = vadd.f32 %v2636_v42, %v5188_v31  ;;  %v5451_v62 = vadd.f32 %v3629_v0, %v5243_v17 }
 0x24b   :  { %v2638_v35 = vpop.f32.mrf.mxu0  ;;  %v2805_v3 = vpop.f32.mrf.mxu1 }
 0x24c   :  { %v5454_v18 = vadd.f32 %v2805_v3, %v5217_v52 }
 0x24d   :  { %v2639_v36 = vpop.f32.mrf.mxu0  ;;  %v3630_v41 = vpop.f32.mrf.mxu1 }
 0x24e   :  { %v5457_v30 = vadd.f32 %v2639_v36, %v5201_v8  ;;  %v5460_v16 = vadd.f32 %v3630_v41, %v5256_v32 }
 0x24f   :  { %v2641_v21 = vpop.f32.mrf.mxu0  ;;  %v2808_v24 = vpop.f32.mrf.mxu1 }
 0x250   :  { %v5463_v31 = vadd.f32 %v2808_v24, %v5230_v5 }
 0x251   :  { %v2644_v17 = vpop.f32.mrf.mxu0  ;;  %v3633_v42 = vpop.f32.mrf.mxu1 }
 0x252   :  { %v5466_v0 = vadd.f32 %v2644_v17, %v5214_v63  ;;  %v5469_v52 = vadd.f32 %v3633_v42, %v5295_v13 }
 0x253   :  { %v2646_v35 = vpop.f32.mrf.mxu0  ;;  %v2821_v3 = vpop.f32.mrf.mxu1 }
 0x254   :  { %5842 = vst [vmem:[#allocation32_spill] sm:$0xff] %v5469_v52  ;;  %v5472_v8 = vadd.f32 %v2821_v3, %v5269_v47 }
 0x255   :  { %v2647_v32 = vpop.f32.mrf.mxu0  ;;  %v3634_v36 = vpop.f32.mrf.mxu1 }
 0x256   :  { %5843 = vst [vmem:[#allocation33_spill] sm:$0xff] %v5472_v8  ;;  %v5475_v41 = vadd.f32 %v2647_v32, %v5227_v57  ;;  %v5478_v5 = vadd.f32 %v3634_v36, %v5308_v53 }
 0x257   :  { %v2649_v21 = vpop.f32.mrf.mxu0  ;;  %v2824_v24 = vpop.f32.mrf.mxu1 }
 0x258   :  { %5844 = vst [vmem:[#allocation34_spill] sm:$0xff] %v5478_v5  ;;  %v5481_v63 = vadd.f32 %v2824_v24, %v5282_v59 }
 0x259   :  { %v2652_v13 = vpop.f32.mrf.mxu0  ;;  %v3637_v17 = vpop.f32.mrf.mxu1 }
 0x25a   :  { %5845 = vst [vmem:[#allocation35_spill] sm:$0xff] %v5481_v63  ;;  %v5484_v42 = vadd.f32 %v2652_v13, %v5240_v14  ;;  %v5487_v47 = vadd.f32 %v3637_v17, %v5341_v23 }
 0x25b   :  { %v2654_v35 = vpop.f32.mrf.mxu0  ;;  %v2837_v3 = vpop.f32.mrf.mxu1 }
 0x25c   :  { %5846 = vst [vmem:[#allocation36_spill] sm:$0xff] %v5487_v47  ;;  %v5490_v57 = vadd.f32 %v2837_v3, %v5321_v48 }
 0x25d   :  { %v2655_v53 = vpop.f32.mrf.mxu0  ;;  %v3638_v32 = vpop.f32.mrf.mxu1 }
 0x25e   :  { %5847 = vst [vmem:[#allocation37_spill] sm:$0xff] %v5490_v57  ;;  %v5493_v36 = vadd.f32 %v2655_v53, %v5253_v10  ;;  %v5496_v59 = vadd.f32 %v3638_v32, %v5347_v51 }
 0x25f   :  { %v2657_v21 = vpop.f32.mrf.mxu0  ;;  %v2840_v24 = vpop.f32.mrf.mxu1 }
 0x260   :  { %5848 = vst [vmem:[#allocation38_spill] sm:$0xff] %v5496_v59  ;;  %v5499_v14 = vadd.f32 %v2840_v24, %v5334_v6 }
 0x261   :  { %v2660_v23 = vpop.f32.mrf.mxu0  ;;  %v3641_v13 = vpop.f32.mrf.mxu1 }
 0x262   :  { %5849 = vst [vmem:[#allocation39_spill] sm:$0xff] %v5499_v14  ;;  %v5502_v17 = vadd.f32 %v2660_v23, %v5266_v1  ;;  %v5505_v48 = vadd.f32 %v3641_v13, %v5362_v55 }
 0x263   :  { %v2662_v35 = vpop.f32.mrf.mxu0  ;;  %v2853_v3 = vpop.f32.mrf.mxu1 }
 0x264   :  { %v5510_v51 = vadd.f32 %v2853_v3, %v5352_v29 }
 0x265   :  { %v2663_v53 = vpop.f32.mrf.mxu0  ;;  %v3642_v32 = vpop.f32.mrf.mxu1 }
 0x266   :  { %v5515_v21 = vadd.f32 %v2663_v53, %v5279_v44  ;;  %v5518_v1 = vadd.f32 %v3642_v32, %v5367_v61 }
 0x267   :  { %v2665_v55 = vpop.f32.mrf.mxu0  ;;  %v2856_v24 = vpop.f32.mrf.mxu1 }
 0x268   :  { %5850 = vst [vmem:[#allocation40_spill] sm:$0xff] %v5515_v21  ;;  %v5523_v13 = vadd.f32 %v2856_v24, %v5357_v33 }
 0x269   :  { %v2668_v29 = vpop.f32.mrf.mxu0  ;;  %v3645_v35 = vpop.f32.mrf.mxu1 }
 0x26a   :  { %v5528_v6 = vadd.f32 %v2668_v29, %v5292_v40  ;;  %v5531_v44 = vadd.f32 %v3645_v35, %v5382_v2 }
 0x26b   :  { %v2670_v61 = vpop.f32.mrf.mxu0  ;;  %v2869_v53 = vpop.f32.mrf.mxu1 }
 0x26c   :  { %v5536_v55 = vadd.f32 %v2869_v53, %v5372_v54 }
 0x26d   :  { %v2671_v33 = vpop.f32.mrf.mxu0  ;;  %v3646_v24 = vpop.f32.mrf.mxu1 }
 0x26e   :  { %v5541_v3 = vadd.f32 %v2671_v33, %v5305_v46  ;;  %v5544_v40 = vadd.f32 %v3646_v24, %v5387_v27 }
 0x26f   :  { %v2673_v2 = vpop.f32.mrf.mxu0  ;;  %v2872_v29 = vpop.f32.mrf.mxu1 }
 0x270   :  { %5851 = vst [vmem:[#allocation41_spill] sm:$0xff] %v5541_v3  ;;  %v5549_v61 = vadd.f32 %v2872_v29, %v5377_v50 }
 0x271   :  { %v2676_v54 = vpop.f32.mrf.mxu0  ;;  %v3649_v53 = vpop.f32.mrf.mxu1 }
 0x272   :  { %5852 = vst [vmem:[#allocation42_spill] sm:$0xff] %v5549_v61  ;;  %v5554_v23 = vadd.f32 %v2676_v54, %v5318_v15  ;;  %v5557_v46 = vadd.f32 %v3649_v53, %v5402_v49 }
 0x273   :  { %v2678_v27 = vpop.f32.mrf.mxu0  ;;  %v2885_v33 = vpop.f32.mrf.mxu1 }
 0x274   :  { %5853 = vst [vmem:[#allocation43_spill] sm:$0xff] %v5554_v23  ;;  %5854 = vst [vmem:[#allocation44_spill] sm:$0xff] %v5557_v46  ;;  %v5562_v2 = vadd.f32 %v2885_v33, %v5392_v26  ;;  %v5876_v46 = vld [vmem:[#allocation18_spill] sm:$0xff] }
 0x275   :  { %v2679_v50 = vpop.f32.mrf.mxu0  ;;  %v3650_v29 = vpop.f32.mrf.mxu1 }
 0x276   :  { %5855 = vst [vmem:[#allocation45_spill] sm:$0xff] %v5562_v2  ;;  %v5567_v32 = vadd.f32 %v2679_v50, %v5331_v58  ;;  %v5570_v15 = vadd.f32 %v3650_v29, %v5407_v22  ;;  %v5872_v2 = vld [vmem:[#allocation17_spill] sm:$0xff] }
 0x277   :  { %v2681_v49 = vpop.f32.mrf.mxu0  ;;  %v2888_v54 = vpop.f32.mrf.mxu1 }
 0x278   :  { %5856 = vst [vmem:[#allocation46_spill] sm:$0xff] %v5567_v32  ;;  %5857 = vst [vmem:[#allocation47_spill] sm:$0xff] %v5570_v15  ;;  %v5575_v27 = vadd.f32 %v2888_v54, %v5397_v37 }
 0x279   :  { %v2684_v26 = vpop.f32.mrf.mxu0  ;;  %v3653_v33 = vpop.f32.mrf.mxu1 }
 0x27a   :  { %5858 = vst [vmem:[#allocation48_spill] sm:$0xff] %v5575_v27  ;;  %v5580_v35 = vadd.f32 %v2684_v26, %v5338_v4  ;;  %v5583_v58 = vadd.f32 %v3653_v33, %v5422_v39 }
 0x27b   :  { %v2686_v22 = vpop.f32.mrf.mxu0  ;;  %v2901_v50 = vpop.f32.mrf.mxu1 }
 0x27c   :  { %5859 = vst [vmem:[#allocation49_spill] sm:$0xff] %v5580_v35  ;;  %5860 = vst [vmem:[#allocation50_spill] sm:$0xff] %v5583_v58  ;;  %v5588_v49 = vadd.f32 %v2901_v50, %v5412_v19  ;;  %v5871_v35 = vld [vmem:[#allocation2_spill] sm:$0xff] }
 0x27d   :  { %v2687_v37 = vpop.f32.mrf.mxu0  ;;  %v3654_v54 = vpop.f32.mrf.mxu1 }
 0x27e   :  { %5861 = vst [vmem:[#allocation51_spill] sm:$0xff] %v5588_v49  ;;  %v5593_v24 = vadd.f32 %v2687_v37, %v5344_v20  ;;  %v5596_v4 = vadd.f32 %v3654_v54, %v5427_v43 }
 0x27f   :  { %v2689_v39 = vpop.f32.mrf.mxu0  ;;  %v2904_v26 = vpop.f32.mrf.mxu1 }
 0x280   :  { %5862 = vst [vmem:[#allocation52_spill] sm:$0xff] %v5593_v24  ;;  %5863 = vst [vmem:[#allocation53_spill] sm:$0xff] %v5596_v4  ;;  %v5601_v22 = vadd.f32 %v2904_v26, %v5417_v45 }
 0x281   :  { %v2692_v19 = vpop.f32.mrf.mxu0  ;;  %v3657_v50 = vpop.f32.mrf.mxu1 }
 0x282   :  { %5864 = vst [vmem:[#allocation54_spill] sm:$0xff] %v5601_v22  ;;  %v2926_v3 = vadd.f32 %v3657_v50, %v5448_v25  ;;  %v5877_v25 = vmax.f32 %v5433_v11, %v5505_v48  ;;  %v5883_v11 = vld [vmem:[#allocation6_spill] sm:$0xff]  ;;  %v5884_v48 = vld [vmem:[#allocation21_spill] sm:$0xff] }
 0x283   :  { %v2694_v53 = vpop.f32.mrf.mxu0  ;;  %v2917_v10 = vpop.f32.mrf.mxu1 }
 0x285   :  { %v2695_v20 = vpop.f32.mrf.mxu0  ;;  %v3658_v37 = vpop.f32.mrf.mxu1 }
 0x287   :  { %v2697_v32 = vpop.f32.mrf.mxu0  ;;  %v2920_v43 = vpop.f32.mrf.mxu1 }
 0x289   :  { %v2700_v54 = vpop.f32.mrf.mxu0  ;;  %v5605_v39 = vpop.f32.mrf.mxu1 }
 0x28b   :  { %v2702_v49 = vpop.f32.mrf.mxu0  ;;  %v5607_v57 = vpop.f32.mrf.mxu1 }
 0x28d   :  { %v2703_v33 = vpop.f32.mrf.mxu0  ;;  %v5609_v45 = vpop.f32.mrf.mxu1 }
 0x28f   :  { %v2705_v26 = vpop.f32.mrf.mxu0  ;;  %v5611_v4 = vpop.f32.mrf.mxu1 }
 0x291   :  { %v2708_v59 = vpop.f32.mrf.mxu0  ;;  %v5613_v29 = vpop.f32.mrf.mxu1 }
 0x293   :  { %v2710_v53 = vpop.f32.mrf.mxu0  ;;  %v5615_v22 = vpop.f32.mrf.mxu1 }
 0x294   :  { %v2412_v53 = vadd.f32 %v5359_v28, %v4653_v38  ;;  %v2407_v38 = vadd.f32 %v5876_v46, %v5875_v12  ;;  %v5878_v12 = vld [vmem:[#allocation5_spill] sm:$0xff]  ;;  %v5879_v46 = vld [vmem:[#allocation20_spill] sm:$0xff] }
 0x295   :  { %v5617_v32 = vpop.f32.mrf.mxu0  ;;  %v5619_v14 = vpop.f32.mrf.mxu1  ;;  %v2420_v50 = vadd.f32 %v5879_v46, %v5878_v12 }
 0x296   :  { %5865 = vst [vmem:[#allocation55_spill] sm:$0xff] %v5619_v14  ;;  %v2701_v8 = vadd.f32 %v2700_v54, %v2412_v53  ;;  %v2696_v54 = vadd.f32 %v2695_v20, %v2407_v38  ;;  %v5885_v38 = vld [vmem:[#allocation8_spill] sm:$0xff] }
 0x297   :  { %v2713_v58 = vpop.f32.mrf.mxu0  ;;  %v5621_v49 = vpop.f32.mrf.mxu1 }
 0x298   :  { %5866 = vst [vmem:[#allocation56_spill] sm:$0xff] %v5621_v49  ;;  %v2404_v58 = vadd.f32 %v5872_v2, %v5871_v35 }
 0x299   :  { %v2716_v47 = vpop.f32.mrf.mxu0  ;;  %v5623_v24 = vpop.f32.mrf.mxu1 }
 0x29a   :  { %5867 = vst [vmem:[#allocation57_spill] sm:$0xff] %v5623_v24  ;;  %v5873_v24 = vld [vmem:[#allocation4_spill] sm:$0xff] }
 0x29b   :  { %v2718_v27 = vpop.f32.mrf.mxu0  ;;  %v5625_v26 = vpop.f32.mrf.mxu1 }
 0x29c   :  { %5868 = vst [vmem:[#allocation58_spill] sm:$0xff] %v5625_v26  ;;  %v5874_v27 = vld [vmem:[#allocation19_spill] sm:$0xff]  ;;  %v2693_v26 = vadd.f32 %v2692_v19, %v2404_v58 }
 0x29d   :  { %v2719_v63 = vpop.f32.mrf.mxu0  ;;  %v5627_v23 = vpop.f32.mrf.mxu1  ;;  %v2415_v14 = vadd.f32 %v5874_v27, %v5873_v24  ;;  %v2929_v24 = vadd.f32 %v3658_v37, %v5457_v30  ;;  %v5880_v58 = vld [vmem:[#allocation7_spill] sm:$0xff] }
 0x29e   :  { %5869 = vst [vmem:[#allocation59_spill] sm:$0xff] %v5627_v23 }
 0x29f   :  { %v2721_v15 = vpop.f32.mrf.mxu0  ;;  %v5631_v5 = vpop.f32.mrf.mxu1  ;;  %v2704_v52 = vadd.f32 %v2703_v33, %v2415_v14  ;;  %v5882_v33 = vmax.f32 %v5436_v56, %v5510_v51  ;;  %v5887_v56 = vmax.f32 %v5442_v34, %v5518_v1  ;;  %v5890_v34 = vmax.f32 %v5445_v9, %v5523_v13 }
 0x2a0   :  { %5870 = vst [vmem:[#allocation60_spill] sm:$0xff] %v5631_v5  ;;  %v2918_v5 = vadd.f32 %v2917_v10, %v5430_v7  ;;  %v5881_v7 = vld [vmem:[#allocation22_spill] sm:$0xff]  ;;  %v2945_v9 = vadd.f32 %v5609_v45, %v5493_v36  ;;  %v2937_v13 = vadd.f32 %v5611_v4, %v5475_v41 }
 0x2a1   :  { %v5635_v49 = vpop.f32.mrf.mxu0  ;;  %v3673_v21 = vpop.f32.mrf.mxu1  ;;  %v2428_v14 = vadd.f32 %v5881_v7, %v5880_v58  ;;  %v5892_v58 = vld [vmem:[#allocation26_spill] sm:$0xff] }
 0x2a2   :  { %v2990_v23 = vadd.f32 %v3673_v21, %v2701_v8 }
 0x2a3   :  { %v2726_v28 = vpop.f32.mrf.mxu0  ;;  %v2981_v15 = vpop.f32.mrf.mxu1 }
 0x2a4   :  { %v3062_v35 = vmax.f32 %v2926_v3, %v2990_v23  ;;  %v2982_v2 = vadd.f32 %v2981_v15, %v2693_v26  ;;  %v2921_v3 = vadd.f32 %v2920_v43, %v5439_v60  ;;  %v5886_v28 = vld [vmem:[#allocation23_spill] sm:$0xff]  ;;  %v2709_v43 = vadd.f32 %v2708_v59, %v2420_v50 }
 0x2a5   :  { %v5643_v53 = vpop.f32.mrf.mxu0  ;;  %v3674_v61 = vpop.f32.mrf.mxu1  ;;  %v2431_v60 = vadd.f32 %v5886_v28, %v5885_v38  ;;  %v5891_v50 = vld [vmem:[#allocation11_spill] sm:$0xff]  ;;  %v5896_v38 = vld [vmem:[#allocation25_spill] sm:$0xff] }
 0x2a6   :  { %v3078_v8 = vmax.f32 %v5877_v25, %v3062_v35  ;;  %v3060_v21 = vmax.f32 %v2918_v5, %v2982_v2  ;;  %v2993_v19 = vadd.f32 %v3674_v61, %v2704_v52  ;;  %v2423_v5 = vadd.f32 %v5884_v48, %v5883_v11  ;;  %v5662_v61 = vld [vmem:[%s5793_s2] ss:$0 sm:$0xff]  ;;  %v5888_v35 = vld [vmem:[#allocation9_spill] sm:$0xff]  ;;  %v5889_v2 = vld [vmem:[#allocation24_spill] sm:$0xff] }
 0x2a7   :  { %v2729_v10 = vpop.f32.mrf.mxu0  ;;  %v2984_v23 = vpop.f32.mrf.mxu1  ;;  %v2717_v52 = vadd.f32 %v2716_v47, %v2428_v14  ;;  %v2942_v47 = vadd.f32 %v5605_v39, %v5484_v42  ;;  %v2444_v7 = vadd.f32 %v5892_v58, %v5891_v50  ;;  %v2720_v39 = vadd.f32 %v2719_v63, %v2431_v60  ;;  %v5907_v58 = vld [vmem:[#allocation15_spill] sm:$0xff] }
 0x2a8   :  { %v3076_v30 = vmax.f32 %v5882_v33, %v3060_v21  ;;  %v3063_v20 = vmax.f32 %v2929_v24, %v2993_v19  ;;  %v2985_v37 = vadd.f32 %v2984_v23, %v2696_v54  ;;  %v2436_v54 = vadd.f32 %v5889_v2, %v5888_v35  ;;  %v5902_v2 = vld [vmem:[#allocation42_spill] sm:$0xff] }
 0x2a9   :  { %v2732_v26 = vpop.f32.mrf.mxu0  ;;  %v3677_v27 = vpop.f32.mrf.mxu1  ;;  %v2934_v24 = vadd.f32 %v5607_v57, %v5466_v0  ;;  %v3101_v12 = vadd.f32 %v5662_v61, %v3078_v8  ;;  %v2712_v42 = vadd.f32 %v5617_v32, %v2423_v5  ;;  %v5893_v33 = vmax.f32 %v5451_v62, %v5531_v44 }
 0x2aa   :  { %v3079_v51 = vmax.f32 %v5887_v56, %v3063_v20  ;;  %v3061_v15 = vmax.f32 %v2921_v3, %v2985_v37  ;;  %v3006_v25 = vadd.f32 %v3677_v27, %v2717_v52  ;;  %v3099_v10 = vadd.f32 %v5662_v61, %v3076_v30  ;;  %v5900_v56 = vld [vmem:[#allocation28_spill] sm:$0xff] }
 0x2ab   :  { %v2734_v21 = vpop.f32.mrf.mxu0  ;;  %v2997_v19 = vpop.f32.mrf.mxu1  ;;  %v2733_v11 = vadd.f32 %v2732_v26, %v2444_v7  ;;  %v5894_v48 = vmax.f32 %v5454_v18, %v5536_v55  ;;  %v2958_v62 = vadd.f32 %v5613_v29, %v5528_v6  ;;  %v2725_v44 = vadd.f32 %v5635_v49, %v2436_v54  ;;  %v5895_v26 = vld [vmem:[#allocation10_spill] sm:$0xff]  ;;  %v5897_v18 = vld [vmem:[#allocation12_spill] sm:$0xff]  ;;  %v5898_v55 = vld [vmem:[#allocation27_spill] sm:$0xff] }
 0x2ac   :  { %v3102_v59 = vadd.f32 %v5662_v61, %v3079_v51  ;;  %v3077_v1 = vmax.f32 %v5890_v34, %v3061_v15  ;;  %v2998_v46 = vadd.f32 %v2997_v19, %v2709_v43  ;;  %v3066_v14 = vmax.f32 %v2942_v47, %v3006_v25  ;;  %v5899_v43 = vld [vmem:[#allocation13_spill] sm:$0xff]  ;;  %v5908_v7 = vld [vmem:[#allocation30_spill] sm:$0xff] }
 0x2ad   :  { %v2735_v0 = vpop.f32.mrf.mxu0  ;;  %v3678_v57 = vpop.f32.mrf.mxu1  ;;  %v2439_v28 = vadd.f32 %v5896_v38, %v5895_v26  ;;  %v2447_v60 = vadd.f32 %v5898_v55, %v5897_v18  ;;  %v2452_v51 = vadd.f32 %v5900_v56, %v5899_v43  ;;  %v5901_v6 = vmax.f32 %v5460_v16, %v5544_v40  ;;  %v5920_v38 = vld [vmem:[#allocation34_spill] sm:$0xff]  ;;  %v5923_v56 = vld [vmem:[#allocation43_spill] sm:$0xff] }
 0x2ae   :  { %v3546_v23 = vpack.c.bf16 %v3102_v59, %v3101_v12  ;;  %v3100_v8 = vadd.f32 %v5662_v61, %v3077_v1  ;;  %v3064_v3 = vmax.f32 %v2934_v24, %v2998_v46  ;;  %v3082_v32 = vmax.f32 %v5893_v33, %v3066_v14  ;;  %v5913_v33 = vld [vmem:[#allocation33_spill] sm:$0xff] }
 0x2af   :  { %v3009_v63 = vadd.f32 %v3678_v57, %v2720_v39  ;;  %v2737_v20 = vpop.f32.mrf.mxu0  ;;  %v3000_v37 = vpop.f32.mrf.mxu1  ;;  %v2950_v35 = vadd.f32 %v5615_v22, %v5502_v17  ;;  %v5903_v54 = vmax.f32 %v5463_v31, %v5902_v2  ;;  %v2728_v21 = vadd.f32 %v5643_v53, %v2439_v28  ;;  %v5904_v17 = vld [vmem:[#allocation32_spill] sm:$0xff]  ;;  %v5909_v53 = vld [vmem:[#allocation41_spill] sm:$0xff]  ;;  %v5910_v39 = vld [vmem:[#allocation55_spill] sm:$0xff] }
 0x2b0   :  { %3578 = vst [vmem:[%s5794_s3 + $0x8] sm:$0xff] %v3546_v23   ;;  %v3541_v30 = vpack.c.bf16 %v3100_v8, %v3099_v10  ;;  %v3080_v36 = vmax.f32 %v5894_v48, %v3064_v3  ;;  %v3001_v45 = vadd.f32 %v3000_v37, %v2712_v42  ;;  %v3105_v19 = vadd.f32 %v5662_v61, %v3082_v32  ;;  %v5905_v22 = vld [vmem:[#allocation44_spill] sm:$0xff]  ;;  %v5914_v32 = vld [vmem:[#allocation45_spill] sm:$0xff]  ;;  %v5921_v28 = vld [vmem:[#allocation47_spill] sm:$0xff] }
 0x2b1   :  { %v3067_v5 = vmax.f32 %v2945_v9, %v3009_v63  ;;  %v2740_v41 = vpop.f32.mrf.mxu0  ;;  %v3681_v4 = vpop.f32.mrf.mxu1  ;;  %v2736_v12 = vadd.f32 %v2735_v0, %v2447_v60  ;;  %v5906_v46 = vmax.f32 %v5904_v17, %v5905_v22  ;;  %v2460_v42 = vadd.f32 %v5908_v7, %v5907_v58  ;;  %v5911_v8 = vld [vmem:[#allocation40_spill] sm:$0xff] }
 0x2b2   :  { %3542 = vst [vmem:[%s5794_s3] sm:$0xff] %v3541_v30   ;;  %v3065_v52 = vmax.f32 %v2937_v13, %v3001_v45  ;;  %v3022_v27 = vadd.f32 %v3681_v4, %v2733_v11  ;;  %v3103_v34 = vadd.f32 %v5662_v61, %v3080_v36  ;;  %v2961_v14 = vadd.f32 %v5910_v39, %v5909_v53  ;;  %v5912_v3 = vld [vmem:[#allocation56_spill] sm:$0xff] }
 0x2b3   :  { %v3083_v29 = vmax.f32 %v5901_v6, %v3067_v5  ;;  %v2742_v49 = vpop.f32.mrf.mxu0  ;;  %v3013_v15 = vpop.f32.mrf.mxu1  ;;  %v2953_v9 = vadd.f32 %v5912_v3, %v5911_v8  ;;  %v5915_v63 = vmax.f32 %v5913_v33, %v5914_v32  ;;  %v2741_v36 = vadd.f32 %v2740_v41, %v2452_v51  ;;  %v5916_v4 = vld [vmem:[#allocation16_spill] sm:$0xff]  ;;  %v5924_v6 = vld [vmem:[#allocation58_spill] sm:$0xff] }
 0x2b4   :  { %v3081_v47 = vmax.f32 %v5903_v54, %v3065_v52  ;;  %v3070_v24 = vmax.f32 %v2958_v62, %v3022_v27  ;;  %v3014_v25 = vadd.f32 %v3013_v15, %v2725_v44  ;;  %v5917_v62 = vld [vmem:[#allocation31_spill] sm:$0xff]  ;;  %v5918_v52 = vld [vmem:[#allocation49_spill] sm:$0xff]  ;;  %v5922_v18 = vmax.f32 %v5920_v38, %v5921_v28  ;;  %v5926_v15 = vld [vmem:[#allocation48_spill] sm:$0xff] }
 0x2b5   :  { %v3106_v59 = vadd.f32 %v5662_v61, %v3083_v29  ;;  %v2743_v16 = vpop.f32.mrf.mxu0  ;;  %v3682_v40 = vpop.f32.mrf.mxu1  ;;  %v2463_v44 = vadd.f32 %v5917_v62, %v5916_v4  ;;  %v5919_v27 = vld [vmem:[#allocation57_spill] sm:$0xff]  ;;  %v2966_v29 = vadd.f32 %v5924_v6, %v5923_v56  ;;  %v5925_v49 = vld [vmem:[#allocation35_spill] sm:$0xff]  ;;  %v5928_v54 = vld [vmem:[#allocation14_spill] sm:$0xff] }
 0x2b6   :  { %v3104_v1 = vadd.f32 %v5662_v61, %v3081_v47  ;;  %v3086_v31 = vmax.f32 %v5906_v46, %v3070_v24  ;;  %v3068_v50 = vmax.f32 %v2950_v35, %v3014_v25  ;;  %v3025_v57 = vadd.f32 %v3682_v40, %v2736_v12  ;;  %v5929_v47 = vld [vmem:[#allocation29_spill] sm:$0xff]  ;;  %v5930_v22 = vld [vmem:[#allocation52_spill] sm:$0xff]  ;;  %v5931_v46 = vld [vmem:[#allocation59_spill] sm:$0xff] }
 0x2b7   :  { %v3556_v0 = vpack.c.bf16 %v3106_v59, %v3105_v19  ;;  %v2745_v10 = vpop.f32.mrf.mxu0  ;;  %v3016_v23 = vpop.f32.mrf.mxu1  ;;  %v2974_v26 = vadd.f32 %v5919_v27, %v5918_v52  ;;  %v5927_v41 = vmax.f32 %v5925_v49, %v5926_v15  ;;  %v2455_v24 = vadd.f32 %v5929_v47, %v5928_v54  ;;  %v5939_v33 = vld [vmem:[#allocation60_spill] sm:$0xff] }
 0x2b8   :  { %v3551_v13 = vpack.c.bf16 %v3104_v1, %v3103_v34  ;;  %v3084_v20 = vmax.f32 %v5915_v63, %v3068_v50  ;;  %v3017_v37 = vadd.f32 %v3016_v23, %v2728_v21  ;;  %v3071_v30 = vmax.f32 %v2961_v14, %v3025_v57  ;;  %v5933_v14 = vld [vmem:[#allocation50_spill] sm:$0xff]  ;;  %v5935_v10 = vld [vmem:[#allocation37_spill] sm:$0xff]  ;;  %v5936_v23 = vld [vmem:[#allocation51_spill] sm:$0xff] }
 0x2b9   :  { %3580 = vst [vmem:[%s5794_s3 + $0x18] sm:$0xff] %v3556_v0   ;;  %v2748_v11 = vpop.f32.mrf.mxu0  ;;  %v3685_v48 = vpop.f32.mrf.mxu1  ;;  %v3109_v25 = vadd.f32 %v5662_v61, %v3086_v31  ;;  %v2977_v50 = vadd.f32 %v5931_v46, %v5930_v22  ;;  %v2744_v58 = vadd.f32 %v2743_v16, %v2455_v24  ;;  %v5932_v31 = vld [vmem:[#allocation36_spill] sm:$0xff]  ;;  %v5937_v8 = vmax.f32 %v5935_v10, %v5936_v23 }
 0x2ba   :  { %3579 = vst [vmem:[%s5794_s3 + $0x10] sm:$0xff] %v3551_v13   ;;  %v3069_v45 = vmax.f32 %v2953_v9, %v3017_v37  ;;  %v2749_v5 = vadd.f32 %v2748_v11, %v2460_v42  ;;  %v3087_v55 = vmax.f32 %v5922_v18, %v3071_v30  ;;  %v3107_v21 = vadd.f32 %v5662_v61, %v3084_v20  ;;  %v5938_v13 = vld [vmem:[#allocation46_spill] sm:$0xff]  ;;  %v5941_v30 = vld [vmem:[#allocation53_spill] sm:$0xff] }
 0x2bb   :  { %v2750_v60 = vpop.f32.mrf.mxu0  ;;  %v3029_v43 = vpop.f32.mrf.mxu1  ;;  %v5934_v0 = vmax.f32 %v5932_v31, %v5933_v14  ;;  %v2969_v32 = vadd.f32 %v5939_v33, %v5938_v13  ;;  %v5940_v37 = vld [vmem:[#allocation38_spill] sm:$0xff] }
 0x2bc   :  { %v3085_v51 = vmax.f32 %v5927_v41, %v3069_v45  ;;  %v3038_v35 = vadd.f32 %v3685_v48, %v2749_v5  ;;  %v3030_v2 = vadd.f32 %v3029_v43, %v2741_v36  ;;  %v3110_v19 = vadd.f32 %v5662_v61, %v3087_v55  ;;  %v5943_v36 = vld [vmem:[#allocation39_spill] sm:$0xff]  ;;  %v5944_v45 = vld [vmem:[#allocation54_spill] sm:$0xff] }
 0x2bd   :  { %v2751_v12 = vpop.f32.mrf.mxu0  ;;  %v3686_v59 = vpop.f32.mrf.mxu1  ;;  %v5942_v11 = vmax.f32 %v5940_v37, %v5941_v30  ;;  %v5945_v5 = vmax.f32 %v5943_v36, %v5944_v45 }
 0x2be   :  { %v3108_v40 = vadd.f32 %v5662_v61, %v3085_v51  ;;  %v3074_v34 = vmax.f32 %v2974_v26, %v3038_v35  ;;  %v3072_v1 = vmax.f32 %v2966_v29, %v3030_v2  ;;  %v2752_v17 = vadd.f32 %v2751_v12, %v2463_v44 }
 0x2bf   :  { %v3566_v7 = vpack.c.bf16 %v3110_v19, %v3109_v25  ;;  %v2753_v42 = vpop.f32.mrf.mxu0  ;;  %v3032_v53 = vpop.f32.mrf.mxu1 }
 0x2c0   :  { %v3561_v39 = vpack.c.bf16 %v3108_v40, %v3107_v21  ;;  %v3090_v57 = vmax.f32 %v5934_v0, %v3074_v34  ;;  %v3088_v3 = vmax.f32 %v5937_v8, %v3072_v1  ;;  %v3041_v9 = vadd.f32 %v3686_v59, %v2752_v17 }
 0x2c1   :  { %3582 = vst [vmem:[%s5794_s3 + $0x28] sm:$0xff] %v3566_v7   ;;  %v3033_v16 = vadd.f32 %v3032_v53, %v2744_v58 }
 0x2c2   :  { %3581 = vst [vmem:[%s5794_s3 + $0x20] sm:$0xff] %v3561_v39   ;;  %v3075_v63 = vmax.f32 %v2977_v50, %v3041_v9  ;;  %v3113_v62 = vadd.f32 %v5662_v61, %v3090_v57  ;;  %v3111_v52 = vadd.f32 %v5662_v61, %v3088_v3 }
 0x2c3   :  { %v3073_v20 = vmax.f32 %v2969_v32, %v3033_v16 }
 0x2c4   :  { %v3091_v48 = vmax.f32 %v5942_v11, %v3075_v63 }
 0x2c5   :  { %v3089_v4 = vmax.f32 %v5945_v5, %v3073_v20 }
 0x2c6   :  { %v3114_v44 = vadd.f32 %v5662_v61, %v3091_v48 }
 0x2c7   :  { %v3112_v27 = vadd.f32 %v5662_v61, %v3089_v4 }
 0x2c8   :  { %v3576_v26 = vpack.c.bf16 %v3114_v44, %v3113_v62 }
 0x2c9   :  { %v3571_v38 = vpack.c.bf16 %v3112_v27, %v3111_v52 }
 0x2ca   :  { %3584 = vst [vmem:[%s5794_s3 + $0x38] sm:$0xff] %v3576_v26  }
 0x2cb   :  { %3583 = vst [vmem:[%s5794_s3 + $0x30] sm:$0xff] %v3571_v38  }

// kernel: tudui_forward.5
= control target key start
LH: loop header
LB: loop body
LE: loop exit
PB: predicated region body
PF: predicated region fallthrough
CT: control target
= control target key end

     0   :  { %vm772_vm0 = vcmask 261120   ;;  %s4452_s0 = inlined_call_operand.vmem [shape: bf16[128,800], index: 0, kind: input, shape index: {}]   ;;  %s4453_s1 = inlined_call_operand.vmem [shape: bf16[800,64], index: 1, kind: input, shape index: {}]   ;;  %s4454_s2 = inlined_call_operand.vmem [shape: f32[1,64], index: 2, kind: input, shape index: {}]   ;;  %s4455_s3 = inlined_call_operand.vmem [shape: bf16[16,64,64], index: 3, kind: input, shape index: {}]   ;;  %s4456_s4 = inlined_call_operand.vmem [shape: f32[1,64], index: 4, kind: input, shape index: {}]   ;;  %s4457_s5 = inlined_call_operand.vmem [shape: bf16[64,10], index: 5, kind: input, shape index: {}]   ;;  %s4458_s6 = inlined_call_operand.vmem [shape: f32[1,10], index: 6, kind: input, shape index: {}]   ;;  %s4459_s7 = inlined_call_operand.hbm [shape: f32[2,10], index: 7, kind: output, shape index: {}]  }
   0x1   :  { %v3415_v0 = vld [vmem:[%s4453_s1 + $0x78] sm:$0xff]   ;;  %v3419_v4 = vld [vmem:[%s4453_s1 + $0x70] sm:$0xff]   ;;  %v3423_v8 = vld [vmem:[%s4453_s1 + $0x68] sm:$0xff]  }
   0x2   :  { %v3416_v1 = vld [vmem:[%s4453_s1 + $0xf8] sm:$0xff]   ;;  %2885 = vmatprep.subr.bf16.mxu0 %v3415_v0  ;;  %v3420_v5 = vld [vmem:[%s4453_s1 + $0xf0] sm:$0xff]   ;;  %v3424_v9 = vld [vmem:[%s4453_s1 + $0xe8] sm:$0xff]  }
   0x3   :  { %v3417_v2 = vld [vmem:[%s4453_s1 + $0x38] sm:$0xff]   ;;  %2949 = vmatprep.subr.bf16.mxu1 %v3416_v1  ;;  %v3421_v6 = vld [vmem:[%s4453_s1 + $0x30] sm:$0xff]   ;;  %v3425_v10 = vld [vmem:[%s4453_s1 + $0x28] sm:$0xff]  }
   0x4   :  { %v3418_v3 = vld [vmem:[%s4453_s1 + $0xb8] sm:$0xff]   ;;  %2886 = vmatpush3.bf16.msra.mxu0 %v3417_v2  ;;  %v3422_v7 = vld [vmem:[%s4453_s1 + $0xb0] sm:$0xff]   ;;  %v3426_v11 = vld [vmem:[%s4453_s1 + $0xa8] sm:$0xff]  }
   0x5   :  { %2950 = vmatpush3.bf16.msra.mxu1 %v3418_v3  ;;  %2887 = vmatprep.subr.bf16.mxu0 %v3419_v4  ;;  %v3427_v12 = vld [vmem:[%s4453_s1 + $0x60] sm:$0xff]   ;;  %v3431_v16 = vld [vmem:[%s4453_s1 + $0x58] sm:$0xff]   ;;  %v3435_v20 = vld [vmem:[%s4453_s1 + $0x50] sm:$0xff]  }
   0x6   :  { %2951 = vmatprep.subr.bf16.mxu1 %v3420_v5  ;;  %v3428_v13 = vld [vmem:[%s4453_s1 + $0xe0] sm:$0xff]   ;;  %v3432_v17 = vld [vmem:[%s4453_s1 + $0xd8] sm:$0xff]   ;;  %v3436_v21 = vld [vmem:[%s4453_s1 + $0xd0] sm:$0xff]  }
   0x7   :  { %v3429_v14 = vld [vmem:[%s4453_s1 + $0x20] sm:$0xff]   ;;  %v3433_v18 = vld [vmem:[%s4453_s1 + $0x18] sm:$0xff]   ;;  %v3437_v22 = vld [vmem:[%s4453_s1 + $0x10] sm:$0xff]  }
   0x8   :  { %2888 = vmatpush3.bf16.msra.mxu0 %v3421_v6  ;;  %v3430_v15 = vld [vmem:[%s4453_s1 + $0xa0] sm:$0xff]   ;;  %v3434_v19 = vld [vmem:[%s4453_s1 + $0x98] sm:$0xff]   ;;  %v3438_v23 = vld [vmem:[%s4453_s1 + $0x90] sm:$0xff]  }
   0x9   :  { %2952 = vmatpush3.bf16.msra.mxu1 %v3422_v7  ;;  %2889 = vmatprep.subr.bf16.mxu0 %v3423_v8  ;;  %v3439_v24 = vld [vmem:[%s4453_s1 + $0x48] sm:$0xff]   ;;  %v3443_v28 = vld [vmem:[%s4453_s1 + $0x40] sm:$0xff]   ;;  %v3453_v36 = vld [vmem:[%s4453_s1 + $0x178] sm:$0xff]  }
   0xa   :  { %2953 = vmatprep.subr.bf16.mxu1 %v3424_v9  ;;  %v3440_v25 = vld [vmem:[%s4453_s1 + $0xc8] sm:$0xff]   ;;  %v3444_v29 = vld [vmem:[%s4453_s1 + $0xc0] sm:$0xff]   ;;  %v3454_v37 = vld [vmem:[%s4453_s1 + $0x138] sm:$0xff]  }
   0xb   :  { %v3441_v26 = vld [vmem:[%s4453_s1 + $0x8] sm:$0xff]   ;;  %v3445_v30 = vld [vmem:[%s4453_s1] sm:$0xff]   ;;  %v3455_v38 = vld [vmem:[%s4452_s0 + $0x3c] ss:$28 sps:$4 sm:$0xff]  }
   0xc   :  { %2890 = vmatpush3.bf16.msra.mxu0 %v3425_v10  ;;  %v3442_v27 = vld [vmem:[%s4453_s1 + $0x88] sm:$0xff]   ;;  %v3446_v31 = vld [vmem:[%s4453_s1 + $0x80] sm:$0xff]   ;;  %v3459_v40 = vld [vmem:[%s4452_s0 + $0x38] ss:$28 sps:$4 sm:$0xff]  }
   0xd   :  { %2954 = vmatpush3.bf16.msra.mxu1 %v3426_v11  ;;  %2891 = vmatprep.subr.bf16.mxu0 %v3427_v12  ;;  %v3447_v32 = vld [vmem:[%s4452_s0] ss:$28 sps:$4 sm:$0xff]   ;;  %v3450_v34 = vld [vmem:[%s4452_s0 + $0x8] ss:$28 sps:$4 sm:$0xff]   ;;  %v3461_v42 = vld [vmem:[%s4453_s1 + $0x170] sm:$0xff]  }
   0xe   :  { %2955 = vmatprep.subr.bf16.mxu1 %v3428_v13  ;;  %v3449_v33 = vld [vmem:[%s4452_s0 + $0x4] ss:$28 sps:$4 sm:$0xff]   ;;  %v3452_v35 = vld [vmem:[%s4452_s0 + $0xc] ss:$28 sps:$4 sm:$0xff]   ;;  %v3462_v43 = vld [vmem:[%s4453_s1 + $0x130] sm:$0xff]  }
   0xf   :  { %829 = vmatprep.mubr.bf16.mxu0 %v3449_v33  ;;  %926 = vmatprep.mubr.bf16.mxu1 %v3452_v35  ;;  %v3457_v39 = vld [vmem:[%s4452_s0 + $0x44] ss:$28 sps:$4 sm:$0xff]   ;;  %v3463_v44 = vld [vmem:[%s4452_s0 + $0x74] ss:$28 sps:$4 sm:$0xff]   ;;  %v3465_v45 = vld [vmem:[%s4452_s0 + $0x7c] ss:$28 sps:$4 sm:$0xff]  }
  0x10   :  { %2892 = vmatpush3.bf16.msra.mxu0 %v3429_v14  ;;  %v3460_v41 = vld [vmem:[%s4452_s0 + $0x40] ss:$28 sps:$4 sm:$0xff]   ;;  %v3469_v46 = vld [vmem:[%s4453_s1 + $0x168] sm:$0xff]   ;;  %v3468_v49 = vld [vmem:[%s4452_s0 + $0x78] ss:$28 sps:$4 sm:$0xff]  }
  0x11   :  { %2956 = vmatpush3.bf16.msra.mxu1 %v3430_v15  ;;  %2893 = vmatprep.subr.bf16.mxu0 %v3431_v16  ;;  %v3470_v47 = vld [vmem:[%s4453_s1 + $0x128] sm:$0xff]   ;;  %v3473_v51 = vld [vmem:[%s4452_s0 + $0xb4] ss:$28 sps:$4 sm:$0xff]   ;;  %v3477_v52 = vld [vmem:[%s4453_s1 + $0x160] sm:$0xff]  }
  0x12   :  { %2957 = vmatprep.subr.bf16.mxu1 %v3432_v17  ;;  %v3467_v48 = vld [vmem:[%s4452_s0 + $0x70] ss:$28 sps:$4 sm:$0xff]   ;;  %v3478_v53 = vld [vmem:[%s4453_s1 + $0x120] sm:$0xff]   ;;  %v3485_v54 = vld [vmem:[%s4453_s1 + $0x158] sm:$0xff]  }
  0x13   :  { %v3471_v50 = vld [vmem:[%s4452_s0 + $0xac] ss:$28 sps:$4 sm:$0xff]   ;;  %v3486_v55 = vld [vmem:[%s4453_s1 + $0x118] sm:$0xff]   ;;  %v3479_v58 = vld [vmem:[%s4452_s0 + $0xe4] ss:$28 sps:$4 sm:$0xff]  }
  0x14   :  { %2894 = vmatpush3.bf16.msra.mxu0 %v3433_v18  ;;  %v3475_v56 = vld [vmem:[%s4452_s0 + $0xa8] ss:$28 sps:$4 sm:$0xff]   ;;  %v3476_v57 = vld [vmem:[%s4452_s0 + $0xb0] ss:$28 sps:$4 sm:$0xff]   ;;  %v3483_v62 = vld [vmem:[%s4452_s0 + $0xe0] ss:$28 sps:$4 sm:$0xff]  }
  0x15   :  { %2958 = vmatpush3.bf16.msra.mxu1 %v3434_v19  ;;  %2895 = vmatprep.subr.bf16.mxu0 %v3435_v20  ;;  %v3481_v59 = vld [vmem:[%s4452_s0 + $0xec] ss:$28 sps:$4 sm:$0xff]   ;;  %v3493_v60 = vld [vmem:[%s4453_s1 + $0x150] sm:$0xff]   ;;  %v3487_v2 = vld [vmem:[%s4452_s0 + $0x11c] ss:$28 sps:$4 sm:$0xff]  }
  0x16   :  { %2959 = vmatprep.subr.bf16.mxu1 %v3436_v21  ;;  %v3494_v61 = vld [vmem:[%s4453_s1 + $0x110] sm:$0xff]   ;;  %v3484_v63 = vld [vmem:[%s4452_s0 + $0xe8] ss:$28 sps:$4 sm:$0xff]   ;;  %v3492_v7 = vld [vmem:[%s4452_s0 + $0x120] ss:$28 sps:$4 sm:$0xff]  }
  0x17   :  { %v3501_v0 = vld [vmem:[%s4453_s1 + $0x148] sm:$0xff]   ;;  %v3489_v3 = vld [vmem:[%s4452_s0 + $0x124] ss:$28 sps:$4 sm:$0xff]   ;;  %v3491_v6 = vld [vmem:[%s4452_s0 + $0x118] ss:$28 sps:$4 sm:$0xff]  }
  0x18   :  { %2896 = vmatpush3.bf16.msra.mxu0 %v3437_v22  ;;  %v3502_v1 = vld [vmem:[%s4453_s1 + $0x108] sm:$0xff]   ;;  %v3509_v4 = vld [vmem:[%s4453_s1 + $0x140] sm:$0xff]   ;;  %v3495_v9 = vld [vmem:[%s4452_s0 + $0x154] ss:$28 sps:$4 sm:$0xff]  }
  0x19   :  { %2960 = vmatpush3.bf16.msra.mxu1 %v3438_v23  ;;  %2897 = vmatprep.subr.bf16.mxu0 %v3439_v24  ;;  %v3510_v5 = vld [vmem:[%s4453_s1 + $0x100] sm:$0xff]   ;;  %v3517_v8 = vld [vmem:[%s4453_s1 + $0x188] sm:$0xff]   ;;  %v3497_v10 = vld [vmem:[%s4452_s0 + $0x15c] ss:$28 sps:$4 sm:$0xff]  }
  0x1a   :  { %2961 = vmatprep.subr.bf16.mxu1 %v3440_v25  ;;  %v3499_v11 = vld [vmem:[%s4452_s0 + $0x150] ss:$28 sps:$4 sm:$0xff]   ;;  %v3500_v12 = vld [vmem:[%s4452_s0 + $0x158] ss:$28 sps:$4 sm:$0xff]   ;;  %v3507_v15 = vld [vmem:[%s4452_s0 + $0x188] ss:$28 sps:$4 sm:$0xff]  }
  0x1b   :  { %v3503_v13 = vld [vmem:[%s4452_s0 + $0x18c] ss:$28 sps:$4 sm:$0xff]   ;;  %v3505_v14 = vld [vmem:[%s4452_s0 + $0x194] ss:$28 sps:$4 sm:$0xff]   ;;  %v3516_v18 = vld [vmem:[%s4452_s0 + $0x19c] ss:$28 sps:$4 sm:$0xff]  }
  0x1c   :  { %2898 = vmatpush3.bf16.msra.mxu0 %v3441_v26  ;;  %v3508_v16 = vld [vmem:[%s4452_s0 + $0x190] ss:$28 sps:$4 sm:$0xff]   ;;  %v3514_v20 = vld [vmem:[%s4452_s0 + $0x198] ss:$28 sps:$4 sm:$0xff]   ;;  %v3518_v23 = vld [vmem:[%s4453_s1 + $0x180] sm:$0xff]  }
  0x1d   :  { %2962 = vmatpush3.bf16.msra.mxu1 %v3442_v27  ;;  %2899 = vmatprep.subr.bf16.mxu0 %v3443_v28  ;;  %v3513_v17 = vld [vmem:[%s4452_s0 + $0x14] ss:$28 sps:$4 sm:$0xff]   ;;  %v3519_v21 = vld [vmem:[%s4452_s0 + $0x4c] ss:$28 sps:$4 sm:$0xff]   ;;  %v3524_v26 = vld [vmem:[%s4452_s0 + $0x84] ss:$28 sps:$4 sm:$0xff]  }
  0x1e   :  { %2963 = vmatprep.subr.bf16.mxu1 %v3444_v29  ;;  %v3511_v19 = vld [vmem:[%s4452_s0 + $0x10] ss:$28 sps:$4 sm:$0xff]   ;;  %v3521_v22 = vld [vmem:[%s4452_s0 + $0x18] ss:$28 sps:$4 sm:$0xff]   ;;  %v3522_v24 = vld [vmem:[%s4452_s0 + $0x48] ss:$28 sps:$4 sm:$0xff]  }
  0x1f   :  { %v3523_v25 = vld [vmem:[%s4452_s0 + $0x50] ss:$28 sps:$4 sm:$0xff]   ;;  %v3526_v27 = vld [vmem:[%s4452_s0 + $0x88] ss:$28 sps:$4 sm:$0xff]   ;;  %v3527_v28 = vld [vmem:[%s4452_s0 + $0x80] ss:$28 sps:$4 sm:$0xff]  }
  0x20   :  { %2900 = vmatpush3.bf16.msra.mxu0 %v3445_v30  ;;  %v3528_v29 = vld [vmem:[%s4452_s0 + $0xc0] ss:$28 sps:$4 sm:$0xff]   ;;  %v3533_v33 = vld [vmem:[%s4452_s0 + $0x130] ss:$28 sps:$4 sm:$0xff]   ;;  %v3536_v35 = vld [vmem:[%s4452_s0 + $0x168] ss:$28 sps:$4 sm:$0xff]  }
  0x21   :  { %2964 = vmatpush3.bf16.msra.mxu1 %v3446_v31  ;;  %3013 = vmatprep.subr.bf16.mxu0 %v3453_v36  ;;  %v3529_v30 = vld [vmem:[%s4452_s0 + $0xbc] ss:$28 sps:$4 sm:$0xff]  }
  0x22   :  { %3396 = vmatprep.subr.bf16.mxu1 %v3453_v36  ;;  %v3531_v31 = vld [vmem:[%s4452_s0 + $0xf8] ss:$28 sps:$4 sm:$0xff]   ;;  %v3537_v36 = vld [vmem:[%s4452_s0 + $0xf0] ss:$28 sps:$4 sm:$0xff]  }
  0x23   :  { %830 = vmatmul.mubr.bf16.vlgmr.msra.gmra.mxu0 %v3447_v32  ;;  %v3532_v32 = vld [vmem:[%s4452_s0 + $0xb8] ss:$28 sps:$4 sm:$0xff]  }
  0x24   :  { %927 = vmatmul.mubr.bf16.vlgmr.msra.gmra.mxu1 %v3450_v34  ;;  %3014 = vmatpush3.bf16.msra.mxu0 %v3454_v37  ;;  %v3534_v34 = vld [vmem:[%s4452_s0 + $0xf4] ss:$28 sps:$4 sm:$0xff]  }
  0x25   :  { %837 = vmatprep.mubr.bf16.mxu0 %v3455_v38  ;;  %3404 = vmatpush3.bf16.msra.mxu1 %v3454_v37  ;;  %v3538_v37 = vld [vmem:[%s4452_s0 + $0x1a0] ss:$28 sps:$4 sm:$0xff]   ;;  %v3539_v38 = vld [vmem:[%s4452_s0 + $0x12c] ss:$28 sps:$4 sm:$0xff]  }
  0x26   :  { %934 = vmatprep.mubr.bf16.mxu1 %v3457_v39  ;;  %3015 = vmatprep.subr.bf16.mxu0 %v3461_v42 }
  0x27   :  { %3397 = vmatprep.subr.bf16.mxu1 %v3461_v42 }
  0x28   :  { %3016 = vmatpush3.bf16.msra.mxu0 %v3462_v43 }
  0x29   :  { %3405 = vmatpush3.bf16.msra.mxu1 %v3462_v43  ;;  %3017 = vmatprep.subr.bf16.mxu0 %v3469_v46 }
  0x2a   :  { %3398 = vmatprep.subr.bf16.mxu1 %v3469_v46 }
  0x2b   :  { %838 = vmatmul.mubr.bf16.gmra.mxu0 %v3459_v40 }
  0x2c   :  { %935 = vmatmul.mubr.bf16.gmra.mxu1 %v3460_v41  ;;  %845 = vmatprep.mubr.bf16.mxu0 %v3463_v44 }
  0x2d   :  { %942 = vmatprep.mubr.bf16.mxu1 %v3465_v45  ;;  %3018 = vmatpush3.bf16.msra.mxu0 %v3470_v47 }
  0x2e   :  { %3406 = vmatpush3.bf16.msra.mxu1 %v3470_v47  ;;  %3019 = vmatprep.subr.bf16.mxu0 %v3477_v52 }
  0x2f   :  { %3399 = vmatprep.subr.bf16.mxu1 %v3477_v52 }
  0x31   :  { %3020 = vmatpush3.bf16.msra.mxu0 %v3478_v53 }
  0x32   :  { %3407 = vmatpush3.bf16.msra.mxu1 %v3478_v53  ;;  %3021 = vmatprep.subr.bf16.mxu0 %v3485_v54 }
  0x33   :  { %846 = vmatmul.mubr.bf16.gmra.mxu0 %v3467_v48  ;;  %3400 = vmatprep.subr.bf16.mxu1 %v3485_v54 }
  0x34   :  { %943 = vmatmul.mubr.bf16.gmra.mxu1 %v3468_v49  ;;  %853 = vmatprep.mubr.bf16.mxu0 %v3471_v50 }
  0x35   :  { %950 = vmatprep.mubr.bf16.mxu1 %v3473_v51  ;;  %3022 = vmatpush3.bf16.msra.mxu0 %v3486_v55 }
  0x36   :  { %3408 = vmatpush3.bf16.msra.mxu1 %v3486_v55  ;;  %3023 = vmatprep.subr.bf16.mxu0 %v3493_v60 }
  0x37   :  { %3401 = vmatprep.subr.bf16.mxu1 %v3493_v60 }
  0x39   :  { %3024 = vmatpush3.bf16.msra.mxu0 %v3494_v61 }
  0x3a   :  { %3409 = vmatpush3.bf16.msra.mxu1 %v3494_v61  ;;  %3025 = vmatprep.subr.bf16.mxu0 %v3501_v0 }
  0x3b   :  { %854 = vmatmul.mubr.bf16.gmra.mxu0 %v3475_v56  ;;  %3402 = vmatprep.subr.bf16.mxu1 %v3501_v0 }
  0x3c   :  { %951 = vmatmul.mubr.bf16.gmra.mxu1 %v3476_v57  ;;  %861 = vmatprep.mubr.bf16.mxu0 %v3479_v58 }
  0x3d   :  { %958 = vmatprep.mubr.bf16.mxu1 %v3481_v59  ;;  %3026 = vmatpush3.bf16.msra.mxu0 %v3502_v1 }
  0x3e   :  { %3410 = vmatpush3.bf16.msra.mxu1 %v3502_v1  ;;  %3027 = vmatprep.subr.bf16.mxu0 %v3509_v4 }
  0x3f   :  { %3403 = vmatprep.subr.bf16.mxu1 %v3509_v4 }
  0x41   :  { %3028 = vmatpush3.bf16.msra.mxu0 %v3510_v5 }
  0x42   :  { %3411 = vmatpush3.bf16.msra.mxu1 %v3510_v5 }
  0x43   :  { %862 = vmatmul.mubr.bf16.gmra.mxu0 %v3483_v62  ;;  %3172 = vmatprep.subr.bf16.mxu1 %v3517_v8 }
  0x44   :  { %959 = vmatmul.mubr.bf16.gmra.mxu1 %v3484_v63  ;;  %869 = vmatprep.mubr.bf16.mxu0 %v3487_v2 }
  0x45   :  { %966 = vmatprep.mubr.bf16.mxu1 %v3489_v3 }
  0x4b   :  { %870 = vmatmul.mubr.bf16.gmra.mxu0 %v3491_v6 }
  0x4c   :  { %967 = vmatmul.mubr.bf16.gmra.mxu1 %v3492_v7  ;;  %877 = vmatprep.mubr.bf16.mxu0 %v3495_v9 }
  0x4d   :  { %974 = vmatprep.mubr.bf16.mxu1 %v3497_v10 }
  0x53   :  { %878 = vmatmul.mubr.bf16.gmra.mxu0 %v3499_v11 }
  0x54   :  { %975 = vmatmul.mubr.bf16.gmra.mxu1 %v3500_v12  ;;  %885 = vmatprep.mubr.bf16.mxu0 %v3503_v13 }
  0x55   :  { %982 = vmatprep.mubr.bf16.mxu1 %v3505_v14 }
  0x5b   :  { %886 = vmatmul.mubr.bf16.gmra.mxu0 %v3507_v15 }
  0x5c   :  { %983 = vmatmul.mubr.bf16.gmra.mxu1 %v3508_v16  ;;  %1023 = vmatprep.mubr.bf16.mxu0 %v3513_v17 }
  0x5d   :  { %1079 = vmatprep.mubr.bf16.mxu1 %v3516_v18 }
  0x63   :  { %1024 = vmatmul.mubr.bf16.vlgmr.msra.gmra.mxu0 %v3511_v19 }
  0x64   :  { %1080 = vmatmul.mubr.bf16.vlgmr.msra.gmra.mxu1 %v3514_v20  ;;  %1031 = vmatprep.mubr.bf16.mxu0 %v3519_v21 }
  0x65   :  { %3173 = vmatpush3.bf16.msra.mxu1 %v3517_v8  ;;  %3176 = vmatprep.mubr.msk.bf16.mxu1 %vm772_vm0, %v3521_v22 }
  0x66   :  { %3174 = vmatprep.subr.bf16.mxu1 %v3518_v23 }
  0x69   :  { %3175 = vmatpush3.bf16.msra.mxu1 %v3518_v23 }
  0x6b   :  { %1032 = vmatmul.mubr.bf16.gmra.mxu0 %v3522_v24 }
  0x6c   :  { %3177 = vmatmul.mubr.msk.bf16.vlgmr.msra.gmra.mxu1 %vm772_vm0, %v3523_v25  ;;  %1039 = vmatprep.mubr.bf16.mxu0 %v3524_v26 }
  0x6d   :  { %3180 = vmatprep.mubr.msk.bf16.mxu1 %vm772_vm0, %v3526_v27 }
  0x73   :  { %1040 = vmatmul.mubr.bf16.gmra.mxu0 %v3527_v28 }
  0x74   :  { %3181 = vmatmul.mubr.msk.bf16.gmra.mxu1 %vm772_vm0, %v3528_v29  ;;  %1047 = vmatprep.mubr.bf16.mxu0 %v3529_v30 }
  0x75   :  { %3184 = vmatprep.mubr.msk.bf16.mxu1 %vm772_vm0, %v3531_v31 }
  0x7b   :  { %1048 = vmatmul.mubr.bf16.gmra.mxu0 %v3532_v32 }
  0x7c   :  { %3185 = vmatmul.mubr.msk.bf16.gmra.mxu1 %vm772_vm0, %v3533_v33  ;;  %1055 = vmatprep.mubr.bf16.mxu0 %v3534_v34 }
  0x7d   :  { %3188 = vmatprep.mubr.msk.bf16.mxu1 %vm772_vm0, %v3536_v35 }
  0x83   :  { %1056 = vmatmul.mubr.bf16.gmra.mxu0 %v3537_v36 }
  0x84   :  { %3189 = vmatmul.mubr.msk.bf16.gmra.mxu1 %vm772_vm0, %v3538_v37  ;;  %1063 = vmatprep.mubr.bf16.mxu0 %v3539_v38 }
  0x85   :  { %12 = vsyncpa [#allocation3], 0  ;;  %v3541_v39 = vld [vmem:[%s4452_s0 + $0x128] ss:$28 sps:$4 sm:$0xff]   ;;  %v3544_v41 = vld [vmem:[%s4452_s0 + $0x160] ss:$28 sps:$4 sm:$0xff]  }
  0x86   :  { %v3542_v40 = vld [vmem:[%s4452_s0 + $0x164] ss:$28 sps:$4 sm:$0xff]   ;;  %v3545_v42 = vld [vmem:[%s4455_s3 + $0x38] sm:$0xff]   ;;  %v3635_v43 = vmov 0.0   ;;  %v3547_v45 = vld [vmem:[%s4455_s3 + $0x30] sm:$0xff]   ;;  %vm3636_vm1 = vmmov 0  }
  0x87   :  { %3192 = vmatprep.subr.bf16.mxu1 %v3635_v43  ;;  %3216 = vmatprep.subr.bf16.mxu0 %v3635_v43  ;;  %v3546_v44 = vld [vmem:[%s4455_s3 + $0x58] sm:$0xff]   ;;  %v3549_v46 = vld [vmem:[%s4455_s3 + $0x50] sm:$0xff]   ;;  %v3548_v47 = vld [vmem:[%s4455_s3 + $0x28] sm:$0xff]   ;;  %vm1253_vm2 = vcmask 523264   ;;  %s3637_s13 = smov [#allocation2]   ;;  %vm2547_vm3 = vcmask 74752  }
  0x88   :  { %3193 = vmatpush3.bf16.msra.mxu1 %v3545_v42  ;;  %3217 = vmatpush3.bf16.msra.mxu0 %v3546_v44  ;;  %v3550_v48 = vld [vmem:[%s4455_s3 + $0x48] sm:$0xff]   ;;  %v3551_v52 = vld [vmem:[%s4455_s3 + $0x20] sm:$0xff]   ;;  %s2555_s14 = sshll.u32 %s3637_s13, 4  ;;  %s2556_s14 = int_to_ptr.vmem [resolvable:$true] %s2555_s14 }
  0x89   :  { %3194 = vmatprep.subr.bf16.mxu1 %v3635_v43  ;;  %3218 = vmatprep.subr.bf16.mxu0 %v3635_v43  ;;  %v3552_v53 = vld [vmem:[%s4455_s3 + $0x40] sm:$0xff]   ;;  %p3618_p1 = scmp.lt.s32.totalorder %s2556_s14, %s2556_s14 }
  0x8a   :  { %3200 = vmatprep.mubr.msk.bf16.mxu1 %vm3636_vm1, %v3635_v43 }
  0x8b   :  { %1064 = vmatmul.mubr.bf16.gmra.mxu0 %v3541_v39 }
  0x8c   :  { %1071 = vmatprep.mubr.bf16.mxu0 %v3542_v40  ;;  %3195 = vmatpush3.bf16.msra.mxu1 %v3547_v45 }
  0x8d   :  { %3219 = vmatpush3.bf16.msra.mxu0 %v3549_v46  ;;  %3196 = vmatprep.subr.bf16.mxu1 %v3635_v43 }
  0x8e   :  { %3220 = vmatprep.subr.bf16.mxu0 %v3635_v43 }
  0x90   :  { %3197 = vmatpush3.bf16.msra.mxu1 %v3548_v47 }
  0x91   :  { %3221 = vmatpush3.bf16.msra.mxu0 %v3550_v48  ;;  %3198 = vmatprep.subr.bf16.mxu1 %v3635_v43 }
  0x92   :  { %3222 = vmatprep.subr.bf16.mxu0 %v3635_v43 }
  0x93   :  { %1072 = vmatmul.mubr.bf16.gmra.mxu0 %v3544_v41 }
  0x94   :  { %3199 = vmatpush3.bf16.msra.mxu1 %v3551_v52  ;;  %3224 = vmatprep.mubr.msk.bf16.mxu0 %vm3636_vm1, %v3635_v43 }
  0x95   :  { %3223 = vmatpush3.bf16.msra.mxu0 %v3552_v53  ;;  %3204 = vmatprep.subr.bf16.mxu1 %v3635_v43 }
  0x96   :  { %3240 = vmatprep.subr.bf16.mxu0 %v3635_v43 }
  0xe3   :  { %v2901_v49 = vpop.f32.mrf.mxu0 }
  0xe4   :  { %v2965_v50 = vpop.f32.mrf.mxu1 }
  0xe5   :  { %v2902_v51 = vpop.f32.mrf.mxu0 }
  0xe6   :  { %v2903_v54 = vadd.f32 %v2902_v51, %v2901_v49  ;;  %v2966_v55 = vpop.f32.mrf.mxu1 }
  0xe7   :  { %v2967_v56 = vadd.f32 %v2966_v55, %v2965_v50  ;;  %v2904_v57 = vpop.f32.mrf.mxu0 }
  0xe8   :  { %v2968_v58 = vpop.f32.mrf.mxu1 }
  0xe9   :  { %v4039_v59 = vadd.f32 %v2967_v56, %v2903_v54  ;;  %v2905_v60 = vpop.f32.mrf.mxu0 }
  0xea   :  { %v2906_v61 = vadd.f32 %v2905_v60, %v2904_v57  ;;  %v2969_v62 = vpop.f32.mrf.mxu1 }
  0xeb   :  { %v2970_v63 = vadd.f32 %v2969_v62, %v2968_v58  ;;  %v2907_v0 = vpop.f32.mrf.mxu0 }
  0xec   :  { %v2971_v1 = vpop.f32.mrf.mxu1 }
  0xed   :  { %v4044_v2 = vadd.f32 %v2970_v63, %v2906_v61  ;;  %v2908_v3 = vpop.f32.mrf.mxu0 }
  0xee   :  { %v2909_v4 = vadd.f32 %v2908_v3, %v2907_v0  ;;  %v2972_v5 = vpop.f32.mrf.mxu1 }
  0xef   :  { %v2973_v6 = vadd.f32 %v2972_v5, %v2971_v1  ;;  %v2910_v7 = vpop.f32.mrf.mxu0 }
  0xf0   :  { %v2974_v8 = vpop.f32.mrf.mxu1 }
  0xf1   :  { %v4046_v9 = vadd.f32 %v2973_v6, %v2909_v4  ;;  %v2911_v10 = vpop.f32.mrf.mxu0 }
  0xf2   :  { %v2912_v11 = vadd.f32 %v2911_v10, %v2910_v7  ;;  %v2975_v12 = vpop.f32.mrf.mxu1 }
  0xf3   :  { %v2976_v13 = vadd.f32 %v2975_v12, %v2974_v8  ;;  %v2913_v14 = vpop.f32.mrf.mxu0 }
  0xf4   :  { %v2977_v15 = vpop.f32.mrf.mxu1 }
  0xf5   :  { %v4048_v16 = vadd.f32 %v2976_v13, %v2912_v11  ;;  %v2914_v17 = vpop.f32.mrf.mxu0 }
  0xf6   :  { %v2915_v18 = vadd.f32 %v2914_v17, %v2913_v14  ;;  %v2978_v19 = vpop.f32.mrf.mxu1 }
  0xf7   :  { %v2979_v20 = vadd.f32 %v2978_v19, %v2977_v15  ;;  %v2916_v21 = vpop.f32.mrf.mxu0 }
  0xf8   :  { %v2980_v22 = vpop.f32.mrf.mxu1 }
  0xf9   :  { %v4050_v23 = vadd.f32 %v2979_v20, %v2915_v18  ;;  %v2917_v24 = vpop.f32.mrf.mxu0 }
  0xfa   :  { %v2918_v25 = vadd.f32 %v2917_v24, %v2916_v21  ;;  %v2981_v26 = vpop.f32.mrf.mxu1 }
  0xfb   :  { %v2982_v27 = vadd.f32 %v2981_v26, %v2980_v22  ;;  %v2919_v28 = vpop.f32.mrf.mxu0 }
  0xfc   :  { %v2983_v29 = vpop.f32.mrf.mxu1 }
  0xfd   :  { %v4052_v30 = vadd.f32 %v2982_v27, %v2918_v25  ;;  %v2920_v31 = vpop.f32.mrf.mxu0 }
  0xfe   :  { %v2921_v32 = vadd.f32 %v2920_v31, %v2919_v28  ;;  %v2984_v33 = vpop.f32.mrf.mxu1 }
  0xff   :  { %v2985_v34 = vadd.f32 %v2984_v33, %v2983_v29  ;;  %v2922_v35 = vpop.f32.mrf.mxu0 }
 0x100   :  { %v2986_v36 = vpop.f32.mrf.mxu1 }
 0x101   :  { %v4054_v37 = vadd.f32 %v2985_v34, %v2921_v32  ;;  %v2923_v38 = vpop.f32.mrf.mxu0 }
 0x102   :  { %v2924_v39 = vadd.f32 %v2923_v38, %v2922_v35  ;;  %v2987_v40 = vpop.f32.mrf.mxu1 }
 0x103   :  { %v2988_v41 = vadd.f32 %v2987_v40, %v2986_v36  ;;  %v2925_v42 = vpop.f32.mrf.mxu0 }
 0x104   :  { %v2989_v44 = vpop.f32.mrf.mxu1 }
 0x105   :  { %v4056_v45 = vadd.f32 %v2988_v41, %v2924_v39  ;;  %v2926_v46 = vpop.f32.mrf.mxu0 }
 0x106   :  { %v2927_v47 = vadd.f32 %v2926_v46, %v2925_v42  ;;  %v2990_v48 = vpop.f32.mrf.mxu1 }
 0x107   :  { %v2991_v49 = vadd.f32 %v2990_v48, %v2989_v44  ;;  %v2928_v50 = vpop.f32.mrf.mxu0 }
 0x108   :  { %v4058_v51 = vpop.f32.mrf.mxu1 }
 0x109   :  { %v4060_v52 = vadd.f32 %v2991_v49, %v2927_v47  ;;  %v2929_v53 = vpop.f32.mrf.mxu0 }
 0x10a   :  { %v4062_v54 = vadd.f32 %v2929_v53, %v2928_v50  ;;  %v4064_v55 = vpop.f32.mrf.mxu1 }
 0x10b   :  { %v2931_v56 = vpop.f32.mrf.mxu0 }
 0x10c   :  { %v2995_v57 = vpop.f32.mrf.mxu1 }
 0x10d   :  { %v2932_v58 = vpop.f32.mrf.mxu0 }
 0x10e   :  { %v2933_v60 = vadd.f32 %v2932_v58, %v2931_v56  ;;  %v2996_v61 = vpop.f32.mrf.mxu1 }
 0x10f   :  { %v2997_v62 = vadd.f32 %v2996_v61, %v2995_v57  ;;  %v2934_v63 = vpop.f32.mrf.mxu0 }
 0x110   :  { %v2998_v0 = vpop.f32.mrf.mxu1 }
 0x111   :  { %v4066_v1 = vadd.f32 %v2997_v62, %v2933_v60  ;;  %v2935_v3 = vpop.f32.mrf.mxu0 }
 0x112   :  { %v2936_v4 = vadd.f32 %v2935_v3, %v2934_v63  ;;  %v2999_v5 = vpop.f32.mrf.mxu1 }
 0x113   :  { %v3000_v6 = vadd.f32 %v2999_v5, %v2998_v0  ;;  %v2937_v7 = vpop.f32.mrf.mxu0 }
 0x114   :  { %v4068_v8 = vpop.f32.mrf.mxu1 }
 0x115   :  { %v4070_v10 = vadd.f32 %v3000_v6, %v2936_v4  ;;  %v2938_v11 = vpop.f32.mrf.mxu0 }
 0x116   :  { %v4072_v12 = vadd.f32 %v2938_v11, %v2937_v7  ;;  %v4074_v13 = vpop.f32.mrf.mxu1 }
 0x117   :  { %v4076_v14 = vpop.f32.mrf.mxu0 }
 0x118   :  { %v4078_v15 = vpop.f32.mrf.mxu1 }
 0x119   :  { %v4080_v17 = vpop.f32.mrf.mxu0 }
 0x11a   :  { %v4082_v18 = vpop.f32.mrf.mxu1 }
 0x11b   :  { %v2943_v19 = vpop.f32.mrf.mxu0 }
 0x11c   :  { %v3007_v20 = vpop.f32.mrf.mxu1 }
 0x11d   :  { %v2944_v21 = vpop.f32.mrf.mxu0 }
 0x11e   :  { %v2945_v22 = vadd.f32 %v2944_v21, %v2943_v19  ;;  %v3008_v24 = vpop.f32.mrf.mxu1 }
 0x11f   :  { %v3009_v25 = vadd.f32 %v3008_v24, %v3007_v20  ;;  %v2946_v26 = vpop.f32.mrf.mxu0 }
 0x120   :  { %v3010_v27 = vpop.f32.mrf.mxu1 }
 0x121   :  { %v985_v28 = vadd.f32 %v3009_v25, %v2945_v22  ;;  %v2947_v29 = vpop.f32.mrf.mxu0 }
 0x122   :  { %v2948_v31 = vadd.f32 %v2947_v29, %v2946_v26  ;;  %v3011_v32 = vpop.f32.mrf.mxu1 }
 0x123   :  { %v3012_v33 = vadd.f32 %v3011_v32, %v3010_v27  ;;  %v3029_v34 = vpop.f32.mrf.mxu0 }
 0x124   :  { %v3071_v35 = vpop.f32.mrf.mxu1 }
 0x125   :  { %v988_v36 = vadd.f32 %v3012_v33, %v2948_v31  ;;  %v3030_v38 = vpop.f32.mrf.mxu0 }
 0x126   :  { %v3072_v39 = vpop.f32.mrf.mxu1  ;;  %v3031_v6 = vadd.f32 %v3030_v38, %v3029_v34 }
 0x127   :  { %v3073_v40 = vadd.f32 %v3072_v39, %v3071_v35  ;;  %v3032_v41 = vpop.f32.mrf.mxu0 }
 0x128   :  { %v3074_v42 = vpop.f32.mrf.mxu1 }
 0x129   :  { %v3033_v44 = vpop.f32.mrf.mxu0  ;;  %v4084_v46 = vadd.f32 %v3073_v40, %v985_v28 }
 0x12a   :  { %v3075_v47 = vpop.f32.mrf.mxu1  ;;  %v3034_v25 = vadd.f32 %v3033_v44, %v3032_v41 }
 0x12b   :  { %v3076_v48 = vadd.f32 %v3075_v47, %v3074_v42  ;;  %v3035_v49 = vpop.f32.mrf.mxu0 }
 0x12c   :  { %v3178_v50 = vpop.f32.mrf.mxu1  ;;  %v1029_v34 = vadd.f32 %v3034_v25, %v4044_v2 }
 0x12d   :  { %v3036_v53 = vpop.f32.mrf.mxu0  ;;  %v4086_v56 = vadd.f32 %v3076_v48, %v988_v36 }
 0x12e   :  { %v3037_v57 = vadd.f32 %v3036_v53, %v3035_v49  ;;  %v1122_v58 = vpop.f32.mrf.mxu1 }
 0x12f   :  { %v3038_v60 = vpop.f32.mrf.mxu0 }
 0x130   :  { %v1034_v61 = vadd.f32 %v3037_v57, %v4046_v9  ;;  %v3179_v62 = vpop.f32.mrf.mxu1  ;;  %v1026_v9 = vadd.f32 %v3031_v6, %v4039_v59 }
 0x131   :  { %v3039_v63 = vpop.f32.mrf.mxu0 }
 0x132   :  { %v4089_v0 = vadd.f32 %v3178_v50, %v1034_v61  ;;  %v3040_v3 = vadd.f32 %v3039_v63, %v3038_v60  ;;  %v1125_v4 = vpop.f32.mrf.mxu1  ;;  %v4096_v29 = vadd.f32 %v1122_v58, %v1026_v9 }
 0x133   :  { %v3041_v5 = vpop.f32.mrf.mxu0  ;;  %v4104_v39 = vadd.f32 %v1125_v4, %v1029_v34 }
 0x134   :  { %v1037_v7 = vadd.f32 %v3040_v3, %v4048_v16  ;;  %v3182_v11 = vpop.f32.mrf.mxu1 }
 0x135   :  { %v3042_v19 = vpop.f32.mrf.mxu0 }
 0x136   :  { %v4092_v20 = vadd.f32 %v3179_v62, %v1037_v7  ;;  %v3043_v21 = vadd.f32 %v3042_v19, %v3041_v5  ;;  %v1138_v22 = vpop.f32.mrf.mxu1  ;;  %v3003_v19 = vadd.f32 %v4074_v13, %v4068_v8  ;;  %v2942_v8 = vadd.f32 %v4080_v17, %v4076_v14  ;;  %v2677_v14 = vld [vmem:[%s4454_s2] ss:$0 sm:$0xff] }
 0x137   :  { %v3044_v24 = vpop.f32.mrf.mxu0 }
 0x138   :  { %v1042_v26 = vadd.f32 %v3043_v21, %v4050_v23  ;;  %v3183_v27 = vpop.f32.mrf.mxu1 }
 0x139   :  { %v3045_v28 = vpop.f32.mrf.mxu0 }
 0x13a   :  { %v4098_v31 = vadd.f32 %v1138_v22, %v1042_v26  ;;  %v3046_v32 = vadd.f32 %v3045_v28, %v3044_v24  ;;  %v1141_v16 = vpop.f32.mrf.mxu1  ;;  %v2994_v26 = vadd.f32 %v4064_v55, %v4058_v51 }
 0x13b   :  { %v3047_v33 = vpop.f32.mrf.mxu0 }
 0x13c   :  { %v1185_v35 = vmax.f32 %v4096_v29, %v4098_v31  ;;  %v1045_v36 = vadd.f32 %v3046_v32, %v4052_v30  ;;  %v3186_v38 = vpop.f32.mrf.mxu1  ;;  %v3554_v29 = vld [vmem:[%s4455_s3 + $0x98] sm:$0xff]  }
 0x13d   :  { %v3048_v59 = vpop.f32.mrf.mxu0 }
 0x13e   :  { %v4106_v23 = vadd.f32 %v1141_v16, %v1045_v36  ;;  %v3049_v40 = vadd.f32 %v3048_v59, %v3047_v33  ;;  %v1154_v41 = vpop.f32.mrf.mxu1 }
 0x13f   :  { %v3050_v42 = vpop.f32.mrf.mxu0 }
 0x140   :  { %v1186_v44 = vmax.f32 %v4104_v39, %v4106_v23  ;;  %v1050_v47 = vadd.f32 %v3049_v40, %v4054_v37  ;;  %v3187_v49 = vpop.f32.mrf.mxu1  ;;  %v3555_v39 = vld [vmem:[%s4455_s3 + $0x10] sm:$0xff]  }
 0x141   :  { %v3051_v2 = vpop.f32.mrf.mxu0  ;;  %v3556_v23 = vld [vmem:[%s4455_s3 + $0x90] sm:$0xff]  }
 0x142   :  { %v1147_v48 = vadd.f32 %v3182_v11, %v1050_v47  ;;  %v3052_v50 = vadd.f32 %v3051_v2, %v3050_v42  ;;  %v1157_v61 = vpop.f32.mrf.mxu1 }
 0x143   :  { %v3053_v53 = vpop.f32.mrf.mxu0 }
 0x144   :  { %v1187_v30 = vmax.f32 %v4089_v0, %v1147_v48  ;;  %v1053_v57 = vadd.f32 %v3052_v50, %v4056_v45  ;;  %v3190_v4 = vpop.f32.mrf.mxu1 }
 0x145   :  { %v3054_v58 = vpop.f32.mrf.mxu0  ;;  %v1179_v22 = vadd.f32 %v3190_v4, %v4084_v46  ;;  %v3560_v4 = vld [vmem:[%s4455_s3 + $0x80] sm:$0xff]  }
 0x146   :  { %v1150_v60 = vadd.f32 %v3183_v27, %v1053_v57  ;;  %v1170_v37 = vpop.f32.mrf.mxu1  ;;  %v3055_v21 = vadd.f32 %v3054_v58, %v3053_v53  ;;  %v977_v27 = vadd.f32 %v3003_v19, %v4072_v12  ;;  %v964_v12 = vadd.f32 %v2994_v26, %v4062_v54  ;;  %v3565_v19 = vld [vmem:[%s4455_s3 + $0x68] sm:$0xff]   ;;  %v3572_v26 = vld [vmem:[%s4455_s3 + $0x110] sm:$0xff]  }
 0x147   :  { %v3056_v62 = vpop.f32.mrf.mxu0 }
 0x148   :  { %v1188_v63 = vmax.f32 %v4092_v20, %v1150_v60  ;;  %v3191_v24 = vpop.f32.mrf.mxu1  ;;  %v1058_v13 = vadd.f32 %v3055_v21, %v4060_v52  ;;  %v3567_v21 = vld [vmem:[%s4455_s3 + $0x60] sm:$0xff]  }
 0x149   :  { %v3057_v3 = vpop.f32.mrf.mxu0  ;;  %v1182_v46 = vadd.f32 %v3191_v24, %v4086_v56  ;;  %v3570_v24 = vld [vmem:[%s4455_s3 + $0x118] sm:$0xff]  }
 0x14a   :  { %v3058_v33 = vadd.f32 %v3057_v3, %v3056_v62  ;;  %v1155_v40 = vadd.f32 %v1154_v41, %v1058_v13  ;;  %v3559_v3 = vld [vmem:[%s4455_s3] sm:$0xff]   ;;  %v3578_v13 = vld [vmem:[%s4455_s3 + $0x158] sm:$0xff]  }
 0x14b   :  { %v3059_v5 = vpop.f32.mrf.mxu0 }
 0x14c   :  { %v1061_v52 = vadd.f32 %v3058_v33, %v964_v12  ;;  %v3580_v33 = vld [vmem:[%s4455_s3 + $0x150] sm:$0xff]   ;;  %v3585_v12 = vld [vmem:[%s4455_s3 + $0x138] sm:$0xff]  }
 0x14d   :  { %v3060_v6 = vpop.f32.mrf.mxu0 }
 0x14e   :  { %v3061_v7 = vadd.f32 %v3060_v6, %v3059_v5  ;;  %v1158_v50 = vadd.f32 %v1157_v61, %v1061_v52  ;;  %v3553_v61 = vld [vmem:[%s4455_s3 + $0x18] sm:$0xff]   ;;  %v3590_v52 = vld [vmem:[%s4455_s3 + $0x188] sm:$0xff]  }
 0x14f   :  { %v3062_v11 = vpop.f32.mrf.mxu0  ;;  %v3561_v5 = vld [vmem:[%s4455_s3 + $0x78] sm:$0xff]  }
 0x150   :  { %v1066_v0 = vadd.f32 %v3061_v7, %v4066_v1  ;;  %v3006_v1 = vadd.f32 %v4082_v18, %v4078_v15  ;;  %v3562_v6 = vld [vmem:[%s4455_s3 + $0xd8] sm:$0xff]   ;;  %v3563_v7 = vld [vmem:[%s4455_s3 + $0x70] sm:$0xff]  }
 0x151   :  { %v3063_v45 = vpop.f32.mrf.mxu0 }
 0x152   :  { %v1163_v25 = vadd.f32 %v3186_v38, %v1066_v0  ;;  %v3064_v9 = vadd.f32 %v3063_v45, %v3062_v11  ;;  %v980_v59 = vadd.f32 %v3006_v1, %v2942_v8  ;;  %v3564_v11 = vld [vmem:[%s4455_s3 + $0xd0] sm:$0xff]   ;;  %v3566_v0 = vld [vmem:[%s4455_s3 + $0xc8] sm:$0xff]   ;;  %v3568_v45 = vld [vmem:[%s4455_s3 + $0xc0] sm:$0xff]  }
 0x153   :  { %v3065_v20 = vpop.f32.mrf.mxu0  ;;  %v3576_v8 = vld [vmem:[%s4455_s3 + $0x100] sm:$0xff]   ;;  %v3577_v1 = vld [vmem:[%s4455_s3 + $0xf8] sm:$0xff]  }
 0x154   :  { %v1191_v28 = vmax.f32 %v1163_v25, %v1179_v22  ;;  %v1069_v32 = vadd.f32 %v3064_v9, %v4070_v10  ;;  %v3569_v22 = vld [vmem:[%s4455_s3 + $0xb8] sm:$0xff]  }
 0x155   :  { %v3066_v16 = vpop.f32.mrf.mxu0 }
 0x156   :  { %v1195_v34 = vmax.f32 %v1187_v30, %v1191_v28  ;;  %v1166_v36 = vadd.f32 %v3187_v49, %v1069_v32  ;;  %v3067_v51 = vadd.f32 %v3066_v16, %v3065_v20  ;;  %v1173_v49 = vpop.f32.mrf.mxu1  ;;  %v3571_v20 = vld [vmem:[%s4455_s3 + $0xb0] sm:$0xff]   ;;  %v3574_v28 = vld [vmem:[%s4455_s3 + $0x108] sm:$0xff]   ;;  %v3575_v32 = vld [vmem:[%s4455_s3 + $0xa0] sm:$0xff]  }
 0x157   :  { %v3068_v55 = vpop.f32.mrf.mxu0  ;;  %v3579_v16 = vld [vmem:[%s4455_s3 + $0xf0] sm:$0xff]  }
 0x158   :  { %v1192_v38 = vmax.f32 %v1166_v36, %v1182_v46  ;;  %v1074_v10 = vadd.f32 %v3067_v51, %v977_v27  ;;  %v1206_v42 = vadd.f32 %v2677_v14, %v1195_v34  ;;  %v3573_v27 = vld [vmem:[%s4455_s3 + $0xa8] sm:$0xff]   ;;  %v3583_v51 = vld [vmem:[%s4455_s3 + $0xe0] sm:$0xff]  }
 0x159   :  { %v3069_v15 = vpop.f32.mrf.mxu0  ;;  %v3581_v34 = vld [vmem:[%s4455_s3 + $0xe8] sm:$0xff]  }
 0x15a   :  { %v1196_v17 = vmax.f32 %v1188_v63, %v1192_v38  ;;  %v1171_v18 = vadd.f32 %v1170_v37, %v1074_v10  ;;  %v3070_v56 = vadd.f32 %v3069_v15, %v3068_v55  ;;  %v3558_v63 = vld [vmem:[%s4455_s3 + $0x88] sm:$0xff]   ;;  %v3584_v55 = vld [vmem:[%s4455_s3 + $0x140] sm:$0xff]   ;;  %v3586_v38 = vld [vmem:[%s4455_s3 + $0x198] sm:$0xff]  }
 0x15b   :  { %v3582_v36 = vld [vmem:[%s4455_s3 + $0x148] sm:$0xff]  }
 0x15c   :  { %v1207_v47 = vadd.f32 %v2677_v14, %v1196_v17  ;;  %v1189_v2 = vmax.f32 %v1155_v40, %v1171_v18  ;;  %v1077_v48 = vadd.f32 %v3070_v56, %v980_v59  ;;  %v3587_v40 = vld [vmem:[%s4455_s3 + $0x130] sm:$0xff]   ;;  %v3589_v15 = vld [vmem:[%s4455_s3 + $0x128] sm:$0xff]   ;;  %v3591_v17 = vld [vmem:[%s4455_s3 + $0x120] sm:$0xff]  }
 0x15d   :  { %v3592_v18 = vld [vmem:[%s4455_s3 + $0x180] sm:$0xff]   ;;  %v3593_v56 = vld [vmem:[%s4455_s3 + $0x178] sm:$0xff]  }
 0x15e   :  { %v4132_v54 = vpack.c.bf16 %v1207_v47, %v1206_v42  ;;  %v1193_v41 = vmax.f32 %v1185_v35, %v1189_v2  ;;  %v1174_v53 = vadd.f32 %v1173_v49, %v1077_v48  ;;  %v3594_v42 = vld [vmem:[%s4455_s3 + $0x1d8] sm:$0xff]   ;;  %v3595_v48 = vld [vmem:[%s4455_s3 + $0x170] sm:$0xff]  }
 0x15f   :  { %v3596_v49 = vld [vmem:[%s4455_s3 + $0x1d0] sm:$0xff]  }
 0x160   :  { %v1190_v30 = vmax.f32 %v1158_v50, %v1174_v53  ;;  %v1204_v58 = vadd.f32 %v2677_v14, %v1193_v41  ;;  %v1997_v59 = vrot.slane %v4132_v54, 2  ;;  %v1919_v47 = vrot.slane %v4132_v54, 1  ;;  %v3597_v50 = vld [vmem:[%s4455_s3 + $0x168] sm:$0xff]   ;;  %v3599_v53 = vld [vmem:[%s4455_s3 + $0x160] sm:$0xff]  }
 0x161   :  { %v2153_v2 = vrot.slane %v4132_v54, 4  ;;  %v3598_v41 = vld [vmem:[%s4455_s3 + $0x1c8] sm:$0xff]  }
 0x162   :  { %v1194_v57 = vmax.f32 %v1186_v44, %v1190_v30  ;;  %v3557_v44 = vld [vmem:[%s4455_s3 + $0x8] sm:$0xff]   ;;  %v3600_v30 = vld [vmem:[%s4455_s3 + $0x1c0] sm:$0xff]  }
 0x164   :  { %v1205_v60 = vadd.f32 %v2677_v14, %v1194_v57  ;;  %v3588_v14 = vld [vmem:[%s4455_s3 + $0x190] sm:$0xff]   ;;  %v3601_v57 = vld [vmem:[%s4455_s3 + $0x1b8] sm:$0xff]  }
 0x166   :  { %v4140_v62 = vpack.c.bf16 %v1205_v60, %v1204_v58  ;;  %v2075_v58 = vrot.slane %v4132_v54, 3  ;;  %v2309_v60 = vrot.slane %v4132_v54, 6 }
 0x168   :  { %v1228_v31 = vrot.slane %v4140_v62, 1  ;;  %v1373_v35 = vrot.slane %v4140_v62, 2  ;;  %v1529_v37 = vrot.slane %v4140_v62, 4  ;;  %v1451_v25 = vrot.slane %v4140_v62, 3 }
 0x169   :  { %v1685_v9 = vrot.slane %v4140_v62, 6  ;;  %v1607_v46 = vrot.slane %v4140_v62, 5  ;;  %v1763_v10 = vrot.slane %v4140_v62, 7 }
 0x16a   :  { %3201 = vmatmul.mubr.msk.bf16.vlgmr.msra.gmra.mxu1 %vm1253_vm2, %v1228_v31  ;;  %3225 = vmatmul.mubr.msk.bf16.vlgmr.msra.gmra.mxu0 %vm1253_vm2, %v1373_v35  ;;  %v3605_v31 = vld [vmem:[%s4455_s3 + $0x1f8] sm:$0xff]   ;;  %v2231_v35 = vrot.slane %v4132_v54, 5 }
 0x16b   :  { %3205 = vmatpush3.bf16.msra.mxu1 %v3553_v61  ;;  %3241 = vmatpush3.bf16.msra.mxu0 %v3554_v29  ;;  %v3603_v61 = vld [vmem:[%s4455_s3 + $0x1a8] sm:$0xff]   ;;  %v3604_v29 = vld [vmem:[%s4455_s3 + $0x1a0] sm:$0xff]  }
 0x16c   :  { %3206 = vmatprep.subr.bf16.mxu1 %v3635_v43  ;;  %3242 = vmatprep.subr.bf16.mxu0 %v3635_v43 }
 0x16d   :  { %3212 = vmatprep.mubr.msk.bf16.mxu1 %vm3636_vm1, %v3635_v43  ;;  %3248 = vmatprep.mubr.msk.bf16.mxu0 %vm3636_vm1, %v3635_v43 }
 0x16f   :  { %3207 = vmatpush3.bf16.msra.mxu1 %v3555_v39  ;;  %3243 = vmatpush3.bf16.msra.mxu0 %v3556_v23  ;;  %v3606_v39 = vld [vmem:[%s4455_s3 + $0x1f0] sm:$0xff]   ;;  %v3607_v23 = vld [vmem:[%s4455_s3 + $0x1e8] sm:$0xff]  }
 0x170   :  { %3208 = vmatprep.subr.bf16.mxu1 %v3635_v43  ;;  %3244 = vmatprep.subr.bf16.mxu0 %v3635_v43 }
 0x173   :  { %3209 = vmatpush3.bf16.msra.mxu1 %v3557_v44  ;;  %3245 = vmatpush3.bf16.msra.mxu0 %v3558_v63  ;;  %v3608_v44 = vld [vmem:[%s4455_s3 + $0x1e0] sm:$0xff]   ;;  %v2387_v63 = vrot.slane %v4132_v54, 7 }
 0x174   :  { %3210 = vmatprep.subr.bf16.mxu1 %v3635_v43  ;;  %3246 = vmatprep.subr.bf16.mxu0 %v3635_v43 }
 0x177   :  { %3211 = vmatpush3.bf16.msra.mxu1 %v3559_v3  ;;  %3247 = vmatpush3.bf16.msra.mxu0 %v3560_v4  ;;  %v3609_v3 = vld [vmem:[%s4457_s5 + $0x18] sm:$0xff]   ;;  %v3610_v4 = vld [vmem:[%s4457_s5 + $0x10] sm:$0xff]  }
 0x178   :  { %3228 = vmatprep.subr.bf16.mxu1 %v3635_v43  ;;  %3264 = vmatprep.subr.bf16.mxu0 %v3635_v43 }
 0x17a   :  { %3213 = vmatmul.mubr.msk.bf16.vlgmr.msra.gmra.mxu1 %vm1253_vm2, %v4140_v62  ;;  %3249 = vmatmul.mubr.msk.bf16.vlgmr.msra.gmra.mxu0 %vm1253_vm2, %v1529_v37  ;;  %v3602_v62 = vld [vmem:[%s4455_s3 + $0x1b0] sm:$0xff]  }
 0x17b   :  { %3229 = vmatpush3.bf16.msra.mxu1 %v3561_v5  ;;  %3265 = vmatpush3.bf16.msra.mxu0 %v3562_v6 }
 0x17c   :  { %3230 = vmatprep.subr.bf16.mxu1 %v3635_v43  ;;  %3266 = vmatprep.subr.bf16.mxu0 %v3635_v43 }
 0x17d   :  { %3236 = vmatprep.mubr.msk.bf16.mxu1 %vm3636_vm1, %v3635_v43  ;;  %3272 = vmatprep.mubr.msk.bf16.mxu0 %vm3636_vm1, %v3635_v43 }
 0x17f   :  { %3231 = vmatpush3.bf16.msra.mxu1 %v3563_v7  ;;  %3267 = vmatpush3.bf16.msra.mxu0 %v3564_v11  ;;  %v3612_v11 = vld [vmem:[%s4457_s5] sm:$0xff]  }
 0x180   :  { %3232 = vmatprep.subr.bf16.mxu1 %v3635_v43  ;;  %3268 = vmatprep.subr.bf16.mxu0 %v3635_v43 }
 0x183   :  { %3233 = vmatpush3.bf16.msra.mxu1 %v3565_v19  ;;  %3269 = vmatpush3.bf16.msra.mxu0 %v3566_v0 }
 0x184   :  { %3234 = vmatprep.subr.bf16.mxu1 %v3635_v43  ;;  %3270 = vmatprep.subr.bf16.mxu0 %v3635_v43 }
 0x187   :  { %3235 = vmatpush3.bf16.msra.mxu1 %v3567_v21  ;;  %3271 = vmatpush3.bf16.msra.mxu0 %v3568_v45 }
 0x188   :  { %3252 = vmatprep.subr.bf16.mxu1 %v3635_v43  ;;  %3288 = vmatprep.subr.bf16.mxu0 %v3635_v43 }
 0x18a   :  { %3237 = vmatmul.mubr.msk.bf16.vlgmr.msra.gmra.mxu1 %vm1253_vm2, %v1451_v25  ;;  %3273 = vmatmul.mubr.msk.bf16.vlgmr.msra.gmra.mxu0 %vm1253_vm2, %v1685_v9 }
 0x18b   :  { %3253 = vmatpush3.bf16.msra.mxu1 %v3569_v22  ;;  %3289 = vmatpush3.bf16.msra.mxu0 %v3570_v24 }
 0x18c   :  { %3254 = vmatprep.subr.bf16.mxu1 %v3635_v43  ;;  %3290 = vmatprep.subr.bf16.mxu0 %v3635_v43 }
 0x18d   :  { %3260 = vmatprep.mubr.msk.bf16.mxu1 %vm3636_vm1, %v3635_v43  ;;  %3296 = vmatprep.mubr.msk.bf16.mxu0 %vm3636_vm1, %v3635_v43 }
 0x18f   :  { %3255 = vmatpush3.bf16.msra.mxu1 %v3571_v20  ;;  %3291 = vmatpush3.bf16.msra.mxu0 %v3572_v26 }
 0x190   :  { %3256 = vmatprep.subr.bf16.mxu1 %v3635_v43  ;;  %3292 = vmatprep.subr.bf16.mxu0 %v3635_v43 }
 0x193   :  { %3257 = vmatpush3.bf16.msra.mxu1 %v3573_v27  ;;  %3293 = vmatpush3.bf16.msra.mxu0 %v3574_v28 }
 0x194   :  { %3258 = vmatprep.subr.bf16.mxu1 %v3635_v43  ;;  %3294 = vmatprep.subr.bf16.mxu0 %v3635_v43 }
 0x197   :  { %3259 = vmatpush3.bf16.msra.mxu1 %v3575_v32  ;;  %3295 = vmatpush3.bf16.msra.mxu0 %v3576_v8 }
 0x198   :  { %3276 = vmatprep.subr.bf16.mxu1 %v3635_v43  ;;  %3312 = vmatprep.subr.bf16.mxu0 %v3635_v43 }
 0x19a   :  { %3261 = vmatmul.mubr.msk.bf16.vlgmr.msra.gmra.mxu1 %vm1253_vm2, %v1607_v46  ;;  %3297 = vmatmul.mubr.msk.bf16.vlgmr.msra.gmra.mxu0 %vm1253_vm2, %v4132_v54  ;;  %v3611_v54 = vld [vmem:[%s4457_s5 + $0x8] sm:$0xff]  }
 0x19b   :  { %3277 = vmatpush3.bf16.msra.mxu1 %v3577_v1  ;;  %3313 = vmatpush3.bf16.msra.mxu0 %v3578_v13 }
 0x19c   :  { %3278 = vmatprep.subr.bf16.mxu1 %v3635_v43  ;;  %3314 = vmatprep.subr.bf16.mxu0 %v3635_v43 }
 0x19d   :  { %3284 = vmatprep.mubr.msk.bf16.mxu1 %vm3636_vm1, %v3635_v43  ;;  %3320 = vmatprep.mubr.msk.bf16.mxu0 %vm3636_vm1, %v3635_v43 }
 0x19f   :  { %3279 = vmatpush3.bf16.msra.mxu1 %v3579_v16  ;;  %3315 = vmatpush3.bf16.msra.mxu0 %v3580_v33 }
 0x1a0   :  { %3280 = vmatprep.subr.bf16.mxu1 %v3635_v43  ;;  %3316 = vmatprep.subr.bf16.mxu0 %v3635_v43 }
 0x1a3   :  { %3281 = vmatpush3.bf16.msra.mxu1 %v3581_v34  ;;  %3317 = vmatpush3.bf16.msra.mxu0 %v3582_v36 }
 0x1a4   :  { %3282 = vmatprep.subr.bf16.mxu1 %v3635_v43  ;;  %3318 = vmatprep.subr.bf16.mxu0 %v3635_v43 }
 0x1a7   :  { %3283 = vmatpush3.bf16.msra.mxu1 %v3583_v51  ;;  %3319 = vmatpush3.bf16.msra.mxu0 %v3584_v55 }
 0x1a8   :  { %3300 = vmatprep.subr.bf16.mxu1 %v3635_v43  ;;  %3336 = vmatprep.subr.bf16.mxu0 %v3635_v43 }
 0x1aa   :  { %3285 = vmatmul.mubr.msk.bf16.vlgmr.msra.gmra.mxu1 %vm1253_vm2, %v1763_v10  ;;  %3321 = vmatmul.mubr.msk.bf16.vlgmr.msra.gmra.mxu0 %vm1253_vm2, %v1997_v59 }
 0x1ab   :  { %3301 = vmatpush3.bf16.msra.mxu1 %v3585_v12  ;;  %3337 = vmatpush3.bf16.msra.mxu0 %v3586_v38 }
 0x1ac   :  { %3302 = vmatprep.subr.bf16.mxu1 %v3635_v43  ;;  %3338 = vmatprep.subr.bf16.mxu0 %v3635_v43 }
 0x1ad   :  { %3308 = vmatprep.mubr.msk.bf16.mxu1 %vm3636_vm1, %v3635_v43  ;;  %3344 = vmatprep.mubr.msk.bf16.mxu0 %vm3636_vm1, %v3635_v43 }
 0x1af   :  { %3303 = vmatpush3.bf16.msra.mxu1 %v3587_v40  ;;  %3339 = vmatpush3.bf16.msra.mxu0 %v3588_v14 }
 0x1b0   :  { %3304 = vmatprep.subr.bf16.mxu1 %v3635_v43  ;;  %3340 = vmatprep.subr.bf16.mxu0 %v3635_v43 }
 0x1b3   :  { %3305 = vmatpush3.bf16.msra.mxu1 %v3589_v15  ;;  %3341 = vmatpush3.bf16.msra.mxu0 %v3590_v52 }
 0x1b4   :  { %3306 = vmatprep.subr.bf16.mxu1 %v3635_v43  ;;  %3342 = vmatprep.subr.bf16.mxu0 %v3635_v43 }
 0x1b7   :  { %3307 = vmatpush3.bf16.msra.mxu1 %v3591_v17  ;;  %3343 = vmatpush3.bf16.msra.mxu0 %v3592_v18 }
 0x1b8   :  { %3324 = vmatprep.subr.bf16.mxu1 %v3635_v43  ;;  %3360 = vmatprep.subr.bf16.mxu0 %v3635_v43 }
 0x1ba   :  { %3309 = vmatmul.mubr.msk.bf16.vlgmr.msra.gmra.mxu1 %vm1253_vm2, %v1919_v47  ;;  %3345 = vmatmul.mubr.msk.bf16.vlgmr.msra.gmra.mxu0 %vm1253_vm2, %v2153_v2 }
 0x1bb   :  { %3325 = vmatpush3.bf16.msra.mxu1 %v3593_v56  ;;  %3361 = vmatpush3.bf16.msra.mxu0 %v3594_v42 }
 0x1bc   :  { %3326 = vmatprep.subr.bf16.mxu1 %v3635_v43  ;;  %3362 = vmatprep.subr.bf16.mxu0 %v3635_v43 }
 0x1bd   :  { %3332 = vmatprep.mubr.msk.bf16.mxu1 %vm3636_vm1, %v3635_v43  ;;  %3368 = vmatprep.mubr.msk.bf16.mxu0 %vm3636_vm1, %v3635_v43 }
 0x1bf   :  { %3327 = vmatpush3.bf16.msra.mxu1 %v3595_v48  ;;  %3363 = vmatpush3.bf16.msra.mxu0 %v3596_v49 }
 0x1c0   :  { %3328 = vmatprep.subr.bf16.mxu1 %v3635_v43  ;;  %3364 = vmatprep.subr.bf16.mxu0 %v3635_v43 }
 0x1c3   :  { %3329 = vmatpush3.bf16.msra.mxu1 %v3597_v50  ;;  %3365 = vmatpush3.bf16.msra.mxu0 %v3598_v41 }
 0x1c4   :  { %3330 = vmatprep.subr.bf16.mxu1 %v3635_v43  ;;  %3366 = vmatprep.subr.bf16.mxu0 %v3635_v43 }
 0x1c7   :  { %3331 = vmatpush3.bf16.msra.mxu1 %v3599_v53  ;;  %3367 = vmatpush3.bf16.msra.mxu0 %v3600_v30 }
 0x1c8   :  { %3348 = vmatprep.subr.bf16.mxu1 %v3635_v43  ;;  %3384 = vmatprep.subr.bf16.mxu0 %v3635_v43 }
 0x1ca   :  { %3333 = vmatmul.mubr.msk.bf16.vlgmr.msra.gmra.mxu1 %vm1253_vm2, %v2075_v58  ;;  %3369 = vmatmul.mubr.msk.bf16.vlgmr.msra.gmra.mxu0 %vm1253_vm2, %v2309_v60 }
 0x1cb   :  { %3349 = vmatpush3.bf16.msra.mxu1 %v3601_v57  ;;  %3356 = vmatprep.mubr.msk.bf16.mxu1 %vm3636_vm1, %v3635_v43 }
 0x1cc   :  { %3350 = vmatprep.subr.bf16.mxu1 %v3635_v43  ;;  %3392 = vmatprep.mubr.msk.bf16.mxu0 %vm3636_vm1, %v3635_v43 }
 0x1cd   :  { %3385 = vmatpush3.bf16.msra.mxu0 %v3609_v3 }
 0x1ce   :  { %3386 = vmatprep.subr.bf16.mxu0 %v3635_v43 }
 0x1cf   :  { %3351 = vmatpush3.bf16.msra.mxu1 %v3602_v62 }
 0x1d0   :  { %3352 = vmatprep.subr.bf16.mxu1 %v3635_v43 }
 0x1d1   :  { %3387 = vmatpush3.bf16.msra.mxu0 %v3610_v4 }
 0x1d2   :  { %3388 = vmatprep.subr.bf16.mxu0 %v3635_v43 }
 0x1d3   :  { %3353 = vmatpush3.bf16.msra.mxu1 %v3603_v61 }
 0x1d4   :  { %3354 = vmatprep.subr.bf16.mxu1 %v3635_v43 }
 0x1d5   :  { %3389 = vmatpush3.bf16.msra.mxu0 %v3611_v54 }
 0x1d6   :  { %3390 = vmatprep.subr.bf16.mxu0 %v3635_v43 }
 0x1d7   :  { %3355 = vmatpush3.bf16.msra.mxu1 %v3604_v29 }
 0x1d8   :  { %3372 = vmatprep.subr.bf16.mxu1 %v3635_v43 }
 0x1d9   :  { %3391 = vmatpush3.bf16.msra.mxu0 %v3612_v11 }
 0x1da   :  { %3357 = vmatmul.mubr.msk.bf16.vlgmr.msra.gmra.mxu1 %vm1253_vm2, %v2231_v35 }
 0x1db   :  { %3373 = vmatpush3.bf16.msra.mxu1 %v3605_v31  ;;  %3380 = vmatprep.mubr.msk.bf16.mxu1 %vm3636_vm1, %v3635_v43 }
 0x1dc   :  { %3374 = vmatprep.subr.bf16.mxu1 %v3635_v43 }
 0x1df   :  { %3375 = vmatpush3.bf16.msra.mxu1 %v3606_v39 }
 0x1e0   :  { %3376 = vmatprep.subr.bf16.mxu1 %v3635_v43 }
 0x1e3   :  { %3377 = vmatpush3.bf16.msra.mxu1 %v3607_v23 }
 0x1e4   :  { %3378 = vmatprep.subr.bf16.mxu1 %v3635_v43 }
 0x1e7   :  { %3379 = vmatpush3.bf16.msra.mxu1 %v3608_v44 }
 0x1ea   :  { %3381 = vmatmul.mubr.msk.bf16.vlgmr.msra.gmra.mxu1 %vm1253_vm2, %v2387_v63 }
 0x22a   :  { %v1291_v5 = vpop.f32.mrf.mxu1  ;;  %v1435_v6 = vpop.f32.mrf.mxu0 }
 0x22c   :  { %v3202_v37 = vpop.f32.mrf.mxu1  ;;  %v3226_v7 = vpop.f32.mrf.mxu0 }
 0x22e   :  { %v1294_v19 = vpop.f32.mrf.mxu1  ;;  %v1438_v0 = vpop.f32.mrf.mxu0 }
 0x230   :  { %v3203_v21 = vpop.f32.mrf.mxu1  ;;  %v3227_v45 = vpop.f32.mrf.mxu0 }
 0x23a   :  { %v1358_v22 = vpop.f32.mrf.mxu1  ;;  %v1591_v24 = vpop.f32.mrf.mxu0 }
 0x23b   :  { %v1359_v25 = vadd.f32 %v1358_v22, %v1291_v5 }
 0x23c   :  { %v3214_v9 = vpop.f32.mrf.mxu1  ;;  %v3250_v20 = vpop.f32.mrf.mxu0 }
 0x23d   :  { %v1441_v26 = vadd.f32 %v1435_v6, %v1359_v25  ;;  %v2878_v9 = vld [vmem:[%s4456_s4] ss:$0 sm:$0xff]  ;;  %s3613_s4 = scalar_lea.vmem %s2556_s14, 32 }
 0x23e   :  { %v1361_v27 = vpop.f32.mrf.mxu1  ;;  %v1594_v28 = vpop.f32.mrf.mxu0  ;;  %p3614_p0 = scmp.ne.s32.totalorder %s2556_s14, %s3613_s4  ;;  %p3619_p2 = scmp.lt.s32.totalorder %s3613_s4, %s3613_s4 }
 0x240   :  { %v3215_v32 = vpop.f32.mrf.mxu1  ;;  %v3251_v8 = vpop.f32.mrf.mxu0  ;;  %p3620_p3 = por %p3619_p2, %p3618_p1 }
 0x242   :  { %p3621_p4 = pnand %p3620_p3, %p3614_p0 }
 0x24a   :  { %v1513_v43 = vpop.f32.mrf.mxu1  ;;  %v1747_v1 = vpop.f32.mrf.mxu0 }
 0x24b   :  { %v1519_v13 = vadd.f32 %v1513_v43, %v1441_v26  ;;  %v2879_v43 = vld [vmem:[%s4458_s6] ss:$0 sm:$0xff] }
 0x24c   :  { %v3238_v46 = vpop.f32.mrf.mxu1  ;;  %v3274_v16 = vpop.f32.mrf.mxu0 }
 0x24d   :  { %v1597_v33 = vadd.f32 %v1591_v24, %v1519_v13 }
 0x24e   :  { %v1516_v34 = vpop.f32.mrf.mxu1  ;;  %v1750_v36 = vpop.f32.mrf.mxu0 }
 0x250   :  { %v3239_v51 = vpop.f32.mrf.mxu1  ;;  %v3275_v55 = vpop.f32.mrf.mxu0 }
 0x25a   :  { %v1669_v12 = vpop.f32.mrf.mxu1  ;;  %v1902_v38 = vpop.f32.mrf.mxu0 }
 0x25b   :  { %v1675_v10 = vadd.f32 %v1669_v12, %v1597_v33 }
 0x25c   :  { %v3262_v59 = vpop.f32.mrf.mxu1  ;;  %v3298_v40 = vpop.f32.mrf.mxu0 }
 0x25d   :  { %v1753_v14 = vadd.f32 %v1747_v1, %v1675_v10 }
 0x25e   :  { %v1672_v15 = vpop.f32.mrf.mxu1  ;;  %v1905_v52 = vpop.f32.mrf.mxu0 }
 0x260   :  { %v3263_v17 = vpop.f32.mrf.mxu1  ;;  %v3299_v18 = vpop.f32.mrf.mxu0 }
 0x26a   :  { %v1825_v56 = vpop.f32.mrf.mxu1  ;;  %v2059_v42 = vpop.f32.mrf.mxu0 }
 0x26b   :  { %v1831_v47 = vadd.f32 %v1825_v56, %v1753_v14 }
 0x26c   :  { %v3286_v2 = vpop.f32.mrf.mxu1  ;;  %v3322_v48 = vpop.f32.mrf.mxu0 }
 0x26d   :  { %v1908_v49 = vadd.f32 %v1902_v38, %v1831_v47 }
 0x26e   :  { %v1828_v50 = vpop.f32.mrf.mxu1  ;;  %v2062_v41 = vpop.f32.mrf.mxu0 }
 0x270   :  { %v3287_v53 = vpop.f32.mrf.mxu1  ;;  %v3323_v30 = vpop.f32.mrf.mxu0 }
 0x27a   :  { %v1981_v57 = vpop.f32.mrf.mxu1  ;;  %v2215_v58 = vpop.f32.mrf.mxu0 }
 0x27b   :  { %v1987_v6 = vadd.f32 %v1981_v57, %v1908_v49 }
 0x27c   :  { %v3310_v60 = vpop.f32.mrf.mxu1  ;;  %v3346_v62 = vpop.f32.mrf.mxu0 }
 0x27d   :  { %v2065_v11 = vadd.f32 %v2059_v42, %v1987_v6 }
 0x27e   :  { %v1984_v61 = vpop.f32.mrf.mxu1  ;;  %v2218_v29 = vpop.f32.mrf.mxu0 }
 0x280   :  { %v3311_v31 = vpop.f32.mrf.mxu1  ;;  %v3347_v35 = vpop.f32.mrf.mxu0 }
 0x28a   :  { %v2137_v39 = vpop.f32.mrf.mxu1  ;;  %v2371_v23 = vpop.f32.mrf.mxu0 }
 0x28b   :  { %v2143_v0 = vadd.f32 %v2137_v39, %v2065_v11 }
 0x28c   :  { %v3334_v44 = vpop.f32.mrf.mxu1  ;;  %v3370_v63 = vpop.f32.mrf.mxu0 }
 0x28d   :  { %v2221_v45 = vadd.f32 %v2215_v58, %v2143_v0 }
 0x28e   :  { %v2140_v3 = vpop.f32.mrf.mxu1  ;;  %v2374_v4 = vpop.f32.mrf.mxu0 }
 0x290   :  { %v3335_v54 = vpop.f32.mrf.mxu1  ;;  %v3371_v5 = vpop.f32.mrf.mxu0 }
 0x29a   :  { %v2293_v37 = vpop.f32.mrf.mxu1 }
 0x29b   :  { %v2299_v22 = vadd.f32 %v2293_v37, %v2221_v45 }
 0x29c   :  { %v3358_v7 = vpop.f32.mrf.mxu1 }
 0x29d   :  { %v2377_v24 = vadd.f32 %v2371_v23, %v2299_v22 }
 0x29e   :  { %v2296_v19 = vpop.f32.mrf.mxu1 }
 0x2a0   :  { %v3359_v21 = vpop.f32.mrf.mxu1 }
 0x2aa   :  { %v2449_v25 = vpop.f32.mrf.mxu1 }
 0x2ab   :  { %v2455_v20 = vadd.f32 %v2449_v25, %v2377_v24 }
 0x2ac   :  { %v3382_v26 = vpop.f32.mrf.mxu1 }
 0x2ad   :  { %v2463_v27 = vadd.f32 %v2878_v9, %v2455_v20 }
 0x2ae   :  { %v2452_v28 = vpop.f32.mrf.mxu1 }
 0x2af   :  { %v2464_v32 = vpack.c.bf16 %v2463_v27, %v2463_v27 }
 0x2b0   :  { %v3383_v8 = vpop.f32.mrf.mxu1 }
 0x2b1   :  { %3393 = vmatmul.mubr.msk.bf16.vlgmr.msra.gmra.mxu0 %vm1253_vm2, %v2464_v32 }
 0x371   :  { %v2541_v1 = vpop.f32.mrf.mxu0 }
 0x372   :  { %v2542_v13 = vadd.f32 %v2879_v43, %v2541_v1 }
 0x373   :  { %v3394_v46 = vpop.f32.mrf.mxu0 }
 0x374   :  { %2548 = vst.msk [vmem:[#allocation2] sm:$0x3] %vm2547_vm3, %v2542_v13 }
 0x375   :  { %v2544_v16 = vpop.f32.mrf.mxu0 }
 0x376   :  { %3624 = shalt.err (!%p3621_p4)
}
 0x377   :  { %2558 = dma.vmem_to_hbm [thread:$0]  %s2556_s14, 32, %s4459_s7, [#allocation3]   ;;  %v3395_v33 = vpop.f32.mrf.mxu0 }
 0x378   :  { %3633 = dma.done.wait [#allocation3], 32  }
 0x379   :  { %3634 = vsyncadd [#allocation3], 4294967264 }
 0x37a   :  { %2562 = vsyncpa [#allocation3], 1 }

</bundles_post_ra>
